<compile_context>
chip_gen: v5e
topology: v5e:2x2
jax: 0.10.0
libtpu: 0.0.40
codegen_flags: <defaults>
</compile_context>

<pallas_src>
import functools

import numpy as np

import jax
import jax.numpy as jnp
from jax.experimental import pallas as pl
from jax.experimental.pallas import tpu as pltpu


# ----------------------------------------------------------------------------
# The single fused kernel.
# ----------------------------------------------------------------------------
def _cnn_fused_kernel(x_ref, mask_ref, sel_ref, w1_ref, w2_ref, w3_ref,
                      wpc_ref, wprep_ref, wvc_ref, wvrep_ref, wv2_ref,
                      bias_ref, pol_ref, val_ref, *, B, H, W):
    f32, bf16 = jnp.float32, jnp.bfloat16
    HW = H * W
    MN = HW
    BHW = B * HW
    pad = -(-(W + 1) // 8) * 8          # guard rows (multiple of 8, >= W+1)

    bias = bias_ref[...]                                     # (8, 128) f32
    sel = sel_ref[...]                                       # (B, BHW) bf16 0/1

    def conv3x3_relu(x, w_ref, brow):
        """3x3 'same' conv + ReLU on a (BHW, Cin) f32 activation.

        Each tap is a static slice of a zero-padded copy of the activation
        (sublane shift) times a precomputed 0/1 edge mask (VPU); the MXU only
        runs the 9 K=Cin tap matmuls (f32 accumulation).
        """
        cin = x.shape[1]
        cout = w_ref.shape[-1]
        zpad = jnp.zeros((pad, cin), f32)
        xpad = jnp.concatenate([zpad, x, zpad], axis=0)      # aligned concat
        acc = jnp.zeros((BHW, cout), f32)
        for t in range(9):
            dy, dx = t // 3 - 1, t % 3 - 1
            if (dy, dx) == (0, 0):
                shifted = x
            else:
                start = pad + dy * W + dx
                shifted = xpad[start:start + BHW, :] * mask_ref[:, t:t + 1]
            acc = acc + jnp.dot(shifted.astype(bf16), w_ref[t],
                                preferred_element_type=f32)
        return jnp.maximum(acc + brow, 0.0)

    # ---- conv trunk: 4 -> 32 -> 64 -> 128 channels, all VMEM resident ------
    # Layer 1 is one im2col matmul (patches built in the wrapper, K=36).
    x1 = jnp.maximum(
        jnp.dot(x_ref[...], w1_ref[...], preferred_element_type=f32)
        + bias[0:1, 0:32], 0.0)                              # (BHW, 32)
    x2 = conv3x3_relu(x1, w2_ref, bias[1:2, 0:64])           # (BHW, 64)
    x3 = conv3x3_relu(x2, w3_ref, bias[2:3, 0:128])          # (BHW, 128)
    xb = x3.astype(bf16)

    def rep_batch(w2d):
        # (HW, X) -> (BHW, X): same head weights for every batch element.
        return jnp.concatenate([w2d] * B, axis=0)

    # ---- policy head: 1x1 conv(128->4)+ReLU, Linear(4*MN->MN), LogSoftmax --
    p = jnp.maximum(
        jnp.dot(xb, wpc_ref[...], preferred_element_type=f32)
        + bias[3:4, 0:4], 0.0)                               # (BHW, 4)
    mp = p[:, 0:1] * rep_batch(wprep_ref[0])
    for c in range(1, 4):
        mp = mp + p[:, c:c + 1] * rep_batch(wprep_ref[c])    # (BHW, MN)
    logits = jnp.dot(sel, mp.astype(bf16), preferred_element_type=f32) \
        + bias[4:5, 0:MN]                                    # (B, MN)
    z = logits - jnp.max(logits, axis=-1, keepdims=True)
    pol_ref[...] = z - jnp.log(jnp.sum(jnp.exp(z), axis=-1, keepdims=True))

    # ---- value head: 1x1 conv(128->2)+ReLU, Linear(2*MN->64)+ReLU,
    #      Linear(64->1), Tanh ------------------------------------------------
    v = jnp.maximum(
        jnp.dot(xb, wvc_ref[...], preferred_element_type=f32)
        + bias[5:6, 0:2], 0.0)                               # (BHW, 2)
    mv = v[:, 0:1] * rep_batch(wvrep_ref[0]) + v[:, 1:2] * rep_batch(wvrep_ref[1])
    h = jnp.maximum(
        jnp.dot(sel, mv.astype(bf16), preferred_element_type=f32)
        + bias[6:7, 0:64], 0.0)                              # (B, 64)
    # 64 -> 1 projection as VPU multiply + lane reduce (no N=1 matmul).
    val_ref[...] = jnp.tanh(
        jnp.sum(h * wv2_ref[...], axis=-1, keepdims=True) + bias[7:8, 0:1])


# ----------------------------------------------------------------------------
# One-time parameter / constant re-layout (PyTorch layouts -> kernel layouts).
# ----------------------------------------------------------------------------
def _build_tap_masks(B, H, W):
    """mask[r, t] = 1 iff output row r has a valid (in-bounds) source for tap t."""
    HW = H * W
    m = np.zeros((B * HW, 9), np.float32)
    for t in range(9):
        dy, dx = t // 3 - 1, t % 3 - 1
        for b in range(B):
            for h in range(H):
                for w in range(W):
                    if 0 <= h + dy < H and 0 <= w + dx < W:
                        m[b * HW + h * W + w, t] = 1.0
    return jnp.asarray(m)


def prepare_inputs(params, B, M, N):
    MN = M * N
    assert MN <= 128, "bias packing / lane-dense heads assume M*N <= 128"
    bf = jnp.bfloat16

    def conv_taps(w):  # OIHW (Cout, Cin, 3, 3) -> (9, Cin, Cout) bf16
        co, ci, _, _ = w.shape
        return jnp.transpose(w, (2, 3, 1, 0)).reshape(9, ci, co).astype(bf)

    # Layer 1 as one im2col weight matrix (36, 32); layers 2/3 per-tap.
    w1 = jnp.transpose(params["w1"], (2, 3, 1, 0)).reshape(36, 32).astype(bf)
    w2 = conv_taps(params["w2"])                                  # (9, 32, 64)
    w3 = conv_taps(params["w3"])                                  # (9, 64, 128)

    # 1x1 conv weights.
    wpc = jnp.transpose(params["wpc"].reshape(4, 128)).astype(bf)  # (128, 4)
    wvc = jnp.transpose(params["wvc"].reshape(2, 128)).astype(bf)  # (128, 2)
    wv2 = params["wv2"].astype(jnp.float32)                        # (1, 64)

    # CHW-flatten linears -> (channel, spatial, out); NOT replicated over batch.
    wprep = jnp.transpose(params["wpf"].reshape(MN, 4, MN),
                          (1, 2, 0)).astype(jnp.float32)           # (4, MN, MN)
    wvrep = jnp.transpose(params["wv1"].reshape(64, 2, MN),
                          (1, 2, 0)).astype(jnp.float32)           # (2, MN, 64)

    # All 8 biases packed into one (8, 128) f32 array.
    bias = jnp.zeros((8, 128), jnp.float32)
    for i, b in enumerate([params["b1"], params["b2"], params["b3"],
                           params["bpc"], params["bpf"], params["bvc"],
                           params["bv1"], params["bv2"]]):
        bias = bias.at[i, : b.shape[0]].set(b)

    # Batch-aggregation selector: sel[b, r] = 1 iff row r belongs to batch b.
    sel = (np.arange(B * MN)[None, :] // MN == np.arange(B)[:, None])
    sel = jnp.asarray(sel.astype(np.float32)).astype(jnp.bfloat16)  # (B, BHW)

    mask = _build_tap_masks(B, M, N)                                # (BHW, 9)

    return {"mask": mask, "sel": sel, "w1": w1, "w2": w2, "w3": w3,
            "wpc": wpc, "wprep": wprep, "wvc": wvc, "wvrep": wvrep,
            "wv2": wv2, "bias": bias}


# ----------------------------------------------------------------------------
# Forward pass: layer-1 im2col in the wrapper, then a single fused pallas_call.
# ----------------------------------------------------------------------------
def _im2col_3x3(x_nchw):
    B, C, H, W = x_nchw.shape
    x = jnp.transpose(x_nchw, (0, 2, 3, 1))                       # (B, H, W, C)
    xp = jnp.pad(x, ((0, 0), (1, 1), (1, 1), (0, 0)))
    cols = [xp[:, ky:ky + H, kx:kx + W, :] for ky in range(3) for kx in range(3)]
    return jnp.concatenate(cols, axis=-1).reshape(B * H * W, 9 * C)


@jax.jit
def cnn_forward(x_nchw, consts):
    B, C, M, N = x_nchw.shape
    patches = _im2col_3x3(x_nchw).astype(jnp.bfloat16)            # (BHW, 9*C)

    kernel = functools.partial(_cnn_fused_kernel, B=B, H=M, W=N)
    vmem = pl.BlockSpec(memory_space=pltpu.MemorySpace.VMEM)
    pol, val = pl.pallas_call(
        kernel,
        out_shape=(jax.ShapeDtypeStruct((B, M * N), jnp.float32),
                   jax.ShapeDtypeStruct((B, 1), jnp.float32)),
        in_specs=[vmem] * 12,
        out_specs=(vmem, vmem),
    )(patches, consts["mask"], consts["sel"], consts["w1"], consts["w2"],
      consts["w3"], consts["wpc"], consts["wprep"], consts["wvc"],
      consts["wvrep"], consts["wv2"], consts["bias"])
    return pol, val


# ----------------------------------------------------------------------------
# Deterministic parameter init (PyTorch-style shapes: OIHW conv, (out,in) fc).
# ----------------------------------------------------------------------------
def init_params(key, M, N):
    def uni(k, shape, fan_in):
        bound = 1.0 / np.sqrt(fan_in)
        return jax.random.uniform(k, shape, jnp.float32, -bound, bound)

    ks = jax.random.split(key, 16)
    MN = M * N
    return {
        "w1": uni(ks[0], (32, 4, 3, 3), 4 * 9),    "b1": uni(ks[1], (32,), 4 * 9),
        "w2": uni(ks[2], (64, 32, 3, 3), 32 * 9),  "b2": uni(ks[3], (64,), 32 * 9),
        "w3": uni(ks[4], (128, 64, 3, 3), 64 * 9), "b3": uni(ks[5], (128,), 64 * 9),
        "wpc": uni(ks[6], (4, 128, 1, 1), 128),    "bpc": uni(ks[7], (4,), 128),
        "wpf": uni(ks[8], (MN, 4 * MN), 4 * MN),   "bpf": uni(ks[9], (MN,), 4 * MN),
        "wvc": uni(ks[10], (2, 128, 1, 1), 128),   "bvc": uni(ks[11], (2,), 128),
        "wv1": uni(ks[12], (64, 2 * MN), 2 * MN),  "bv1": uni(ks[13], (64,), 2 * MN),
        "wv2": uni(ks[14], (1, 64), 64),           "bv2": uni(ks[15], (1,), 64),
    }


# ----------------------------------------------------------------------------
# Pure-JAX reference (mirrors the PyTorch module exactly) for a sanity check.
# ----------------------------------------------------------------------------
def ref_forward(x, p):
    dn = ("NCHW", "OIHW", "NCHW")
    hi = jax.lax.Precision.HIGHEST

    def conv(x, w, b, pad):
        y = jax.lax.conv_general_dilated(x, w, (1, 1), [(pad, pad)] * 2,
                                         dimension_numbers=dn, precision=hi)
        return y + b.reshape(1, -1, 1, 1)

    x = jax.nn.relu(conv(x, p["w1"], p["b1"], 1))
    x = jax.nn.relu(conv(x, p["w2"], p["b2"], 1))
    x = jax.nn.relu(conv(x, p["w3"], p["b3"], 1))
    B = x.shape[0]

    pp = jax.nn.relu(conv(x, p["wpc"], p["bpc"], 0)).reshape(B, -1)
    pol = jax.nn.log_softmax(jnp.dot(pp, p["wpf"].T, precision=hi) + p["bpf"], axis=1)

    vv = jax.nn.relu(conv(x, p["wvc"], p["bvc"], 0)).reshape(B, -1)
    h = jax.nn.relu(jnp.dot(vv, p["wv1"].T, precision=hi) + p["bv1"])
    val = jnp.tanh(jnp.dot(h, p["wv2"].T, precision=hi) + p["bv2"])
    return pol, val


if __name__ == "__main__":
    B, M, N = 2, 8, 8                       # small board, batch folds to 128 rows
    key = jax.random.PRNGKey(0)
    kx, kp = jax.random.split(key)
    x = jax.random.normal(kx, (B, 4, M, N), jnp.float32)          # NCHW input
    params = init_params(kp, M, N)
    consts = prepare_inputs(params, B, M, N)

    pol, val = cnn_forward(x, consts)
    pol, val = jax.block_until_ready((pol, val))

    pol_ref, val_ref = ref_forward(x, params)
    np.testing.assert_allclose(np.asarray(pol), np.asarray(pol_ref),
                               rtol=2e-2, atol=2e-2)
    np.testing.assert_allclose(np.asarray(val), np.asarray(val_ref),
                               rtol=2e-2, atol=2e-2)
    assert pol.shape == (B, M * N) and val.shape == (B, 1)

    print("KERNEL_OK")
</pallas_src>

<mosaic_0001>
module attributes {stable_mosaic.version = 11 : i64} {
  func.func @_cnn_fused_kernel(%arg0: memref<128x36xbf16, #tpu.memory_space<vmem>>, %arg1: memref<128x9xf32, #tpu.memory_space<vmem>>, %arg2: memref<2x128xbf16, #tpu.memory_space<vmem>>, %arg3: memref<36x32xbf16, #tpu.memory_space<vmem>>, %arg4: memref<9x32x64xbf16, #tpu.memory_space<vmem>>, %arg5: memref<9x64x128xbf16, #tpu.memory_space<vmem>>, %arg6: memref<128x4xbf16, #tpu.memory_space<vmem>>, %arg7: memref<4x64x64xf32, #tpu.memory_space<vmem>>, %arg8: memref<128x2xbf16, #tpu.memory_space<vmem>>, %arg9: memref<2x64x64xf32, #tpu.memory_space<vmem>>, %arg10: memref<1x64xf32, #tpu.memory_space<vmem>>, %arg11: memref<8x128xf32, #tpu.memory_space<vmem>>, %arg12: memref<2x64xf32, #tpu.memory_space<vmem>>, %arg13: memref<2x1xf32, #tpu.memory_space<vmem>>) attributes {dimension_semantics = [], scalar_prefetch = 0 : i64, scratch_operands = 0 : i64, tpu.core_type = #tpu.core_type<tc>} {
    %c0 = arith.constant 0 : index
    %c0_0 = arith.constant 0 : index
    %0 = vector.load %arg11[%c0, %c0_0] : memref<8x128xf32, #tpu.memory_space<vmem>>, vector<8x128xf32>
    %c0_1 = arith.constant 0 : index
    %c0_2 = arith.constant 0 : index
    %1 = vector.load %arg2[%c0_1, %c0_2] : memref<2x128xbf16, #tpu.memory_space<vmem>>, vector<2x128xbf16>
    %c0_3 = arith.constant 0 : index
    %c0_4 = arith.constant 0 : index
    %2 = vector.load %arg0[%c0_3, %c0_4] : memref<128x36xbf16, #tpu.memory_space<vmem>>, vector<128x36xbf16>
    %c0_5 = arith.constant 0 : index
    %c0_6 = arith.constant 0 : index
    %3 = vector.load %arg3[%c0_5, %c0_6] : memref<36x32xbf16, #tpu.memory_space<vmem>>, vector<36x32xbf16>
    %cst = arith.constant dense<0.000000e+00> : vector<128x32xf32>
    %4 = tpu.matmul %2, %3, %cst {dimension_numbers = #tpu.dot_dimension_numbers<[1], [0], [0], [1], [0, 0, 1, 1], [], []>} : vector<128x36xbf16>, vector<36x32xbf16>, vector<128x32xf32> -> vector<128x32xf32>
    %5 = vector.extract_strided_slice %0 {offsets = [0, 0], sizes = [1, 32], strides = [1, 1]} : vector<8x128xf32> to vector<1x32xf32>
    %6 = vector.broadcast %5 : vector<1x32xf32> to vector<128x32xf32>
    %7 = arith.addf %4, %6 : vector<128x32xf32>
    %cst_7 = arith.constant 0.000000e+00 : f32
    %8 = vector.broadcast %cst_7 : f32 to vector<128x32xf32>
    %9 = arith.maximumf %7, %8 : vector<128x32xf32>
    %10 = vector.extract_strided_slice %0 {offsets = [1, 0], sizes = [1, 64], strides = [1, 1]} : vector<8x128xf32> to vector<1x64xf32>
    %cst_8 = arith.constant 0.000000e+00 : f32
    %11 = vector.broadcast %cst_8 : f32 to vector<16x32xf32>
    %12 = tpu.concatenate %11, %9, %11 in 0 : vector<16x32xf32>, vector<128x32xf32>, vector<16x32xf32> -> vector<160x32xf32>
    %cst_9 = arith.constant 0.000000e+00 : f32
    %13 = vector.broadcast %cst_9 : f32 to vector<128x64xf32>
    %14 = vector.extract_strided_slice %12 {offsets = [7, 0], sizes = [128, 32], strides = [1, 1]} : vector<160x32xf32> to vector<128x32xf32>
    %c0_10 = arith.constant 0 : index
    %c0_11 = arith.constant 0 : index
    %15 = vector.load %arg1[%c0_10, %c0_11] : memref<128x9xf32, #tpu.memory_space<vmem>>, vector<128x1xf32>
    %16 = vector.broadcast %15 : vector<128x1xf32> to vector<128x32xf32>
    %17 = arith.mulf %14, %16 : vector<128x32xf32>
    %18 = arith.truncf %17 : vector<128x32xf32> to vector<128x32xbf16>
    %c0_12 = arith.constant 0 : index
    %c0_13 = arith.constant 0 : index
    %c0_14 = arith.constant 0 : index
    %19 = vector.load %arg4[%c0_12, %c0_13, %c0_14] : memref<9x32x64xbf16, #tpu.memory_space<vmem>>, vector<1x32x64xbf16>
    %20 = vector.shape_cast %19 : vector<1x32x64xbf16> to vector<32x64xbf16>
    %cst_15 = arith.constant dense<0.000000e+00> : vector<128x64xf32>
    %21 = tpu.matmul %18, %20, %cst_15 {dimension_numbers = #tpu.dot_dimension_numbers<[1], [0], [0], [1], [0, 0, 1, 1], [], []>} : vector<128x32xbf16>, vector<32x64xbf16>, vector<128x64xf32> -> vector<128x64xf32>
    %22 = arith.addf %13, %21 : vector<128x64xf32>
    %23 = vector.extract_strided_slice %12 {offsets = [8, 0], sizes = [128, 32], strides = [1, 1]} : vector<160x32xf32> to vector<128x32xf32>
    %c0_16 = arith.constant 0 : index
    %c1 = arith.constant 1 : index
    %24 = vector.load %arg1[%c0_16, %c1] : memref<128x9xf32, #tpu.memory_space<vmem>>, vector<128x1xf32>
    %25 = vector.broadcast %24 : vector<128x1xf32> to vector<128x32xf32>
    %26 = arith.mulf %23, %25 : vector<128x32xf32>
    %27 = arith.truncf %26 : vector<128x32xf32> to vector<128x32xbf16>
    %c1_17 = arith.constant 1 : index
    %c0_18 = arith.constant 0 : index
    %c0_19 = arith.constant 0 : index
    %28 = vector.load %arg4[%c1_17, %c0_18, %c0_19] : memref<9x32x64xbf16, #tpu.memory_space<vmem>>, vector<1x32x64xbf16>
    %29 = vector.shape_cast %28 : vector<1x32x64xbf16> to vector<32x64xbf16>
    %cst_20 = arith.constant dense<0.000000e+00> : vector<128x64xf32>
    %30 = tpu.matmul %27, %29, %cst_20 {dimension_numbers = #tpu.dot_dimension_numbers<[1], [0], [0], [1], [0, 0, 1, 1], [], []>} : vector<128x32xbf16>, vector<32x64xbf16>, vector<128x64xf32> -> vector<128x64xf32>
    %31 = arith.addf %22, %30 : vector<128x64xf32>
    %32 = vector.extract_strided_slice %12 {offsets = [9, 0], sizes = [128, 32], strides = [1, 1]} : vector<160x32xf32> to vector<128x32xf32>
    %c0_21 = arith.constant 0 : index
    %c2 = arith.constant 2 : index
    %33 = vector.load %arg1[%c0_21, %c2] : memref<128x9xf32, #tpu.memory_space<vmem>>, vector<128x1xf32>
    %34 = vector.broadcast %33 : vector<128x1xf32> to vector<128x32xf32>
    %35 = arith.mulf %32, %34 : vector<128x32xf32>
    %36 = arith.truncf %35 : vector<128x32xf32> to vector<128x32xbf16>
    %c2_22 = arith.constant 2 : index
    %c0_23 = arith.constant 0 : index
    %c0_24 = arith.constant 0 : index
    %37 = vector.load %arg4[%c2_22, %c0_23, %c0_24] : memref<9x32x64xbf16, #tpu.memory_space<vmem>>, vector<1x32x64xbf16>
    %38 = vector.shape_cast %37 : vector<1x32x64xbf16> to vector<32x64xbf16>
    %cst_25 = arith.constant dense<0.000000e+00> : vector<128x64xf32>
    %39 = tpu.matmul %36, %38, %cst_25 {dimension_numbers = #tpu.dot_dimension_numbers<[1], [0], [0], [1], [0, 0, 1, 1], [], []>} : vector<128x32xbf16>, vector<32x64xbf16>, vector<128x64xf32> -> vector<128x64xf32>
    %40 = arith.addf %31, %39 : vector<128x64xf32>
    %41 = vector.extract_strided_slice %12 {offsets = [15, 0], sizes = [128, 32], strides = [1, 1]} : vector<160x32xf32> to vector<128x32xf32>
    %c0_26 = arith.constant 0 : index
    %c3 = arith.constant 3 : index
    %42 = vector.load %arg1[%c0_26, %c3] : memref<128x9xf32, #tpu.memory_space<vmem>>, vector<128x1xf32>
    %43 = vector.broadcast %42 : vector<128x1xf32> to vector<128x32xf32>
    %44 = arith.mulf %41, %43 : vector<128x32xf32>
    %45 = arith.truncf %44 : vector<128x32xf32> to vector<128x32xbf16>
    %c3_27 = arith.constant 3 : index
    %c0_28 = arith.constant 0 : index
    %c0_29 = arith.constant 0 : index
    %46 = vector.load %arg4[%c3_27, %c0_28, %c0_29] : memref<9x32x64xbf16, #tpu.memory_space<vmem>>, vector<1x32x64xbf16>
    %47 = vector.shape_cast %46 : vector<1x32x64xbf16> to vector<32x64xbf16>
    %cst_30 = arith.constant dense<0.000000e+00> : vector<128x64xf32>
    %48 = tpu.matmul %45, %47, %cst_30 {dimension_numbers = #tpu.dot_dimension_numbers<[1], [0], [0], [1], [0, 0, 1, 1], [], []>} : vector<128x32xbf16>, vector<32x64xbf16>, vector<128x64xf32> -> vector<128x64xf32>
    %49 = arith.addf %40, %48 : vector<128x64xf32>
    %50 = arith.truncf %9 : vector<128x32xf32> to vector<128x32xbf16>
    %c4 = arith.constant 4 : index
    %c0_31 = arith.constant 0 : index
    %c0_32 = arith.constant 0 : index
    %51 = vector.load %arg4[%c4, %c0_31, %c0_32] : memref<9x32x64xbf16, #tpu.memory_space<vmem>>, vector<1x32x64xbf16>
    %52 = vector.shape_cast %51 : vector<1x32x64xbf16> to vector<32x64xbf16>
    %cst_33 = arith.constant dense<0.000000e+00> : vector<128x64xf32>
    %53 = tpu.matmul %50, %52, %cst_33 {dimension_numbers = #tpu.dot_dimension_numbers<[1], [0], [0], [1], [0, 0, 1, 1], [], []>} : vector<128x32xbf16>, vector<32x64xbf16>, vector<128x64xf32> -> vector<128x64xf32>
    %54 = arith.addf %49, %53 : vector<128x64xf32>
    %55 = vector.extract_strided_slice %12 {offsets = [17, 0], sizes = [128, 32], strides = [1, 1]} : vector<160x32xf32> to vector<128x32xf32>
    %c0_34 = arith.constant 0 : index
    %c5 = arith.constant 5 : index
    %56 = vector.load %arg1[%c0_34, %c5] : memref<128x9xf32, #tpu.memory_space<vmem>>, vector<128x1xf32>
    %57 = vector.broadcast %56 : vector<128x1xf32> to vector<128x32xf32>
    %58 = arith.mulf %55, %57 : vector<128x32xf32>
    %59 = arith.truncf %58 : vector<128x32xf32> to vector<128x32xbf16>
    %c5_35 = arith.constant 5 : index
    %c0_36 = arith.constant 0 : index
    %c0_37 = arith.constant 0 : index
    %60 = vector.load %arg4[%c5_35, %c0_36, %c0_37] : memref<9x32x64xbf16, #tpu.memory_space<vmem>>, vector<1x32x64xbf16>
    %61 = vector.shape_cast %60 : vector<1x32x64xbf16> to vector<32x64xbf16>
    %cst_38 = arith.constant dense<0.000000e+00> : vector<128x64xf32>
    %62 = tpu.matmul %59, %61, %cst_38 {dimension_numbers = #tpu.dot_dimension_numbers<[1], [0], [0], [1], [0, 0, 1, 1], [], []>} : vector<128x32xbf16>, vector<32x64xbf16>, vector<128x64xf32> -> vector<128x64xf32>
    %63 = arith.addf %54, %62 : vector<128x64xf32>
    %64 = vector.extract_strided_slice %12 {offsets = [23, 0], sizes = [128, 32], strides = [1, 1]} : vector<160x32xf32> to vector<128x32xf32>
    %c0_39 = arith.constant 0 : index
    %c6 = arith.constant 6 : index
    %65 = vector.load %arg1[%c0_39, %c6] : memref<128x9xf32, #tpu.memory_space<vmem>>, vector<128x1xf32>
    %66 = vector.broadcast %65 : vector<128x1xf32> to vector<128x32xf32>
    %67 = arith.mulf %64, %66 : vector<128x32xf32>
    %68 = arith.truncf %67 : vector<128x32xf32> to vector<128x32xbf16>
    %c6_40 = arith.constant 6 : index
    %c0_41 = arith.constant 0 : index
    %c0_42 = arith.constant 0 : index
    %69 = vector.load %arg4[%c6_40, %c0_41, %c0_42] : memref<9x32x64xbf16, #tpu.memory_space<vmem>>, vector<1x32x64xbf16>
    %70 = vector.shape_cast %69 : vector<1x32x64xbf16> to vector<32x64xbf16>
    %cst_43 = arith.constant dense<0.000000e+00> : vector<128x64xf32>
    %71 = tpu.matmul %68, %70, %cst_43 {dimension_numbers = #tpu.dot_dimension_numbers<[1], [0], [0], [1], [0, 0, 1, 1], [], []>} : vector<128x32xbf16>, vector<32x64xbf16>, vector<128x64xf32> -> vector<128x64xf32>
    %72 = arith.addf %63, %71 : vector<128x64xf32>
    %73 = vector.extract_strided_slice %12 {offsets = [24, 0], sizes = [128, 32], strides = [1, 1]} : vector<160x32xf32> to vector<128x32xf32>
    %c0_44 = arith.constant 0 : index
    %c7 = arith.constant 7 : index
    %74 = vector.load %arg1[%c0_44, %c7] : memref<128x9xf32, #tpu.memory_space<vmem>>, vector<128x1xf32>
    %75 = vector.broadcast %74 : vector<128x1xf32> to vector<128x32xf32>
    %76 = arith.mulf %73, %75 : vector<128x32xf32>
    %77 = arith.truncf %76 : vector<128x32xf32> to vector<128x32xbf16>
    %c7_45 = arith.constant 7 : index
    %c0_46 = arith.constant 0 : index
    %c0_47 = arith.constant 0 : index
    %78 = vector.load %arg4[%c7_45, %c0_46, %c0_47] : memref<9x32x64xbf16, #tpu.memory_space<vmem>>, vector<1x32x64xbf16>
    %79 = vector.shape_cast %78 : vector<1x32x64xbf16> to vector<32x64xbf16>
    %cst_48 = arith.constant dense<0.000000e+00> : vector<128x64xf32>
    %80 = tpu.matmul %77, %79, %cst_48 {dimension_numbers = #tpu.dot_dimension_numbers<[1], [0], [0], [1], [0, 0, 1, 1], [], []>} : vector<128x32xbf16>, vector<32x64xbf16>, vector<128x64xf32> -> vector<128x64xf32>
    %81 = arith.addf %72, %80 : vector<128x64xf32>
    %82 = vector.extract_strided_slice %12 {offsets = [25, 0], sizes = [128, 32], strides = [1, 1]} : vector<160x32xf32> to vector<128x32xf32>
    %c0_49 = arith.constant 0 : index
    %c8 = arith.constant 8 : index
    %83 = vector.load %arg1[%c0_49, %c8] : memref<128x9xf32, #tpu.memory_space<vmem>>, vector<128x1xf32>
    %84 = vector.broadcast %83 : vector<128x1xf32> to vector<128x32xf32>
    %85 = arith.mulf %82, %84 : vector<128x32xf32>
    %86 = arith.truncf %85 : vector<128x32xf32> to vector<128x32xbf16>
    %c8_50 = arith.constant 8 : index
    %c0_51 = arith.constant 0 : index
    %c0_52 = arith.constant 0 : index
    %87 = vector.load %arg4[%c8_50, %c0_51, %c0_52] : memref<9x32x64xbf16, #tpu.memory_space<vmem>>, vector<1x32x64xbf16>
    %88 = vector.shape_cast %87 : vector<1x32x64xbf16> to vector<32x64xbf16>
    %cst_53 = arith.constant dense<0.000000e+00> : vector<128x64xf32>
    %89 = tpu.matmul %86, %88, %cst_53 {dimension_numbers = #tpu.dot_dimension_numbers<[1], [0], [0], [1], [0, 0, 1, 1], [], []>} : vector<128x32xbf16>, vector<32x64xbf16>, vector<128x64xf32> -> vector<128x64xf32>
    %90 = arith.addf %81, %89 : vector<128x64xf32>
    %91 = vector.broadcast %10 : vector<1x64xf32> to vector<128x64xf32>
    %92 = arith.addf %90, %91 : vector<128x64xf32>
    %cst_54 = arith.constant 0.000000e+00 : f32
    %93 = vector.broadcast %cst_54 : f32 to vector<128x64xf32>
    %94 = arith.maximumf %92, %93 : vector<128x64xf32>
    %95 = vector.extract_strided_slice %0 {offsets = [2, 0], sizes = [1, 128], strides = [1, 1]} : vector<8x128xf32> to vector<1x128xf32>
    %cst_55 = arith.constant 0.000000e+00 : f32
    %96 = vector.broadcast %cst_55 : f32 to vector<16x64xf32>
    %97 = tpu.concatenate %96, %94, %96 in 0 : vector<16x64xf32>, vector<128x64xf32>, vector<16x64xf32> -> vector<160x64xf32>
    %cst_56 = arith.constant 0.000000e+00 : f32
    %98 = vector.broadcast %cst_56 : f32 to vector<128x128xf32>
    %99 = vector.extract_strided_slice %97 {offsets = [7, 0], sizes = [128, 64], strides = [1, 1]} : vector<160x64xf32> to vector<128x64xf32>
    %c0_57 = arith.constant 0 : index
    %c0_58 = arith.constant 0 : index
    %100 = vector.load %arg1[%c0_57, %c0_58] : memref<128x9xf32, #tpu.memory_space<vmem>>, vector<128x1xf32>
    %101 = vector.broadcast %100 : vector<128x1xf32> to vector<128x64xf32>
    %102 = arith.mulf %99, %101 : vector<128x64xf32>
    %103 = arith.truncf %102 : vector<128x64xf32> to vector<128x64xbf16>
    %c0_59 = arith.constant 0 : index
    %c0_60 = arith.constant 0 : index
    %c0_61 = arith.constant 0 : index
    %104 = vector.load %arg5[%c0_59, %c0_60, %c0_61] : memref<9x64x128xbf16, #tpu.memory_space<vmem>>, vector<1x64x128xbf16>
    %105 = vector.shape_cast %104 : vector<1x64x128xbf16> to vector<64x128xbf16>
    %cst_62 = arith.constant dense<0.000000e+00> : vector<128x128xf32>
    %106 = tpu.matmul %103, %105, %cst_62 {dimension_numbers = #tpu.dot_dimension_numbers<[1], [0], [0], [1], [0, 0, 1, 1], [], []>} : vector<128x64xbf16>, vector<64x128xbf16>, vector<128x128xf32> -> vector<128x128xf32>
    %107 = arith.addf %98, %106 : vector<128x128xf32>
    %108 = vector.extract_strided_slice %97 {offsets = [8, 0], sizes = [128, 64], strides = [1, 1]} : vector<160x64xf32> to vector<128x64xf32>
    %c0_63 = arith.constant 0 : index
    %c1_64 = arith.constant 1 : index
    %109 = vector.load %arg1[%c0_63, %c1_64] : memref<128x9xf32, #tpu.memory_space<vmem>>, vector<128x1xf32>
    %110 = vector.broadcast %109 : vector<128x1xf32> to vector<128x64xf32>
    %111 = arith.mulf %108, %110 : vector<128x64xf32>
    %112 = arith.truncf %111 : vector<128x64xf32> to vector<128x64xbf16>
    %c1_65 = arith.constant 1 : index
    %c0_66 = arith.constant 0 : index
    %c0_67 = arith.constant 0 : index
    %113 = vector.load %arg5[%c1_65, %c0_66, %c0_67] : memref<9x64x128xbf16, #tpu.memory_space<vmem>>, vector<1x64x128xbf16>
    %114 = vector.shape_cast %113 : vector<1x64x128xbf16> to vector<64x128xbf16>
    %cst_68 = arith.constant dense<0.000000e+00> : vector<128x128xf32>
    %115 = tpu.matmul %112, %114, %cst_68 {dimension_numbers = #tpu.dot_dimension_numbers<[1], [0], [0], [1], [0, 0, 1, 1], [], []>} : vector<128x64xbf16>, vector<64x128xbf16>, vector<128x128xf32> -> vector<128x128xf32>
    %116 = arith.addf %107, %115 : vector<128x128xf32>
    %117 = vector.extract_strided_slice %97 {offsets = [9, 0], sizes = [128, 64], strides = [1, 1]} : vector<160x64xf32> to vector<128x64xf32>
    %c0_69 = arith.constant 0 : index
    %c2_70 = arith.constant 2 : index
    %118 = vector.load %arg1[%c0_69, %c2_70] : memref<128x9xf32, #tpu.memory_space<vmem>>, vector<128x1xf32>
    %119 = vector.broadcast %118 : vector<128x1xf32> to vector<128x64xf32>
    %120 = arith.mulf %117, %119 : vector<128x64xf32>
    %121 = arith.truncf %120 : vector<128x64xf32> to vector<128x64xbf16>
    %c2_71 = arith.constant 2 : index
    %c0_72 = arith.constant 0 : index
    %c0_73 = arith.constant 0 : index
    %122 = vector.load %arg5[%c2_71, %c0_72, %c0_73] : memref<9x64x128xbf16, #tpu.memory_space<vmem>>, vector<1x64x128xbf16>
    %123 = vector.shape_cast %122 : vector<1x64x128xbf16> to vector<64x128xbf16>
    %cst_74 = arith.constant dense<0.000000e+00> : vector<128x128xf32>
    %124 = tpu.matmul %121, %123, %cst_74 {dimension_numbers = #tpu.dot_dimension_numbers<[1], [0], [0], [1], [0, 0, 1, 1], [], []>} : vector<128x64xbf16>, vector<64x128xbf16>, vector<128x128xf32> -> vector<128x128xf32>
    %125 = arith.addf %116, %124 : vector<128x128xf32>
    %126 = vector.extract_strided_slice %97 {offsets = [15, 0], sizes = [128, 64], strides = [1, 1]} : vector<160x64xf32> to vector<128x64xf32>
    %c0_75 = arith.constant 0 : index
    %c3_76 = arith.constant 3 : index
    %127 = vector.load %arg1[%c0_75, %c3_76] : memref<128x9xf32, #tpu.memory_space<vmem>>, vector<128x1xf32>
    %128 = vector.broadcast %127 : vector<128x1xf32> to vector<128x64xf32>
    %129 = arith.mulf %126, %128 : vector<128x64xf32>
    %130 = arith.truncf %129 : vector<128x64xf32> to vector<128x64xbf16>
    %c3_77 = arith.constant 3 : index
    %c0_78 = arith.constant 0 : index
    %c0_79 = arith.constant 0 : index
    %131 = vector.load %arg5[%c3_77, %c0_78, %c0_79] : memref<9x64x128xbf16, #tpu.memory_space<vmem>>, vector<1x64x128xbf16>
    %132 = vector.shape_cast %131 : vector<1x64x128xbf16> to vector<64x128xbf16>
    %cst_80 = arith.constant dense<0.000000e+00> : vector<128x128xf32>
    %133 = tpu.matmul %130, %132, %cst_80 {dimension_numbers = #tpu.dot_dimension_numbers<[1], [0], [0], [1], [0, 0, 1, 1], [], []>} : vector<128x64xbf16>, vector<64x128xbf16>, vector<128x128xf32> -> vector<128x128xf32>
    %134 = arith.addf %125, %133 : vector<128x128xf32>
    %135 = arith.truncf %94 : vector<128x64xf32> to vector<128x64xbf16>
    %c4_81 = arith.constant 4 : index
    %c0_82 = arith.constant 0 : index
    %c0_83 = arith.constant 0 : index
    %136 = vector.load %arg5[%c4_81, %c0_82, %c0_83] : memref<9x64x128xbf16, #tpu.memory_space<vmem>>, vector<1x64x128xbf16>
    %137 = vector.shape_cast %136 : vector<1x64x128xbf16> to vector<64x128xbf16>
    %cst_84 = arith.constant dense<0.000000e+00> : vector<128x128xf32>
    %138 = tpu.matmul %135, %137, %cst_84 {dimension_numbers = #tpu.dot_dimension_numbers<[1], [0], [0], [1], [0, 0, 1, 1], [], []>} : vector<128x64xbf16>, vector<64x128xbf16>, vector<128x128xf32> -> vector<128x128xf32>
    %139 = arith.addf %134, %138 : vector<128x128xf32>
    %140 = vector.extract_strided_slice %97 {offsets = [17, 0], sizes = [128, 64], strides = [1, 1]} : vector<160x64xf32> to vector<128x64xf32>
    %c0_85 = arith.constant 0 : index
    %c5_86 = arith.constant 5 : index
    %141 = vector.load %arg1[%c0_85, %c5_86] : memref<128x9xf32, #tpu.memory_space<vmem>>, vector<128x1xf32>
    %142 = vector.broadcast %141 : vector<128x1xf32> to vector<128x64xf32>
    %143 = arith.mulf %140, %142 : vector<128x64xf32>
    %144 = arith.truncf %143 : vector<128x64xf32> to vector<128x64xbf16>
    %c5_87 = arith.constant 5 : index
    %c0_88 = arith.constant 0 : index
    %c0_89 = arith.constant 0 : index
    %145 = vector.load %arg5[%c5_87, %c0_88, %c0_89] : memref<9x64x128xbf16, #tpu.memory_space<vmem>>, vector<1x64x128xbf16>
    %146 = vector.shape_cast %145 : vector<1x64x128xbf16> to vector<64x128xbf16>
    %cst_90 = arith.constant dense<0.000000e+00> : vector<128x128xf32>
    %147 = tpu.matmul %144, %146, %cst_90 {dimension_numbers = #tpu.dot_dimension_numbers<[1], [0], [0], [1], [0, 0, 1, 1], [], []>} : vector<128x64xbf16>, vector<64x128xbf16>, vector<128x128xf32> -> vector<128x128xf32>
    %148 = arith.addf %139, %147 : vector<128x128xf32>
    %149 = vector.extract_strided_slice %97 {offsets = [23, 0], sizes = [128, 64], strides = [1, 1]} : vector<160x64xf32> to vector<128x64xf32>
    %c0_91 = arith.constant 0 : index
    %c6_92 = arith.constant 6 : index
    %150 = vector.load %arg1[%c0_91, %c6_92] : memref<128x9xf32, #tpu.memory_space<vmem>>, vector<128x1xf32>
    %151 = vector.broadcast %150 : vector<128x1xf32> to vector<128x64xf32>
    %152 = arith.mulf %149, %151 : vector<128x64xf32>
    %153 = arith.truncf %152 : vector<128x64xf32> to vector<128x64xbf16>
    %c6_93 = arith.constant 6 : index
    %c0_94 = arith.constant 0 : index
    %c0_95 = arith.constant 0 : index
    %154 = vector.load %arg5[%c6_93, %c0_94, %c0_95] : memref<9x64x128xbf16, #tpu.memory_space<vmem>>, vector<1x64x128xbf16>
    %155 = vector.shape_cast %154 : vector<1x64x128xbf16> to vector<64x128xbf16>
    %cst_96 = arith.constant dense<0.000000e+00> : vector<128x128xf32>
    %156 = tpu.matmul %153, %155, %cst_96 {dimension_numbers = #tpu.dot_dimension_numbers<[1], [0], [0], [1], [0, 0, 1, 1], [], []>} : vector<128x64xbf16>, vector<64x128xbf16>, vector<128x128xf32> -> vector<128x128xf32>
    %157 = arith.addf %148, %156 : vector<128x128xf32>
    %158 = vector.extract_strided_slice %97 {offsets = [24, 0], sizes = [128, 64], strides = [1, 1]} : vector<160x64xf32> to vector<128x64xf32>
    %c0_97 = arith.constant 0 : index
    %c7_98 = arith.constant 7 : index
    %159 = vector.load %arg1[%c0_97, %c7_98] : memref<128x9xf32, #tpu.memory_space<vmem>>, vector<128x1xf32>
    %160 = vector.broadcast %159 : vector<128x1xf32> to vector<128x64xf32>
    %161 = arith.mulf %158, %160 : vector<128x64xf32>
    %162 = arith.truncf %161 : vector<128x64xf32> to vector<128x64xbf16>
    %c7_99 = arith.constant 7 : index
    %c0_100 = arith.constant 0 : index
    %c0_101 = arith.constant 0 : index
    %163 = vector.load %arg5[%c7_99, %c0_100, %c0_101] : memref<9x64x128xbf16, #tpu.memory_space<vmem>>, vector<1x64x128xbf16>
    %164 = vector.shape_cast %163 : vector<1x64x128xbf16> to vector<64x128xbf16>
    %cst_102 = arith.constant dense<0.000000e+00> : vector<128x128xf32>
    %165 = tpu.matmul %162, %164, %cst_102 {dimension_numbers = #tpu.dot_dimension_numbers<[1], [0], [0], [1], [0, 0, 1, 1], [], []>} : vector<128x64xbf16>, vector<64x128xbf16>, vector<128x128xf32> -> vector<128x128xf32>
    %166 = arith.addf %157, %165 : vector<128x128xf32>
    %167 = vector.extract_strided_slice %97 {offsets = [25, 0], sizes = [128, 64], strides = [1, 1]} : vector<160x64xf32> to vector<128x64xf32>
    %c0_103 = arith.constant 0 : index
    %c8_104 = arith.constant 8 : index
    %168 = vector.load %arg1[%c0_103, %c8_104] : memref<128x9xf32, #tpu.memory_space<vmem>>, vector<128x1xf32>
    %169 = vector.broadcast %168 : vector<128x1xf32> to vector<128x64xf32>
    %170 = arith.mulf %167, %169 : vector<128x64xf32>
    %171 = arith.truncf %170 : vector<128x64xf32> to vector<128x64xbf16>
    %c8_105 = arith.constant 8 : index
    %c0_106 = arith.constant 0 : index
    %c0_107 = arith.constant 0 : index
    %172 = vector.load %arg5[%c8_105, %c0_106, %c0_107] : memref<9x64x128xbf16, #tpu.memory_space<vmem>>, vector<1x64x128xbf16>
    %173 = vector.shape_cast %172 : vector<1x64x128xbf16> to vector<64x128xbf16>
    %cst_108 = arith.constant dense<0.000000e+00> : vector<128x128xf32>
    %174 = tpu.matmul %171, %173, %cst_108 {dimension_numbers = #tpu.dot_dimension_numbers<[1], [0], [0], [1], [0, 0, 1, 1], [], []>} : vector<128x64xbf16>, vector<64x128xbf16>, vector<128x128xf32> -> vector<128x128xf32>
    %175 = arith.addf %166, %174 : vector<128x128xf32>
    %176 = vector.broadcast %95 : vector<1x128xf32> to vector<128x128xf32>
    %177 = arith.addf %175, %176 : vector<128x128xf32>
    %cst_109 = arith.constant 0.000000e+00 : f32
    %178 = vector.broadcast %cst_109 : f32 to vector<128x128xf32>
    %179 = arith.maximumf %177, %178 : vector<128x128xf32>
    %180 = arith.truncf %179 : vector<128x128xf32> to vector<128x128xbf16>
    %c0_110 = arith.constant 0 : index
    %c0_111 = arith.constant 0 : index
    %181 = vector.load %arg6[%c0_110, %c0_111] : memref<128x4xbf16, #tpu.memory_space<vmem>>, vector<128x4xbf16>
    %cst_112 = arith.constant dense<0.000000e+00> : vector<128x4xf32>
    %182 = tpu.matmul %180, %181, %cst_112 {dimension_numbers = #tpu.dot_dimension_numbers<[1], [0], [0], [1], [0, 0, 1, 1], [], []>} : vector<128x128xbf16>, vector<128x4xbf16>, vector<128x4xf32> -> vector<128x4xf32>
    %183 = vector.extract_strided_slice %0 {offsets = [3, 0], sizes = [1, 4], strides = [1, 1]} : vector<8x128xf32> to vector<1x4xf32>
    %184 = vector.broadcast %183 : vector<1x4xf32> to vector<128x4xf32>
    %185 = arith.addf %182, %184 : vector<128x4xf32>
    %cst_113 = arith.constant 0.000000e+00 : f32
    %186 = vector.broadcast %cst_113 : f32 to vector<128x4xf32>
    %187 = arith.maximumf %185, %186 : vector<128x4xf32>
    %188 = vector.extract_strided_slice %187 {offsets = [0, 0], sizes = [128, 1], strides = [1, 1]} : vector<128x4xf32> to vector<128x1xf32>
    %c0_114 = arith.constant 0 : index
    %c0_115 = arith.constant 0 : index
    %c0_116 = arith.constant 0 : index
    %189 = vector.load %arg7[%c0_114, %c0_115, %c0_116] : memref<4x64x64xf32, #tpu.memory_space<vmem>>, vector<1x64x64xf32>
    %190 = vector.shape_cast %189 : vector<1x64x64xf32> to vector<64x64xf32>
    %191 = tpu.concatenate %190, %190 in 0 : vector<64x64xf32>, vector<64x64xf32> -> vector<128x64xf32>
    %192 = vector.broadcast %188 : vector<128x1xf32> to vector<128x64xf32>
    %193 = arith.mulf %192, %191 : vector<128x64xf32>
    %194 = vector.extract_strided_slice %187 {offsets = [0, 1], sizes = [128, 1], strides = [1, 1]} : vector<128x4xf32> to vector<128x1xf32>
    %c1_117 = arith.constant 1 : index
    %c0_118 = arith.constant 0 : index
    %c0_119 = arith.constant 0 : index
    %195 = vector.load %arg7[%c1_117, %c0_118, %c0_119] : memref<4x64x64xf32, #tpu.memory_space<vmem>>, vector<1x64x64xf32>
    %196 = vector.shape_cast %195 : vector<1x64x64xf32> to vector<64x64xf32>
    %197 = tpu.concatenate %196, %196 in 0 : vector<64x64xf32>, vector<64x64xf32> -> vector<128x64xf32>
    %198 = vector.broadcast %194 : vector<128x1xf32> to vector<128x64xf32>
    %199 = arith.mulf %198, %197 : vector<128x64xf32>
    %200 = arith.addf %193, %199 : vector<128x64xf32>
    %201 = vector.extract_strided_slice %187 {offsets = [0, 2], sizes = [128, 1], strides = [1, 1]} : vector<128x4xf32> to vector<128x1xf32>
    %c2_120 = arith.constant 2 : index
    %c0_121 = arith.constant 0 : index
    %c0_122 = arith.constant 0 : index
    %202 = vector.load %arg7[%c2_120, %c0_121, %c0_122] : memref<4x64x64xf32, #tpu.memory_space<vmem>>, vector<1x64x64xf32>
    %203 = vector.shape_cast %202 : vector<1x64x64xf32> to vector<64x64xf32>
    %204 = tpu.concatenate %203, %203 in 0 : vector<64x64xf32>, vector<64x64xf32> -> vector<128x64xf32>
    %205 = vector.broadcast %201 : vector<128x1xf32> to vector<128x64xf32>
    %206 = arith.mulf %205, %204 : vector<128x64xf32>
    %207 = arith.addf %200, %206 : vector<128x64xf32>
    %208 = vector.extract_strided_slice %187 {offsets = [0, 3], sizes = [128, 1], strides = [1, 1]} : vector<128x4xf32> to vector<128x1xf32>
    %c3_123 = arith.constant 3 : index
    %c0_124 = arith.constant 0 : index
    %c0_125 = arith.constant 0 : index
    %209 = vector.load %arg7[%c3_123, %c0_124, %c0_125] : memref<4x64x64xf32, #tpu.memory_space<vmem>>, vector<1x64x64xf32>
    %210 = vector.shape_cast %209 : vector<1x64x64xf32> to vector<64x64xf32>
    %211 = tpu.concatenate %210, %210 in 0 : vector<64x64xf32>, vector<64x64xf32> -> vector<128x64xf32>
    %212 = vector.broadcast %208 : vector<128x1xf32> to vector<128x64xf32>
    %213 = arith.mulf %212, %211 : vector<128x64xf32>
    %214 = arith.addf %207, %213 : vector<128x64xf32>
    %215 = arith.truncf %214 : vector<128x64xf32> to vector<128x64xbf16>
    %cst_126 = arith.constant dense<0.000000e+00> : vector<2x64xf32>
    %216 = tpu.matmul %1, %215, %cst_126 {dimension_numbers = #tpu.dot_dimension_numbers<[1], [0], [0], [1], [0, 0, 1, 1], [], []>} : vector<2x128xbf16>, vector<128x64xbf16>, vector<2x64xf32> -> vector<2x64xf32>
    %217 = vector.extract_strided_slice %0 {offsets = [4, 0], sizes = [1, 64], strides = [1, 1]} : vector<8x128xf32> to vector<1x64xf32>
    %218 = vector.broadcast %217 : vector<1x64xf32> to vector<2x64xf32>
    %219 = arith.addf %216, %218 : vector<2x64xf32>
    %cst_127 = arith.constant dense<0xFF800000> : vector<2xf32>
    %220 = vector.multi_reduction <maximumf>, %219, %cst_127 [1] : vector<2x64xf32> to vector<2xf32>
    %221 = vector.shape_cast %220 : vector<2xf32> to vector<2x1xf32>
    %222 = vector.broadcast %221 : vector<2x1xf32> to vector<2x64xf32>
    %223 = arith.subf %219, %222 : vector<2x64xf32>
    %224 = math.exp %223 : vector<2x64xf32>
    %cst_128 = arith.constant dense<0.000000e+00> : vector<2xf32>
    %225 = vector.multi_reduction <add>, %224, %cst_128 [1] : vector<2x64xf32> to vector<2xf32>
    %226 = vector.shape_cast %225 : vector<2xf32> to vector<2x1xf32>
    %227 = math.log %226 : vector<2x1xf32>
    %228 = vector.broadcast %227 : vector<2x1xf32> to vector<2x64xf32>
    %229 = arith.subf %223, %228 : vector<2x64xf32>
    %c0_129 = arith.constant 0 : index
    %c0_130 = arith.constant 0 : index
    %230 = vector.load %arg12[%c0_129, %c0_130] : memref<2x64xf32, #tpu.memory_space<vmem>>, vector<2x64xf32>
    tpu.vector_store %arg12[%c0_129, %c0_130], %229 {strides = array<i32>} : memref<2x64xf32, #tpu.memory_space<vmem>>, vector<2x64xf32>,
    %c0_131 = arith.constant 0 : index
    %c0_132 = arith.constant 0 : index
    %231 = vector.load %arg8[%c0_131, %c0_132] : memref<128x2xbf16, #tpu.memory_space<vmem>>, vector<128x2xbf16>
    %cst_133 = arith.constant dense<0.000000e+00> : vector<128x2xf32>
    %232 = tpu.matmul %180, %231, %cst_133 {dimension_numbers = #tpu.dot_dimension_numbers<[1], [0], [0], [1], [0, 0, 1, 1], [], []>} : vector<128x128xbf16>, vector<128x2xbf16>, vector<128x2xf32> -> vector<128x2xf32>
    %233 = vector.extract_strided_slice %0 {offsets = [5, 0], sizes = [1, 2], strides = [1, 1]} : vector<8x128xf32> to vector<1x2xf32>
    %234 = vector.broadcast %233 : vector<1x2xf32> to vector<128x2xf32>
    %235 = arith.addf %232, %234 : vector<128x2xf32>
    %cst_134 = arith.constant 0.000000e+00 : f32
    %236 = vector.broadcast %cst_134 : f32 to vector<128x2xf32>
    %237 = arith.maximumf %235, %236 : vector<128x2xf32>
    %238 = vector.extract_strided_slice %237 {offsets = [0, 0], sizes = [128, 1], strides = [1, 1]} : vector<128x2xf32> to vector<128x1xf32>
    %c0_135 = arith.constant 0 : index
    %c0_136 = arith.constant 0 : index
    %c0_137 = arith.constant 0 : index
    %239 = vector.load %arg9[%c0_135, %c0_136, %c0_137] : memref<2x64x64xf32, #tpu.memory_space<vmem>>, vector<1x64x64xf32>
    %240 = vector.shape_cast %239 : vector<1x64x64xf32> to vector<64x64xf32>
    %241 = tpu.concatenate %240, %240 in 0 : vector<64x64xf32>, vector<64x64xf32> -> vector<128x64xf32>
    %242 = vector.broadcast %238 : vector<128x1xf32> to vector<128x64xf32>
    %243 = arith.mulf %242, %241 : vector<128x64xf32>
    %244 = vector.extract_strided_slice %237 {offsets = [0, 1], sizes = [128, 1], strides = [1, 1]} : vector<128x2xf32> to vector<128x1xf32>
    %c1_138 = arith.constant 1 : index
    %c0_139 = arith.constant 0 : index
    %c0_140 = arith.constant 0 : index
    %245 = vector.load %arg9[%c1_138, %c0_139, %c0_140] : memref<2x64x64xf32, #tpu.memory_space<vmem>>, vector<1x64x64xf32>
    %246 = vector.shape_cast %245 : vector<1x64x64xf32> to vector<64x64xf32>
    %247 = tpu.concatenate %246, %246 in 0 : vector<64x64xf32>, vector<64x64xf32> -> vector<128x64xf32>
    %248 = vector.broadcast %244 : vector<128x1xf32> to vector<128x64xf32>
    %249 = arith.mulf %248, %247 : vector<128x64xf32>
    %250 = arith.addf %243, %249 : vector<128x64xf32>
    %251 = arith.truncf %250 : vector<128x64xf32> to vector<128x64xbf16>
    %cst_141 = arith.constant dense<0.000000e+00> : vector<2x64xf32>
    %252 = tpu.matmul %1, %251, %cst_141 {dimension_numbers = #tpu.dot_dimension_numbers<[1], [0], [0], [1], [0, 0, 1, 1], [], []>} : vector<2x128xbf16>, vector<128x64xbf16>, vector<2x64xf32> -> vector<2x64xf32>
    %253 = vector.extract_strided_slice %0 {offsets = [6, 0], sizes = [1, 64], strides = [1, 1]} : vector<8x128xf32> to vector<1x64xf32>
    %254 = vector.broadcast %253 : vector<1x64xf32> to vector<2x64xf32>
    %255 = arith.addf %252, %254 : vector<2x64xf32>
    %cst_142 = arith.constant 0.000000e+00 : f32
    %256 = vector.broadcast %cst_142 : f32 to vector<2x64xf32>
    %257 = arith.maximumf %255, %256 : vector<2x64xf32>
    %c0_143 = arith.constant 0 : index
    %c0_144 = arith.constant 0 : index
    %258 = vector.load %arg10[%c0_143, %c0_144] : memref<1x64xf32, #tpu.memory_space<vmem>>, vector<1x64xf32>
    %259 = vector.broadcast %258 : vector<1x64xf32> to vector<2x64xf32>
    %260 = arith.mulf %257, %259 : vector<2x64xf32>
    %cst_145 = arith.constant dense<0.000000e+00> : vector<2xf32>
    %261 = vector.multi_reduction <add>, %260, %cst_145 [1] : vector<2x64xf32> to vector<2xf32>
    %262 = vector.shape_cast %261 : vector<2xf32> to vector<2x1xf32>
    %263 = vector.extract_strided_slice %0 {offsets = [7, 0], sizes = [1, 1], strides = [1, 1]} : vector<8x128xf32> to vector<1x1xf32>
    %264 = vector.broadcast %263 : vector<1x1xf32> to vector<2x1xf32>
    %265 = arith.addf %262, %264 : vector<2x1xf32>
    %266 = math.tanh %265 : vector<2x1xf32>
    %c0_146 = arith.constant 0 : index
    %c0_147 = arith.constant 0 : index
    %267 = vector.load %arg13[%c0_146, %c0_147] : memref<2x1xf32, #tpu.memory_space<vmem>>, vector<2x1xf32>
    tpu.vector_store %arg13[%c0_146, %c0_147], %266 {strides = array<i32>} : memref<2x1xf32, #tpu.memory_space<vmem>>, vector<2x1xf32>,
    return
  }
}

</mosaic_0001>

<bundles_post_ra>
// kernel: cnn_forward.1
= control target key start
LH: loop header
LB: loop body
LE: loop exit
PB: predicated region body
PF: predicated region fallthrough
CT: control target
= control target key end

     0   :  { %v10110_v3 = vmov 1   ;;  %vm149_vm0 = vcmask 1041408   ;;  %s10096_s0 = inlined_call_operand.vmem [shape: bf16[128,36], index: 0, kind: input, shape index: {}]   ;;  %s10097_s1 = inlined_call_operand.vmem [shape: f32[128,9], index: 1, kind: input, shape index: {}]   ;;  %s10098_s2 = inlined_call_operand.vmem [shape: bf16[2,128], index: 2, kind: input, shape index: {}]   ;;  %s10099_s3 = inlined_call_operand.vmem [shape: bf16[36,32], index: 3, kind: input, shape index: {}]   ;;  %s10100_s4 = inlined_call_operand.vmem [shape: bf16[9,32,64], index: 4, kind: input, shape index: {}]   ;;  %s10101_s5 = inlined_call_operand.vmem [shape: bf16[9,64,128], index: 5, kind: input, shape index: {}]   ;;  %s10102_s6 = inlined_call_operand.vmem [shape: bf16[128,4], index: 6, kind: input, shape index: {}]   ;;  %s10103_s7 = inlined_call_operand.vmem [shape: f32[4,64,64], index: 7, kind: input, shape index: {}]   ;;  %s10104_s8 = inlined_call_operand.vmem [shape: bf16[128,2], index: 8, kind: input, shape index: {}]   ;;  %s10105_s9 = inlined_call_operand.vmem [shape: f32[2,64,64], index: 9, kind: input, shape index: {}]   ;;  %s10106_s10 = inlined_call_operand.vmem [shape: f32[1,64], index: 10, kind: input, shape index: {}]   ;;  %s10107_s11 = inlined_call_operand.vmem [shape: f32[8,128], index: 11, kind: input, shape index: {}]   ;;  %s10108_s12 = inlined_call_operand.hbm [shape: f32[2,64], index: 12, kind: output, shape index: {0}]   ;;  %s10109_s13 = inlined_call_operand.vmem [shape: f32[2,1], index: 13, kind: output, shape index: {1}]  }
   0x1   :  { %v6279_v0 = vld [vmem:[%s10097_s1 + $0x20] sm:$0xff]  ;;  %v6284_v1 = vld [vmem:[%s10097_s1 + $0x10] sm:$0xff]  ;;  %5970 = vset.pattern.permute.xlu2 %v10110_v3  ;;  %5969 = vset.pattern.permute.xlu1 %v10110_v3  ;;  %v6303_v8 = vld [vmem:[%s10097_s1 + $0x28] sm:$0xff] }
   0x2   :  { %v6289_v2 = vld [vmem:[%s10097_s1] sm:$0xff]  ;;  %v67_v4 = vld [vmem:[%s10099_s3 + $0x10] sm:$0x3]  ;;  %5968 = vset.pattern.permute.xlu0 %v10110_v3  ;;  %394 = vperm.xlu2 %5970, %v6279_v0  }
   0x3   :  { %v118_v5 = vunpack.c.l.b16 %v67_v4  ;;  %386 = vperm.xlu1 %5969, %v6284_v1   ;;  %378 = vperm.xlu0 %5968, %v6289_v2  }
   0x5   :  { %v121_v6 = vpack.c.b16 %v118_v5, %v118_v5 }
   0x7   :  { %v151_v7 = vsel %vm149_vm0, %v121_v6, 0 }
   0x8   :  { %158 = vmatpush.bf16.msra.mxu0 %v151_v7  ;;  %5954 = vmatpush.bf16.msra.mxu1 %v151_v7 }
   0x9   :  { %19 = vsyncpa [#allocation3], 0  ;;  %v6308_v9 = vld [vmem:[%s10097_s1 + $0x18] sm:$0xff]  ;;  %v6313_v10 = vld [vmem:[%s10097_s1 + $0x8] sm:$0xff]  ;;  %vm124_vm1 = vcmask 293888   ;;  %v10122_v20 = vmov 0  }
   0xa   :  { %v5883_v11 = vld [vmem:[%s10099_s3 + $0x8] sm:$0xff]  ;;  %398 = vperm.xlu2 %5970, %v6303_v8   ;;  %v5882_v12 = vld [vmem:[%s10099_s3] sm:$0xff]  ;;  %v6335_v15 = vld [vmem:[%s10097_s1 + $0x38] sm:$0xff]  ;;  %v10124_v29 = vmov 2   ;;  %v10116_v31 = vmov 3   ;;  %v10114_v55 = vmov 8  }
   0xb   :  { %390 = vperm.xlu1 %5969, %v6308_v9   ;;  %382 = vperm.xlu0 %5968, %v6313_v10   ;;  %v5874_v13 = vld [vmem:[%s10096_s0] sm:$0xff]  ;;  %v5880_v16 = vld [vmem:[%s10096_s0 + $0x30] sm:$0xff]  ;;  %v6358_v19 = vld [vmem:[%s10097_s1 + $0x48] sm:$0xff]  ;;  %vm482_vm2 = vcmask 261120   ;;  %v10118_v4 = vmov 5   ;;  %vm770_vm3 = vcmask 1040384  }
   0xc   :  { %159 = vmatpush.bf16.msra.mxu0 %v5883_v11  ;;  %5955 = vmatpush.bf16.msra.mxu1 %v5883_v11  ;;  %v6330_v14 = vld [vmem:[%s10097_s1 + $0x40] sm:$0xff]  ;;  %v6343_v17 = vld [vmem:[%s10097_s1 + $0x30] sm:$0xff]  ;;  %v6364_v21 = vld [vmem:[%s10097_s1 + $0x58] sm:$0xff]  ;;  %vm850_vm4 = vsmask.f32 7424  ;;  %vm298_vm5 = vcmask 1046528  }
   0xd   :  { %v6353_v18 = vld [vmem:[%s10097_s1 + $0x50] sm:$0xff]  ;;  %v5875_v22 = vld [vmem:[%s10096_s0 + $0x8] sm:$0xff]  ;;  %v5881_v24 = vld [vmem:[%s10096_s0 + $0x38] sm:$0xff]  ;;  %vm556_vm6 = vsmask.f32 4352  ;;  %vm2656_vm7 = vcmask 523264  }
   0xe   :  { %v6377_v23 = vld [vmem:[%s10097_s1 + $0x68] sm:$0xff]  ;;  %v6385_v25 = vld [vmem:[%s10097_s1 + $0x60] sm:$0xff]  ;;  %v6390_v26 = vld [vmem:[%s10097_s1 + $0x70] sm:$0xff]  ;;  %vm4865_vm8 = vcmask 517120   ;;  %vm5252_vm9 = vcmask 1024   ;;  %s6205_s14 = smov [#allocation2]  }
   0xf   :  { %v5876_v27 = vld [vmem:[%s10096_s0 + $0x10] sm:$0xff]  ;;  %v6410_v28 = vld [vmem:[%s10097_s1 + $0x78] sm:$0xff]  ;;  %v5878_v32 = vld [vmem:[%s10096_s0 + $0x20] sm:$0xff]  ;;  %s5259_s15 = sshll.u32 %s6205_s14, 4  ;;  %s5261_s17 = sshll.u32 %s10108_s12, 4  ;;  %s5260_s15 = int_to_ptr.vmem [resolvable:$true] %s5259_s15  ;;  %s5262_s17 = int_to_ptr.hbm [resolvable:$true] %s5261_s17 }
  0x10   :  { %160 = vmatpush.bf16.msra.mxu0 %v5882_v12  ;;  %5956 = vmatpush.bf16.msra.mxu1 %v5882_v12  ;;  %v5877_v30 = vld [vmem:[%s10096_s0 + $0x18] sm:$0xff]  ;;  %v5879_v34 = vld [vmem:[%s10096_s0 + $0x28] sm:$0xff]  ;;  %v5886_v38 = vld [vmem:[%s10100_s4 + $0x10] sm:$0xff] }
  0x11   :  { %v5887_v37 = vld [vmem:[%s10100_s4 + $0x18] sm:$0xff]  ;;  %v45_v48 = vld [vmem:[%s10107_s11] sm:$0xff]  ;;  %v5889_v6 = vld [vmem:[%s10100_s4 + $0x28] sm:$0xff] }
  0x12   :  { %410 = vperm.xlu2 %5970, %v6330_v14   ;;  %v6507_v49 = vperm.slane %v45_v48, 0  ;;  %961 = vmatpush.bf16.msra.mxu3 %v5889_v6 }
  0x13   :  { %5314 = vmatmul.msk.bf16.vlgmr.msra.gmra.mxu0 %vm124_vm1, %v5874_v13  ;;  %406 = vperm.xlu1 %5969, %v6335_v15  }
  0x14   :  { %402 = vperm.xlu0 %5968, %v6343_v17   ;;  %5320 = vmatmul.msk.bf16.vlgmr.msra.gmra.mxu1 %vm124_vm1, %v5880_v16 }
  0x15   :  { %513 = vmatpush.bf16.msrb.mxu1 %v5887_v37 }
  0x19   :  { %514 = vmatpush.bf16.msrb.mxu1 %v5886_v38 }
  0x1a   :  { %5972 = vset.pattern.permute.xlu2 %v10122_v20 }
  0x1b   :  { %5971 = vset.pattern.permute.xlu1 %v10122_v20  ;;  %276 = vperm.xlu2 %5972, %v6353_v18  }
  0x1c   :  { %5973 = vset.pattern.permute.xlu0 %v10122_v20  ;;  %272 = vperm.xlu1 %5971, %v6358_v19  }
  0x1d   :  { %280 = vperm.xlu0 %5973, %v6364_v21  }
  0x23   :  { %5315 = vmatmul.msk.bf16.gmra.mxu0 %vm124_vm1, %v5875_v22  ;;  %288 = vperm.xlu2 %5972, %v6377_v23   ;;  %v5888_v22 = vld [vmem:[%s10100_s4 + $0x20] sm:$0xff] }
  0x24   :  { %284 = vperm.xlu1 %5971, %v6385_v25   ;;  %5321 = vmatmul.msk.bf16.gmra.mxu1 %vm124_vm1, %v5881_v24 }
  0x25   :  { %292 = vperm.xlu0 %5973, %v6390_v26   ;;  %962 = vmatpush.bf16.msra.mxu3 %v5888_v22  ;;  %v10112_v22 = vmov 6  }
  0x2b   :  { %5975 = vset.pattern.permute.xlu2 %v10110_v3 }
  0x2c   :  { %5974 = vset.pattern.permute.xlu1 %v10110_v3  ;;  %422 = vperm.xlu2 %5975, %v6364_v21  }
  0x2d   :  { %5976 = vset.pattern.permute.xlu0 %v10110_v3  ;;  %418 = vperm.xlu1 %5974, %v6353_v18  }
  0x2e   :  { %414 = vperm.xlu0 %5976, %v6358_v19  }
  0x33   :  { %5316 = vmatmul.msk.bf16.gmra.mxu0 %vm124_vm1, %v5876_v27 }
  0x34   :  { %426 = vperm.xlu2 %5975, %v6385_v25  }
  0x35   :  { %5977 = vset.pattern.permute.xlu1 %v10122_v20 }
  0x36   :  { %430 = vperm.xlu0 %5976, %v6377_v23   ;;  %296 = vperm.xlu1 %5977, %v6410_v28  }
  0x3c   :  { %5979 = vset.pattern.permute.xlu2 %v10124_v29 }
  0x3d   :  { %726 = vperm.xlu2 %5979, %v6313_v10  }
  0x3e   :  { %434 = vperm.xlu0 %5976, %v6390_v26   ;;  %5978 = vset.pattern.permute.xlu1 %v10124_v29 }
  0x3f   :  { %723 = vperm.xlu1 %5978, %v6289_v2  }
  0x43   :  { %5317 = vmatmul.msk.bf16.gmra.mxu0 %vm124_vm1, %v5877_v30 }
  0x45   :  { %732 = vperm.xlu2 %5979, %v6308_v9  }
  0x46   :  { %5982 = vset.pattern.permute.xlu0 %v10116_v31 }
  0x47   :  { %1024 = vperm.xlu0 %5982, %v6313_v10   ;;  %729 = vperm.xlu1 %5978, %v6284_v1  }
  0x4d   :  { %5981 = vset.pattern.permute.xlu2 %v10116_v31 }
  0x4e   :  { %1021 = vperm.xlu2 %5981, %v6289_v2  }
  0x4f   :  { %1033 = vperm.xlu0 %5982, %v6279_v0   ;;  %5980 = vset.pattern.permute.xlu1 %v10110_v3 }
  0x50   :  { %438 = vperm.xlu1 %5980, %v6410_v28  }
  0x53   :  { %5318 = vmatmul.msk.bf16.gmra.mxu0 %vm124_vm1, %v5878_v32 }
  0x56   :  { %1030 = vperm.xlu2 %5981, %v6308_v9  }
  0x57   :  { %5990 = vset.pattern.permute.xlu0 %v10122_v20 }
  0x58   :  { %236 = vperm.xlu0 %5990, %v6289_v2   ;;  %5983 = vset.pattern.permute.xlu1 %v10116_v31 }
  0x59   :  { %1027 = vperm.xlu1 %5983, %v6284_v1  }
  0x5c   :  { %v6443_v33 = vpop.permute.xlu2 %394 }
  0x5d   :  { %10293 = vst [vmem:[#allocation5_spill] sm:$0xff] %v6443_v33 }
  0x5e   :  { %5985 = vset.pattern.permute.xlu2 %v10124_v29 }
  0x5f   :  { %738 = vperm.xlu2 %5985, %v6303_v8  }
  0x60   :  { %5991 = vset.pattern.permute.xlu0 %v10124_v29 }
  0x61   :  { %744 = vperm.xlu0 %5991, %v6335_v15   ;;  %5984 = vset.pattern.permute.xlu1 %v10124_v29 }
  0x62   :  { %735 = vperm.xlu1 %5984, %v6279_v0  }
  0x63   :  { %5319 = vmatmul.msk.bf16.gmra.mxu0 %vm124_vm1, %v5879_v34 }
  0x64   :  { %v6455_v35 = vpop.permute.xlu2 %398 }
  0x65   :  { %10294 = vst [vmem:[#allocation6_spill] sm:$0xff] %v6455_v35 }
  0x67   :  { %741 = vperm.xlu2 %5985, %v6343_v17  }
  0x69   :  { %762 = vperm.xlu0 %5991, %v6377_v23  }
  0x6a   :  { %5986 = vset.pattern.permute.xlu1 %v10116_v31 }
  0x6b   :  { %1036 = vperm.xlu1 %5986, %v6303_v8  }
  0x6c   :  { %v6461_v36 = vpop.permute.xlu2 %410 }
  0x6d   :  { %10295 = vst [vmem:[#allocation7_spill] sm:$0xff] %v6461_v36 }
  0x6f   :  { %5987 = vset.pattern.permute.xlu2 %v10116_v31 }
  0x70   :  { %1042 = vperm.xlu2 %5987, %v6335_v15  }
  0x71   :  { %765 = vperm.xlu0 %5991, %v6390_v26  }
  0x73   :  { %1039 = vperm.xlu1 %5986, %v6343_v17  }
  0x75   :  { %v6473_v39 = vpop.permute.xlu1 %386  ;;  %v379_v40 = vpop.permute.xlu0 %378 }
  0x76   :  { %10296 = vst [vmem:[#allocation8_spill] sm:$0xff] %v6473_v39  ;;  %v6475_v41 = vpop.permute.xlu2 %276  ;;  %v6517_v56 = vmul.f32 0.0, %v379_v40 }
  0x78   :  { %5989 = vset.pattern.permute.xlu2 %v10124_v29  ;;  %10303 = vst [vmem:[#allocation15_spill] sm:$0xff] %v6517_v56 }
  0x79   :  { %6005 = vset.pattern.permute.xlu0 %v10116_v31  ;;  %750 = vperm.xlu2 %5989, %v6358_v19  }
  0x7a   :  { %1048 = vperm.xlu0 %6005, %v6358_v19  }
  0x7b   :  { %5988 = vset.pattern.permute.xlu1 %v10124_v29 }
  0x7c   :  { %747 = vperm.xlu1 %5988, %v6330_v14  }
  0x7d   :  { %v6483_v42 = vpop.permute.xlu1 %390  ;;  %v6485_v43 = vpop.permute.xlu0 %382 }
  0x7e   :  { %10297 = vst [vmem:[#allocation9_spill] sm:$0xff] %v6483_v42  ;;  %v6487_v44 = vpop.permute.xlu2 %288 }
  0x7f   :  { %10298 = vst [vmem:[#allocation10_spill] sm:$0xff] %v6485_v43 }
  0x81   :  { %5993 = vset.pattern.permute.xlu2 %v10122_v20 }
  0x82   :  { %1051 = vperm.xlu0 %6005, %v6353_v18   ;;  %244 = vperm.xlu2 %5993, %v6284_v1  }
  0x84   :  { %5992 = vset.pattern.permute.xlu1 %v10122_v20 }
  0x85   :  { %v6493_v45 = vpop.permute.xlu1 %406  ;;  %240 = vperm.xlu1 %5992, %v6313_v10  }
  0x86   :  { %10299 = vst [vmem:[#allocation11_spill] sm:$0xff] %v6493_v45  ;;  %v6496_v46 = vpop.permute.xlu0 %402  ;;  %v6498_v47 = vpop.permute.xlu2 %422 }
  0x87   :  { %10300 = vst [vmem:[#allocation12_spill] sm:$0xff] %v6496_v46 }
  0x88   :  { %10301 = vst [vmem:[#allocation13_spill] sm:$0xff] %v6498_v47 }
  0x8a   :  { %1063 = vperm.xlu0 %6005, %v6390_v26   ;;  %5994 = vset.pattern.permute.xlu2 %v10116_v31 }
  0x8b   :  { %1045 = vperm.xlu2 %5994, %v6330_v14  }
  0x8d   :  { %248 = vperm.xlu1 %5992, %v6308_v9  }
  0x8e   :  { %v6509_v50 = vpop.permute.xlu1 %272  ;;  %v6511_v51 = vpop.permute.xlu2 %426 }
  0x8f   :  { %10302 = vst [vmem:[#allocation14_spill] sm:$0xff] %v6511_v51  ;;  %v6513_v52 = vpop.permute.xlu0 %280 }
  0x90   :  { %v162_v53 = vpop.f32.mrf.mxu0 }
  0x91   :  { %v163_v54 = vadd.f32 %v162_v53, %v6507_v49 }
  0x92   :  { %6022 = vset.pattern.permute.xlu0 %v10114_v55 }
  0x93   :  { %v6519_v57 = vmax.f32 %v163_v54, 0.0  ;;  %2253 = vperm.xlu0 %6022, %v6279_v0   ;;  %5996 = vset.pattern.permute.xlu2 %v10124_v29 }
  0x94   :  { %756 = vperm.xlu2 %5996, %v6364_v21  }
  0x95   :  { %5995 = vset.pattern.permute.xlu1 %v10124_v29  ;;  %v442_v58 = vmul.f32 %v6485_v43, %v6519_v57  ;;  %v10320_v43 = vmov 6  }
  0x96   :  { %v6527_v59 = vpop.permute.xlu1 %284  ;;  %753 = vperm.xlu1 %5995, %v6353_v18  }
  0x97   :  { %v6530_v60 = vpop.permute.xlu0 %292  ;;  %v457_v61 = vpack.c.bf16 %v442_v58, %v6517_v56  ;;  %v6533_v62 = vpop.permute.xlu2 %726 }
  0x98   :  { %v164_v63 = vpop.f32.mrf.mxu0  ;;  %v772_v53 = vrot.slane %v6533_v62, 7 }
  0x99   :  { %5334 = vmatmul.msk.bf16.vlgmr.msrb.gmra.mxu1 %vm482_vm2, %v457_v61  ;;  %v165_v5 = vadd.f32 %v164_v63, %v6507_v49 }
  0x9b   :  { %6023 = vset.pattern.permute.xlu0 %v10118_v4  ;;  %v6552_v16 = vmax.f32 %v165_v5, 0.0 }
  0x9c   :  { %1452 = vperm.xlu0 %6023, %v6308_v9   ;;  %5998 = vset.pattern.permute.xlu2 %v10122_v20 }
  0x9d   :  { %256 = vperm.xlu2 %5998, %v6303_v8   ;;  %v443_v27 = vmul.f32 %v6473_v39, %v6552_v16 }
  0x9e   :  { %5997 = vset.pattern.permute.xlu1 %v10122_v20 }
  0x9f   :  { %v6545_v7 = vpop.permute.xlu1 %418  ;;  %252 = vperm.xlu1 %5997, %v6279_v0   ;;  %v6548_v11 = vpop.permute.xlu2 %732 }
  0xa0   :  { %10304 = vst [vmem:[#allocation16_spill] sm:$0xff] %v6545_v7  ;;  %v167_v12 = vpop.f32.mrf.mxu0  ;;  %v6550_v13 = vpop.permute.xlu0 %414 }
  0xa1   :  { %10305 = vst [vmem:[#allocation17_spill] sm:$0xff] %v6550_v13  ;;  %v168_v18 = vadd.f32 %v167_v12, %v6507_v49 }
  0xa3   :  { %v6558_v24 = vmax.f32 %v168_v18, 0.0 }
  0xa4   :  { %1458 = vperm.xlu0 %6023, %v6303_v8  }
  0xa5   :  { %6000 = vset.pattern.permute.xlu2 %v10124_v29  ;;  %v444_v30 = vmul.f32 %v6483_v42, %v6558_v24 }
  0xa6   :  { %759 = vperm.xlu2 %6000, %v6385_v25  }
  0xa7   :  { %5999 = vset.pattern.permute.xlu1 %v10116_v31  ;;  %v458_v32 = vpack.c.bf16 %v444_v30, %v443_v27 }
  0xa8   :  { %v169_v34 = vpop.f32.mrf.mxu0  ;;  %v6568_v37 = vpop.permute.xlu1 %296  ;;  %1054 = vperm.xlu1 %5999, %v6364_v21  }
  0xa9   :  { %v6571_v38 = vpop.permute.xlu0 %430  ;;  %5335 = vmatmul.msk.bf16.gmra.mxu1 %vm482_vm2, %v458_v32  ;;  %v6574_v40 = vpop.permute.xlu2 %1021  ;;  %v170_v48 = vadd.f32 %v169_v34, %v6507_v49 }
  0xaa   :  { %10306 = vst [vmem:[#allocation18_spill] sm:$0xff] %v6571_v38 }
  0xab   :  { %v6582_v58 = vmax.f32 %v170_v48, 0.0  ;;  %v10120_v48 = vrot.slane %v6548_v11, 7 }
  0xac   :  { %1467 = vperm.xlu0 %6023, %v6330_v14  }
  0xad   :  { %v445_v30 = vmul.f32 %v6443_v33, %v6582_v58 }
  0xae   :  { %6002 = vset.pattern.permute.xlu2 %v10122_v20 }
  0xaf   :  { %264 = vperm.xlu2 %6002, %v6335_v15  }
  0xb0   :  { %v172_v54 = vpop.f32.mrf.mxu0  ;;  %6001 = vset.pattern.permute.xlu1 %v10122_v20 }
  0xb1   :  { %v173_v61 = vadd.f32 %v172_v54, %v6507_v49  ;;  %260 = vperm.xlu1 %6001, %v6343_v17   ;;  %v724_v63 = vpop.permute.xlu1 %723  ;;  %v6586_v5 = vpop.permute.xlu0 %434 }
  0xb2   :  { %10307 = vst [vmem:[#allocation19_spill] sm:$0xff] %v6586_v5  ;;  %v771_v6 = vrot.slane %v724_v63, 7  ;;  %v6588_v12 = vpop.permute.xlu2 %1030 }
  0xb3   :  { %v6590_v18 = vmax.f32 %v173_v61, 0.0 }
  0xb4   :  { %v6593_v15 = vsel %vm770_vm3, %v771_v6, %v772_v53  ;;  %v6595_v62 = vmul.f32 0.0, %v771_v6  ;;  %6032 = vset.pattern.permute.xlu0 %v10112_v22 }
  0xb5   :  { %10308 = vst [vmem:[#allocation20_spill] sm:$0xff] %v6593_v15  ;;  %v820_v27 = vmul.f32 %v6593_v15, %v6519_v57  ;;  %1745 = vperm.xlu0 %6032, %v6284_v1   ;;  %v446_v32 = vmul.f32 %v6455_v35, %v6590_v18 }
  0xb6   :  { %10309 = vst [vmem:[#allocation21_spill] sm:$0xff] %v6595_v62 }
  0xb7   :  { %6004 = vset.pattern.permute.xlu2 %v10116_v31  ;;  %v459_v34 = vpack.c.bf16 %v446_v32, %v445_v30  ;;  %v836_v54 = vpack.c.bf16 %v820_v27, %v6595_v62 }
  0xb8   :  { %v174_v61 = vpop.f32.mrf.mxu0  ;;  %1060 = vperm.xlu2 %6004, %v6377_v23  }
  0xb9   :  { %5336 = vmatmul.msk.bf16.gmra.mxu1 %vm482_vm2, %v459_v34  ;;  %6003 = vset.pattern.permute.xlu1 %v10116_v31  ;;  %v730_v63 = vpop.permute.xlu1 %729  ;;  %v854_v22 = vshll.u32 %v836_v54, 16  ;;  %v6614_v55 = vpop.permute.xlu0 %1024  ;;  %v175_v27 = vadd.f32 %v174_v61, %v6507_v49 }
  0xba   :  { %v774_v6 = vrot.slane %v730_v63, 7  ;;  %1057 = vperm.xlu1 %6003, %v6385_v25   ;;  %v6612_v3 = vpop.permute.xlu2 %738 }
  0xbb   :  { %v6633_v4 = vmax.f32 %v175_v27, 0.0 }
  0xbc   :  { %v6617_v30 = vsel %vm770_vm3, %v772_v53, %v774_v6  ;;  %v6622_v23 = vsel %vm770_vm3, %v774_v6, %v10120_v48  ;;  %v856_v53 = vrot.slane %v854_v22, 1  ;;  %v852_v48 = vshrl.u32 %v836_v54, 16 }
  0xbd   :  { %10310 = vst [vmem:[#allocation22_spill] sm:$0xff] %v6617_v30  ;;  %v821_v32 = vmul.f32 %v6617_v30, %v6552_v16  ;;  %v822_v34 = vmul.f32 %v6622_v23, %v6558_v24  ;;  %1766 = vperm.xlu0 %6032, %v6358_v19   ;;  %v10316_v30 = vrot.slane %v6548_v11, 7 }
  0xbe   :  { %10311 = vst [vmem:[#allocation23_spill] sm:$0xff] %v6622_v23  ;;  %v857_v22 = vor.u32 %v856_v53, %v852_v48  ;;  %v10313_v53 = vmov 5   ;;  %v5884_v23 = vld [vmem:[%s10100_s4] sm:$0xff] }
  0xbf   :  { %v6630_v63 = vpack.c.bf16 %v822_v34, %v821_v32  ;;  %v10126_v34 = vmov 7  }
  0xc0   :  { %v177_v31 = vpop.f32.mrf.mxu0  ;;  %6007 = vset.pattern.permute.xlu2 %v10122_v20 }
  0xc1   :  { %v178_v6 = vadd.f32 %v177_v31, %v6507_v49  ;;  %268 = vperm.xlu2 %6007, %v6330_v14   ;;  %v859_v61 = vshll.u32 %v6630_v63, 16  ;;  %v447_v14 = vmul.f32 %v6496_v46, %v6633_v4  ;;  %v6651_v54 = vpop.permute.xlu0 %1033 }
  0xc2   :  { %6006 = vset.pattern.permute.xlu1 %v10124_v29  ;;  %v6639_v35 = vpop.permute.xlu1 %438  ;;  %v6641_v19 = vpop.permute.xlu2 %741  ;;  %v10314_v29 = vmov 3  }
  0xc3   :  { %10312 = vst [vmem:[#allocation24_spill] sm:$0xff] %v6639_v35  ;;  %v6643_v32 = vmax.f32 %v178_v6, 0.0  ;;  %768 = vperm.xlu1 %6006, %v6410_v28   ;;  %v861_v27 = vrot.slane %v859_v61, 1 }
  0xc5   :  { %6037 = vset.pattern.permute.xlu0 %v10126_v34  ;;  %v448_v31 = vmul.f32 %v6493_v45, %v6643_v32  ;;  %v862_v6 = vsel %vm850_vm4, %v857_v22, %v861_v27 }
  0xc6   :  { %2059 = vperm.xlu0 %6037, %v6308_v9   ;;  %5370 = vmatmul.msk.bf16.vlgmr.msra.gmra.mxu3 %vm482_vm2, %v862_v6 }
  0xc7   :  { %v460_v20 = vpack.c.bf16 %v448_v31, %v447_v14 }
  0xc8   :  { %v179_v48 = vpop.f32.mrf.mxu0 }
  0xc9   :  { %5337 = vmatmul.msk.bf16.gmra.mxu1 %vm482_vm2, %v460_v20  ;;  %6009 = vset.pattern.permute.xlu2 %v10313_v53  ;;  %v180_v22 = vadd.f32 %v179_v48, %v6507_v49  ;;  %v5885_v20 = vld [vmem:[%s10100_s4 + $0x8] sm:$0xff] }
  0xca   :  { %1443 = vperm.xlu2 %6009, %v6289_v2   ;;  %v6659_v61 = vpop.permute.xlu2 %1042  ;;  %v6666_v45 = vpop.permute.xlu0 %236  ;;  %5957 = vmatpush.bf16.msra.mxu2 %v5885_v20 }
  0xcb   :  { %6008 = vset.pattern.permute.xlu1 %v10314_v29  ;;  %v6662_v34 = vpop.permute.xlu1 %1027  ;;  %v6672_v31 = vmax.f32 %v180_v22, 0.0  ;;  %679 = vmatpush.bf16.msrb.mxu0 %v5885_v20  ;;  %v780_v22 = vrot.slane %v6612_v3, 7  ;;  %v10315_v20 = vmov 8   ;;  %v10145_v29 = vrot.slane %v6509_v50, 1 }
  0xcc   :  { %1066 = vperm.xlu1 %6008, %v6410_v28  }
  0xce   :  { %2071 = vperm.xlu0 %6037, %v6343_v17   ;;  %5958 = vmatpush.bf16.msra.mxu2 %v5884_v23 }
  0xcf   :  { %680 = vmatpush.bf16.msrb.mxu0 %v5884_v23 }
  0xd0   :  { %v182_v14 = vpop.f32.mrf.mxu0 }
  0xd1   :  { %v183_v6 = vadd.f32 %v182_v14, %v6507_v49  ;;  %v449_v14 = vmul.f32 %v6461_v36, %v6672_v31 }
  0xd2   :  { %1449 = vperm.xlu2 %6009, %v6284_v1  }
  0xd3   :  { %v6676_v46 = vmax.f32 %v183_v6, 0.0  ;;  %v6678_v33 = vpop.permute.xlu2 %750 }
  0xd4   :  { %6010 = vset.pattern.permute.xlu1 %v10313_v53  ;;  %v736_v48 = vpop.permute.xlu1 %735 }
  0xd5   :  { %v778_v42 = vrot.slane %v736_v48, 7  ;;  %1446 = vperm.xlu1 %6010, %v6313_v10   ;;  %v450_v6 = vmul.f32 %v6550_v13, %v6676_v46  ;;  %v6699_v48 = vpop.permute.xlu0 %744 }
  0xd6   :  { %6046 = vset.pattern.permute.xlu0 %v10315_v20 }
  0xd7   :  { %v6694_v39 = vsel %vm770_vm3, %v10316_v30, %v778_v42  ;;  %v6697_v62 = vsel %vm770_vm3, %v778_v42, %v780_v22  ;;  %v461_v3 = vpack.c.bf16 %v450_v6, %v449_v14  ;;  %2274 = vperm.xlu0 %6046, %v6364_v21   ;;  %v10143_v42 = vrot.slane %v6699_v48, 7 }
  0xd8   :  { %10317 = vst [vmem:[#allocation25_spill] sm:$0xff] %v6694_v39  ;;  %v823_v36 = vmul.f32 %v6694_v39, %v6582_v58  ;;  %v824_v13 = vmul.f32 %v6697_v62, %v6590_v18  ;;  %v184_v56 = vpop.f32.mrf.mxu0  ;;  %v863_v14 = vshrl.u32 %v6630_v63, 16  ;;  %v782_v21 = vrot.slane %v6641_v19, 7  ;;  %v192_v63 = vpop.f32.mrf.mxu1 }
  0xd9   :  { %10318 = vst [vmem:[#allocation26_spill] sm:$0xff] %v6697_v62  ;;  %5338 = vmatmul.msk.bf16.gmra.mxu1 %vm482_vm2, %v461_v3  ;;  %v185_v30 = vadd.f32 %v184_v56, %v6507_v49  ;;  %v318_v62 = vrot.slane %v6475_v41, 1 }
  0xda   :  { %6012 = vset.pattern.permute.xlu2 %v10315_v20  ;;  %v6708_v11 = vpack.c.bf16 %v824_v13, %v823_v36  ;;  %v865_v36 = vor.u32 %v863_v14, %v861_v27  ;;  %v6725_v56 = vsel %vm770_vm3, %v782_v21, %v10143_v42  ;;  %v320_v27 = vrot.slane %v6513_v52, 1 }
  0xdb   :  { %2244 = vperm.xlu2 %6012, %v6313_v10   ;;  %10319 = vst [vmem:[#allocation27_spill] sm:$0xff] %v6725_v56  ;;  %v6728_v39 = vmax.f32 %v185_v30, 0.0  ;;  %v6735_v14 = vsel %vm770_vm3, %v780_v22, %v782_v21  ;;  %v826_v41 = vmul.f32 %v6725_v56, %v6643_v32 }
  0xdc   :  { %v6713_v23 = vpop.permute.xlu2 %244  ;;  %v867_v6 = vshll.u32 %v6708_v11, 16  ;;  %10321 = vst [vmem:[#allocation28_spill] sm:$0xff] %v6735_v14  ;;  %v6743_v30 = vsel %vm298_vm5, %v318_v62, %v320_v27  ;;  %v825_v52 = vmul.f32 %v6735_v14, %v6633_v4 }
  0xdd   :  { %6011 = vset.pattern.permute.xlu1 %v10315_v20  ;;  %v6719_v3 = vpop.permute.xlu1 %1036  ;;  %10322 = vst [vmem:[#allocation29_spill] sm:$0xff] %v6743_v30  ;;  %v451_v21 = vmul.f32 %v6545_v7, %v6728_v39 }
  0xde   :  { %2241 = vperm.xlu1 %6011, %v6289_v2   ;;  %v869_v13 = vrot.slane %v867_v6, 1 }
  0xdf   :  { %6051 = vset.pattern.permute.xlu0 %v10320_v43 }
  0xe0   :  { %v187_v15 = vpop.f32.mrf.mxu0  ;;  %v870_v19 = vsel %vm850_vm4, %v865_v36, %v869_v13  ;;  %1775 = vperm.xlu0 %6051, %v6385_v25   ;;  %v6756_v25 = vsel %vm298_vm5, %v10145_v29, %v318_v62  ;;  %v324_v62 = vrot.slane %v6487_v44, 1  ;;  %v322_v29 = vrot.slane %v6527_v59, 1 }
  0xe1   :  { %v188_v6 = vadd.f32 %v187_v15, %v6507_v49  ;;  %5371 = vmatmul.msk.bf16.gmra.mxu3 %vm482_vm2, %v870_v19  ;;  %v358_v15 = vmul.f32 %v6743_v30, %v6728_v39  ;;  %10323 = vst [vmem:[#allocation30_spill] sm:$0xff] %v6756_v25  ;;  %v357_v30 = vmul.f32 %v6756_v25, %v6676_v46 }
  0xe2   :  { %v6781_v44 = vsel %vm298_vm5, %v320_v27, %v322_v29  ;;  %v6784_v59 = vsel %vm298_vm5, %v322_v29, %v324_v62 }
  0xe3   :  { %v6745_v36 = vmax.f32 %v188_v6, 0.0  ;;  %6014 = vset.pattern.permute.xlu2 %v10320_v43  ;;  %v6764_v6 = vpack.c.bf16 %v826_v41, %v825_v52  ;;  %v369_v14 = vpack.c.bf16 %v358_v15, %v357_v30  ;;  %v193_v41 = vadd.f32 %v192_v63, %v6507_v49  ;;  %v194_v52 = vpop.f32.mrf.mxu1  ;;  %10325 = vst [vmem:[#allocation32_spill] sm:$0xff] %v6781_v44 }
  0xe4   :  { %1742 = vperm.xlu2 %6014, %v6313_v10   ;;  %10326 = vst [vmem:[#allocation33_spill] sm:$0xff] %v6784_v59  ;;  %v195_v30 = vadd.f32 %v194_v52, %v6507_v49 }
  0xe5   :  { %v6758_v22 = vpop.permute.xlu1 %1039  ;;  %v452_v19 = vmul.f32 %v6498_v47, %v6745_v36  ;;  %v6766_v42 = vpop.permute.xlu2 %1045  ;;  %v875_v25 = vshll.u32 %v6764_v6, 16  ;;  %v602_v63 = vshrl.u32 %v369_v14, 16  ;;  %v605_v15 = vshll.u32 %v369_v14, 16 }
  0xe6   :  { %10324 = vst [vmem:[#allocation31_spill] sm:$0xff] %v6766_v42  ;;  %6013 = vset.pattern.permute.xlu1 %v10320_v43  ;;  %v871_v42 = vshrl.u32 %v6708_v11, 16  ;;  %v359_v29 = vmul.f32 %v6781_v44, %v6745_v36 }
  0xe7   :  { %1739 = vperm.xlu1 %6013, %v6289_v2   ;;  %v462_v56 = vpack.c.bf16 %v452_v19, %v451_v21  ;;  %v326_v21 = vrot.slane %v6530_v60, 1  ;;  %v6803_v52 = vrot.slane %v875_v25, 1  ;;  %v607_v44 = vrot.slane %v605_v15, 4 }
  0xe8   :  { %v189_v7 = vpop.f32.mrf.mxu0  ;;  %6056 = vset.pattern.permute.xlu0 %v10313_v53  ;;  %v873_v11 = vor.u32 %v871_v42, %v869_v13  ;;  %v6805_v42 = vmax.f32 %v193_v41, 0.0  ;;  %v6807_v13 = vmax.f32 %v195_v30, 0.0  ;;  %v10330_v25 = vrot.slane %v6699_v48, 7 }
  0xe9   :  { %v190_v47 = vadd.f32 %v189_v7, %v6507_v49  ;;  %5339 = vmatmul.msk.bf16.gmra.mxu1 %vm482_vm2, %v462_v56  ;;  %1488 = vperm.xlu0 %6056, %v6410_v28   ;;  %v6791_v56 = vrot.slane %v6568_v37, 1  ;;  %v10332_v30 = vrot.slane %v6678_v33, 7 }
  0xea   :  { %v878_v60 = vsel %vm850_vm4, %v873_v11, %v6803_v52  ;;  %v5891_v11 = vld [vmem:[%s10100_s4 + $0x38] sm:$0xff]  ;;  %v454_v48 = vmul.f32 %v6571_v38, %v6805_v42 }
  0xeb   :  { %v6787_v7 = vmax.f32 %v190_v47, 0.0  ;;  %10328 = vst [vmem:[#allocation35_spill] sm:$0xff] %v6791_v56  ;;  %v6812_v27 = vsel %vm298_vm5, %v326_v21, %v6791_v56  ;;  %1269 = vmatpush.bf16.msra.mxu1 %v5891_v11  ;;  %v299_v11 = vrot.slane %v6666_v45, 1 }
  0xec   :  { %6015 = vset.pattern.permute.xlu2 %v10315_v20  ;;  %10329 = vst [vmem:[#allocation36_spill] sm:$0xff] %v6812_v27 }
  0xed   :  { %10327 = vst [vmem:[#allocation34_spill] sm:$0xff] %v6787_v7  ;;  %2247 = vperm.xlu2 %6015, %v6284_v1   ;;  %v360_v47 = vmul.f32 %v6784_v59, %v6787_v7  ;;  %v604_v59 = vrot.slane %v602_v63, 3  ;;  %v6831_v63 = vsel %vm298_vm5, %v324_v62, %v326_v21 }
  0xee   :  { %v748_v19 = vpop.permute.xlu1 %747  ;;  %v6801_v37 = vpop.permute.xlu2 %756  ;;  %10334 = vst [vmem:[#allocation39_spill] sm:$0xff] %v6831_v63  ;;  %v361_v21 = vmul.f32 %v6831_v63, %v6805_v42  ;;  %v1071_v63 = vrot.slane %v6662_v34, 1 }
  0xef   :  { %v786_v14 = vrot.slane %v748_v19, 7  ;;  %1748 = vperm.xlu1 %6013, %v6308_v9   ;;  %v370_v1 = vpack.c.bf16 %v360_v47, %v359_v29  ;;  %v6850_v38 = vor.u32 %v607_v44, %v604_v59 }
  0xf1   :  { %v6819_v41 = vsel %vm770_vm3, %v10330_v25, %v786_v14  ;;  %v6824_v19 = vsel %vm770_vm3, %v786_v14, %v10332_v30  ;;  %5372 = vmatmul.msk.bf16.gmra.mxu3 %vm482_vm2, %v878_v60  ;;  %v611_v29 = vshrl.u32 %v370_v1, 16  ;;  %v614_v47 = vshll.u32 %v370_v1, 16  ;;  %6061 = vset.pattern.permute.xlu0 %v10315_v20 }
  0xf2   :  { %10331 = vst [vmem:[#allocation37_spill] sm:$0xff] %v6819_v41  ;;  %v827_v15 = vmul.f32 %v6819_v41, %v6672_v31  ;;  %v828_v14 = vmul.f32 %v6824_v19, %v6676_v46  ;;  %v362_v60 = vmul.f32 %v6812_v27, %v6807_v13  ;;  %v453_v30 = vmul.f32 %v6511_v51, %v6787_v7 }
  0xf3   :  { %10333 = vst [vmem:[#allocation38_spill] sm:$0xff] %v6824_v19  ;;  %v613_v1 = vrot.slane %v611_v29, 3  ;;  %v616_v25 = vrot.slane %v614_v47, 4  ;;  %2283 = vperm.xlu0 %6061, %v6390_v26   ;;  %v5890_v29 = vld [vmem:[%s10100_s4 + $0x30] sm:$0xff]  ;;  %v197_v47 = vpop.f32.mrf.mxu1  ;;  %v10335_v51 = vmov 7  }
  0xf4   :  { %v6844_v62 = vpack.c.bf16 %v828_v14, %v827_v15  ;;  %v371_v26 = vpack.c.bf16 %v362_v60, %v361_v21  ;;  %v463_v59 = vpack.c.bf16 %v454_v48, %v453_v30  ;;  %1270 = vmatpush.bf16.msra.mxu1 %v5890_v29  ;;  %v198_v60 = vadd.f32 %v197_v47, %v6507_v49 }
  0xf5   :  { %6017 = vset.pattern.permute.xlu2 %v10313_v53  ;;  %v6852_v27 = vor.u32 %v616_v25, %v613_v1  ;;  %v347_v21 = vmul.f32 0.0, %v299_v11  ;;  %v302_v29 = vrot.slane %v6713_v23, 1  ;;  %v1068_v47 = vrot.slane %v6574_v40, 1 }
  0xf6   :  { %1455 = vperm.xlu2 %6017, %v6279_v0   ;;  %v883_v45 = vshll.u32 %v6844_v62, 16  ;;  %v620_v30 = vshrl.u32 %v371_v26, 16  ;;  %v6877_v19 = vmax.f32 %v198_v60, 0.0 }
  0xf7   :  { %6016 = vset.pattern.permute.xlu1 %v10315_v20  ;;  %v241_v15 = vpop.permute.xlu1 %240  ;;  %v618_v44 = vsel %vm556_vm6, %v6850_v38, %v6852_v27  ;;  %v6863_v14 = vpop.permute.xlu2 %256 }
  0xf8   :  { %v300_v1 = vrot.slane %v241_v15, 1  ;;  %5355 = vmatmul.msk.bf16.vlgmr.msra.gmra.mxu2 %vm482_vm2, %v618_v44  ;;  %2250 = vperm.xlu1 %6016, %v6308_v9   ;;  %v879_v15 = vshrl.u32 %v6764_v6, 16  ;;  %v6874_v44 = vrot.slane %v883_v45, 1  ;;  %v623_v9 = vshll.u32 %v371_v26, 16 }
  0xf9   :  { %5340 = vmatmul.msk.bf16.gmra.mxu1 %vm482_vm2, %v463_v59  ;;  %v10158_v59 = vrot.slane %v6588_v12, 1 }
  0xfa   :  { %v301_v25 = vsel %vm298_vm5, %v299_v11, %v300_v1  ;;  %v1069_v11 = vrot.slane %v6614_v55, 1  ;;  %v881_v34 = vor.u32 %v879_v15, %v6803_v52  ;;  %v622_v55 = vrot.slane %v620_v30, 3 }
  0xfb   :  { %v348_v48 = vmul.f32 0.0, %v301_v25  ;;  %6065 = vset.pattern.permute.xlu0 %v10335_v51  ;;  %v6891_v6 = vsel %vm298_vm5, %v1071_v63, %v10158_v59  ;;  %v625_v60 = vrot.slane %v623_v9, 4  ;;  %v363_v25 = vmul.f32 %v6791_v56, %v6877_v19 }
  0xfc   :  { %2107 = vperm.xlu0 %6065, %v6410_v28   ;;  %v6886_v23 = vsel %vm298_vm5, %v1069_v11, %v1071_v63  ;;  %10337 = vst [vmem:[#allocation41_spill] sm:$0xff] %v6891_v6  ;;  %v6897_v28 = vsel %vm298_vm5, %v300_v1, %v302_v29  ;;  %v886_v52 = vsel %vm850_vm4, %v881_v34, %v6874_v44  ;;  %v5893_v63 = vld [vmem:[%s10100_s4 + $0x48] sm:$0xff]  ;;  %v6934_v56 = vmul.f32 0.0, %v1068_v47 }
  0xfd   :  { %10336 = vst [vmem:[#allocation40_spill] sm:$0xff] %v6886_v23  ;;  %v364_v26 = vpack.c.bf16 %v348_v48, %v347_v21  ;;  %v6911_v1 = vsel %vm298_vm5, %v1068_v47, %v1069_v11  ;;  %v456_v48 = vmul.f32 %v6639_v35, %v6877_v19  ;;  %v1118_v30 = vmul.f32 %v6886_v23, %v6552_v16  ;;  %v6928_v11 = vpop.permute.xlu0 %762 }
  0xfe   :  { %6019 = vset.pattern.permute.xlu2 %v10335_v51  ;;  %10338 = vst [vmem:[#allocation42_spill] sm:$0xff] %v6897_v28  ;;  %v1119_v15 = vmul.f32 %v6891_v6, %v6558_v24  ;;  %1383 = vmatpush.bf16.msrb.mxu2 %v5893_v63  ;;  %v1117_v35 = vmul.f32 %v6911_v1, %v6519_v57 }
  0xff   :  { %v6893_v40 = vpop.permute.xlu1 %248  ;;  %2051 = vperm.xlu2 %6019, %v6313_v10   ;;  %v455_v10 = vmul.f32 %v6586_v5, %v6807_v13  ;;  %10339 = vst [vmem:[#allocation43_spill] sm:$0xff] %v6911_v1  ;;  %v561_v59 = vshll.u32 %v364_v26, 16  ;;  %v6938_v5 = vor.u32 %v625_v60, %v622_v55  ;;  %v372_v41 = vpack.c.bf16 %v363_v25, %v363_v25  ;;  %v7357_v1 = vld [vmem:[%s10097_s1 + $0x50] sm:$0xff] }
 0x100   :  { %v10162_v45 = vrot.slane %v6893_v40, 1  ;;  %6018 = vset.pattern.permute.xlu1 %v10335_v51  ;;  %v6913_v21 = vpop.permute.xlu2 %759  ;;  %10341 = vst [vmem:[#allocation45_spill] sm:$0xff] %v6934_v56  ;;  %v1134_v6 = vpack.c.bf16 %v1119_v15, %v1118_v30  ;;  %v792_v25 = vrot.slane %v6801_v37, 7 }
 0x101   :  { %2047 = vperm.xlu1 %6018, %v6289_v2   ;;  %5373 = vmatmul.msk.bf16.gmra.mxu3 %vm482_vm2, %v886_v52  ;;  %v349_v2 = vmul.f32 %v6897_v28, %v6519_v57  ;;  %v558_v52 = vshrl.u32 %v364_v26, 16  ;;  %v627_v26 = vsel %vm556_vm6, %v6852_v27, %v6938_v5  ;;  %v464_v47 = vpack.c.bf16 %v456_v48, %v455_v10 }
 0x102   :  { %v6926_v9 = vsel %vm298_vm5, %v302_v29, %v10162_v45  ;;  %v5892_v29 = vld [vmem:[%s10100_s4 + $0x40] sm:$0xff]  ;;  %v10342_v45 = vmov 2   ;;  %v563_v55 = vrot.slane %v561_v59, 4  ;;  %v1133_v28 = vpack.c.bf16 %v1117_v35, %v6934_v56 }
 0x103   :  { %10340 = vst [vmem:[#allocation44_spill] sm:$0xff] %v6926_v9  ;;  %v350_v34 = vmul.f32 %v6926_v9, %v6552_v16  ;;  %1384 = vmatpush.bf16.msrb.mxu2 %v5892_v29  ;;  %v560_v23 = vrot.slane %v558_v52, 3  ;;  %v1156_v48 = vshrl.u32 %v1134_v6, 16  ;;  %v1159_v15 = vshll.u32 %v1134_v6, 16 }
 0x104   :  { %6068 = vset.pattern.permute.xlu0 %v10342_v45  ;;  %v629_v35 = vshrl.u32 %v372_v41, 16  ;;  %v10343_v52 = vrot.slane %v6678_v33, 7  ;;  %v1148_v33 = vshrl.u32 %v1133_v28, 16 }
 0x105   :  { %v365_v63 = vpack.c.bf16 %v350_v34, %v349_v2  ;;  %v632_v34 = vshll.u32 %v372_v41, 16  ;;  %v6965_v29 = vor.u32 %v563_v55, %v560_v23  ;;  %v6974_v41 = vpop.f32.mrf.mxu1  ;;  %v1075_v55 = vrot.slane %v6651_v54, 1 }
 0x106   :  { %v887_v54 = vshrl.u32 %v6844_v62, 16 }
 0x107   :  { %6021 = vset.pattern.permute.xlu2 %v10320_v43  ;;  %v566_v60 = vshrl.u32 %v365_v63, 16  ;;  %v569_v9 = vshll.u32 %v365_v63, 16  ;;  %10346 = vst [vmem:[#allocation48_spill] sm:$0xff] %v6965_v29 }
 0x108   :  { %5356 = vmatmul.msk.bf16.gmra.mxu2 %vm482_vm2, %v627_v26  ;;  %v754_v2 = vpop.permute.xlu1 %753  ;;  %1754 = vperm.xlu2 %6021, %v6303_v8   ;;  %v1151_v26 = vshll.u32 %v1133_v28, 16  ;;  %v794_v28 = vrot.slane %v6913_v21, 7  ;;  %v10348_v21 = vrot.slane %v6588_v12, 1  ;;  %v7019_v12 = vld [vmem:[%s10097_s1 + $0x28] sm:$0xff] }
 0x109   :  { %v790_v30 = vrot.slane %v754_v2, 7  ;;  %5341 = vmatmul.msk.bf16.gmra.mxu1 %vm482_vm2, %v464_v47  ;;  %6020 = vset.pattern.permute.xlu1 %v10320_v43  ;;  %v6954_v27 = vpop.permute.xlu2 %264  ;;  %v568_v10 = vrot.slane %v566_v60, 3  ;;  %v571_v59 = vrot.slane %v569_v9, 4  ;;  %v10169_v9 = vrot.slane %v6719_v3, 1  ;;  %v6976_v47 = vpop.permute.xlu0 %765 }
 0x10a   :  { %1751 = vperm.xlu1 %6020, %v6279_v0   ;;  %v631_v2 = vrot.slane %v629_v35, 3 }
 0x10b   :  { %v6960_v8 = vsel %vm770_vm3, %v10343_v52, %v790_v30  ;;  %v6963_v37 = vsel %vm770_vm3, %v790_v30, %v792_v25  ;;  %v6967_v63 = vor.u32 %v571_v59, %v568_v10  ;;  %v634_v30 = vrot.slane %v632_v34, 4 }
 0x10c   :  { %10344 = vst [vmem:[#allocation46_spill] sm:$0xff] %v6960_v8  ;;  %v829_v6 = vmul.f32 %v6960_v8, %v6728_v39  ;;  %v830_v0 = vmul.f32 %v6963_v37, %v6745_v36  ;;  %v1158_v10 = vrot.slane %v1156_v48, 3  ;;  %v1161_v59 = vrot.slane %v1159_v15, 4 }
 0x10d   :  { %10345 = vst [vmem:[#allocation47_spill] sm:$0xff] %v6963_v37  ;;  %v573_v23 = vsel %vm556_vm6, %v6965_v29, %v6967_v63  ;;  %v10170_v52 = vrot.slane %v6928_v11, 7  ;;  %v6990_v45 = vsel %vm298_vm5, %v1075_v55, %v10169_v9  ;;  %v10171_v37 = vrot.slane %v6863_v14, 1 }
 0x10e   :  { %5350 = vmatmul.msk.bf16.vlgmr.msrb.gmra.mxu0 %vm482_vm2, %v573_v23  ;;  %v6983_v60 = vpack.c.bf16 %v830_v0, %v829_v6  ;;  %10347 = vst [vmem:[#allocation49_spill] sm:$0xff] %v6990_v45  ;;  %v1150_v34 = vrot.slane %v1148_v33, 3  ;;  %v1153_v48 = vrot.slane %v1151_v26, 4  ;;  %v7000_v6 = vsel %vm298_vm5, %v10348_v21, %v1075_v55 }
 0x10f   :  { %10349 = vst [vmem:[#allocation50_spill] sm:$0xff] %v7000_v6  ;;  %v889_v9 = vor.u32 %v887_v54, %v6874_v44  ;;  %v1121_v33 = vmul.f32 %v6990_v45, %v6590_v18  ;;  %v7009_v26 = vsel %vm770_vm3, %v792_v25, %v794_v28  ;;  %v635_v44 = vor.u32 %v634_v30, %v631_v2 }
 0x110   :  { %6025 = vset.pattern.permute.xlu2 %v10313_v53  ;;  %v891_v35 = vshll.u32 %v6983_v60, 16  ;;  %10350 = vst [vmem:[#allocation51_spill] sm:$0xff] %v7009_v26  ;;  %v10352_v55 = vrot.slane %v6893_v40, 1  ;;  %v831_v30 = vmul.f32 %v7009_v26, %v6787_v7 }
 0x111   :  { %v253_v15 = vpop.permute.xlu1 %252  ;;  %1461 = vperm.xlu2 %6025, %v6343_v17   ;;  %v7014_v17 = vsel %vm770_vm3, %v794_v28, %v10170_v52  ;;  %v636_v52 = vsel %vm556_vm6, %v6938_v5, %v635_v44 }
 0x112   :  { %v306_v0 = vrot.slane %v253_v15, 1  ;;  %6024 = vset.pattern.permute.xlu1 %v10315_v20  ;;  %v7003_v23 = vpop.permute.xlu2 %1060  ;;  %v893_v62 = vrot.slane %v891_v35, 1  ;;  %10351 = vst [vmem:[#allocation52_spill] sm:$0xff] %v7014_v17  ;;  %v7033_v35 = vor.u32 %v1161_v59, %v1158_v10  ;;  %v1120_v15 = vmul.f32 %v7000_v6, %v6582_v58 }
 0x113   :  { %2256 = vperm.xlu1 %6024, %v7019_v12   ;;  %v832_v21 = vmul.f32 %v7014_v17, %v6805_v42  ;;  %v1154_v10 = vor.u32 %v1153_v48, %v1150_v34  ;;  %v6156_v34 = vld [vmem:[%s10097_s1 + $0x10] sm:$0xff] }
 0x114   :  { %v7025_v54 = vsel %vm298_vm5, %v10352_v55, %v306_v0  ;;  %v7030_v25 = vsel %vm298_vm5, %v306_v0, %v10171_v37  ;;  %v894_v28 = vsel %vm850_vm4, %v889_v9, %v893_v62  ;;  %v1135_v59 = vpack.c.bf16 %v1121_v33, %v1120_v15  ;;  %v7048_v0 = vpop.permute.xlu0 %1048 }
 0x115   :  { %10353 = vst [vmem:[#allocation53_spill] sm:$0xff] %v7025_v54  ;;  %v351_v2 = vmul.f32 %v7025_v54, %v6558_v24  ;;  %v352_v40 = vmul.f32 %v7030_v25, %v6582_v58  ;;  %5374 = vmatmul.msk.bf16.gmra.mxu3 %vm482_vm2, %v894_v28  ;;  %v1163_v28 = vsel %vm556_vm6, %v1154_v10, %v7033_v35  ;;  %v10174_v15 = vrot.slane %v6659_v61, 1 }
 0x116   :  { %10354 = vst [vmem:[#allocation54_spill] sm:$0xff] %v7030_v25  ;;  %v7046_v9 = vpop.f32.mrf.mxu1  ;;  %v7062_v48 = vpack.c.bf16 %v832_v21, %v831_v30  ;;  %v1165_v44 = vshrl.u32 %v1135_v59, 16  ;;  %v1168_v10 = vshll.u32 %v1135_v59, 16  ;;  %v10367_v25 = vrot.slane %v7048_v0, 1 }
 0x117   :  { %v366_v55 = vpack.c.bf16 %v352_v40, %v351_v2  ;;  %v1079_v2 = vrot.slane %v6758_v22, 1  ;;  %v7070_v40 = vld [vmem:[%s10097_s1 + $0x38] sm:$0xff] }
 0x118   :  { %5357 = vmatmul.msk.bf16.gmra.mxu2 %vm482_vm2, %v636_v52 }
 0x119   :  { %5390 = vmatmul.msk.bf16.vlgmr.msra.gmra.mxu1 %vm482_vm2, %v1163_v28  ;;  %6027 = vset.pattern.permute.xlu2 %v10335_v51  ;;  %v575_v37 = vshrl.u32 %v366_v55, 16  ;;  %v578_v17 = vshll.u32 %v366_v55, 16  ;;  %v1167_v55 = vrot.slane %v1165_v44, 3  ;;  %v10356_v28 = vrot.slane %v6719_v3, 1 }
 0x11a   :  { %v7057_v26 = vpop.permute.xlu1 %1054  ;;  %2055 = vperm.xlu2 %6027, %v6156_v34   ;;  %v7090_v59 = vsel %vm298_vm5, %v1079_v2, %v10174_v15  ;;  %v10359_v15 = vrot.slane %v6863_v14, 1 }
 0x11b   :  { %6026 = vset.pattern.permute.xlu1 %v10313_v53  ;;  %v269_v5 = vpop.permute.xlu2 %268  ;;  %v577_v52 = vrot.slane %v575_v37, 3  ;;  %v580_v33 = vrot.slane %v578_v17, 4  ;;  %v895_v37 = vshrl.u32 %v6983_v60, 16  ;;  %v899_v17 = vshll.u32 %v7062_v48, 16  ;;  %10358 = vst [vmem:[#allocation57_spill] sm:$0xff] %v7090_v59 }
 0x11c   :  { %1464 = vperm.xlu1 %6026, %v7070_v40   ;;  %v7085_v34 = vsel %vm298_vm5, %v10356_v28, %v1079_v2  ;;  %v1123_v44 = vmul.f32 %v7090_v59, %v6643_v32  ;;  %v312_v2 = vrot.slane %v6954_v27, 1 }
 0x11d   :  { %v7073_v30 = vor.u32 %v580_v33, %v577_v52  ;;  %10357 = vst [vmem:[#allocation56_spill] sm:$0xff] %v7085_v34  ;;  %v897_v60 = vor.u32 %v895_v37, %v893_v62  ;;  %v1170_v52 = vrot.slane %v1168_v10, 4  ;;  %v7093_v33 = vpop.permute.xlu0 %1051  ;;  %v1122_v3 = vmul.f32 %v7085_v34, %v6633_v4 }
 0x11e   :  { %v7075_v21 = vpop.f32.mrf.mxu1  ;;  %v314_v34 = vrot.slane %v269_v5, 1  ;;  %v10363_v5 = vrot.slane %v6509_v50, 1  ;;  %v10366_v50 = vld [vmem:[#allocation31_spill] sm:$0xff] }
 0x11f   :  { %10355 = vst [vmem:[#allocation55_spill] sm:$0xff] %v7075_v21  ;;  %v582_v22 = vsel %vm556_vm6, %v6967_v63, %v7073_v30  ;;  %v7096_v63 = vrot.slane %v899_v17, 1  ;;  %v7109_v37 = vor.u32 %v1170_v52, %v1167_v55  ;;  %v6158_v17 = vld [vmem:[%s10097_s1 + $0x30] sm:$0xff]  ;;  %v1328_v55 = vpack.c.bf16 %v6552_v16, %v6519_v57 }
 0x120   :  { %5351 = vmatmul.msk.bf16.gmra.mxu0 %vm482_vm2, %v582_v22  ;;  %v7140_v6 = vsel %vm298_vm5, %v312_v2, %v314_v34 }
 0x121   :  { %v902_v10 = vsel %vm850_vm4, %v897_v60, %v7096_v63  ;;  %v1172_v14 = vsel %vm556_vm6, %v7033_v35, %v7109_v37  ;;  %10362 = vst [vmem:[#allocation60_spill] sm:$0xff] %v7140_v6 }
 0x122   :  { %6029 = vset.pattern.permute.xlu2 %v10320_v43 }
 0x123   :  { %v261_v28 = vpop.permute.xlu1 %260  ;;  %1760 = vperm.xlu2 %6029, %v7070_v40  }
 0x124   :  { %v310_v22 = vrot.slane %v261_v28, 1  ;;  %6028 = vset.pattern.permute.xlu1 %v10320_v43  ;;  %v7105_v62 = vpop.permute.xlu2 %1443 }
 0x125   :  { %1757 = vperm.xlu1 %6028, %v6158_v17   ;;  %5375 = vmatmul.msk.bf16.gmra.mxu3 %vm482_vm2, %v902_v10  ;;  %v1136_v10 = vpack.c.bf16 %v1123_v44, %v1122_v3  ;;  %v7145_v3 = vsel %vm298_vm5, %v314_v34, %v10363_v5  ;;  %v1083_v34 = vrot.slane %v10366_v50, 1  ;;  %v355_v5 = vmul.f32 %v7140_v6, %v6643_v32 }
 0x126   :  { %v7118_v27 = vsel %vm298_vm5, %v10359_v15, %v310_v22  ;;  %v7121_v28 = vsel %vm298_vm5, %v310_v22, %v312_v2  ;;  %v7123_v8 = vpop.f32.mrf.mxu1  ;;  %v7135_v15 = vpop.permute.xlu0 %1063  ;;  %10364 = vst [vmem:[#allocation61_spill] sm:$0xff] %v7145_v3  ;;  %v10369_v50 = vrot.slane %v6659_v61, 1 }
 0x127   :  { %10360 = vst [vmem:[#allocation58_spill] sm:$0xff] %v7118_v27  ;;  %v353_v60 = vmul.f32 %v7118_v27, %v6590_v18  ;;  %v354_v52 = vmul.f32 %v7121_v28, %v6633_v4  ;;  %v1174_v35 = vshrl.u32 %v1136_v10, 16 }
 0x128   :  { %10361 = vst [vmem:[#allocation59_spill] sm:$0xff] %v7121_v28  ;;  %5410 = vmatmul.msk.bf16.vlgmr.msrb.gmra.mxu2 %vm482_vm2, %v1328_v55  ;;  %v1177_v55 = vshll.u32 %v1136_v10, 16  ;;  %v356_v28 = vmul.f32 %v7145_v3, %v6672_v31 }
 0x129   :  { %v367_v22 = vpack.c.bf16 %v354_v52, %v353_v60  ;;  %5391 = vmatmul.msk.bf16.gmra.mxu1 %vm482_vm2, %v1172_v14  ;;  %v1176_v60 = vrot.slane %v1174_v35, 3 }
 0x12a   :  { %v1179_v45 = vrot.slane %v1177_v55, 4  ;;  %v368_v55 = vpack.c.bf16 %v356_v28, %v355_v5 }
 0x12b   :  { %6031 = vset.pattern.permute.xlu2 %v10315_v20  ;;  %v584_v59 = vshrl.u32 %v367_v22, 16  ;;  %v587_v27 = vshll.u32 %v367_v22, 16 }
 0x12c   :  { %v7147_v44 = vpop.permute.xlu1 %1057  ;;  %2262 = vperm.xlu2 %6031, %v7070_v40   ;;  %v7151_v52 = vpop.permute.xlu2 %1449 }
 0x12d   :  { %6030 = vset.pattern.permute.xlu1 %v10315_v20  ;;  %v586_v14 = vrot.slane %v584_v59, 3  ;;  %v589_v2 = vrot.slane %v587_v27, 4  ;;  %v7166_v59 = vsel %vm298_vm5, %v1083_v34, %v10367_v25  ;;  %v798_v27 = vrot.slane %v6976_v47, 7  ;;  %v6159_v47 = vld [vmem:[%s10097_s1 + $0x20] sm:$0xff] }
 0x12e   :  { %v7154_v22 = vpop.f32.mrf.mxu1  ;;  %2259 = vperm.xlu1 %6030, %v6158_v17   ;;  %10368 = vst [vmem:[#allocation31_spill] sm:$0xff] %v7166_v59  ;;  %v7178_v35 = vpop.permute.xlu0 %2253  ;;  %v1125_v25 = vmul.f32 %v7166_v59, %v6676_v46 }
 0x12f   :  { %10365 = vst [vmem:[#allocation62_spill] sm:$0xff] %v7154_v22  ;;  %v7161_v10 = vor.u32 %v589_v2, %v586_v14  ;;  %v7176_v14 = vsel %vm298_vm5, %v10369_v50, %v1083_v34  ;;  %v7183_v2 = vor.u32 %v1179_v45, %v1176_v60  ;;  %v10371_v34 = vrot.slane %v6928_v11, 7  ;;  %v7207_v50 = vld [vmem:[%s10097_s1 + $0x48] sm:$0xff] }
 0x130   :  { %10370 = vst [vmem:[#allocation63_spill] sm:$0xff] %v7176_v14  ;;  %v1124_v28 = vmul.f32 %v7176_v14, %v6672_v31  ;;  %v1329_v60 = vpack.c.bf16 %v6582_v58, %v6558_v24  ;;  %v593_v11 = vshrl.u32 %v368_v55, 16  ;;  %v1095_v22 = vrot.slane %v7135_v15, 1 }
 0x131   :  { %v591_v17 = vsel %vm556_vm6, %v7073_v30, %v7161_v10  ;;  %v1181_v59 = vsel %vm556_vm6, %v7109_v37, %v7183_v2  ;;  %v5895_v37 = vld [vmem:[%s10100_s4 + $0x58] sm:$0xff] }
 0x132   :  { %5352 = vmatmul.msk.bf16.gmra.mxu0 %vm482_vm2, %v591_v17  ;;  %v7193_v17 = vsel %vm770_vm3, %v10371_v34, %v798_v27  ;;  %v1137_v34 = vpack.c.bf16 %v1125_v25, %v1124_v28  ;;  %1679 = vmatpush.bf16.msrb.mxu3 %v5895_v37  ;;  %v5894_v37 = vld [vmem:[%s10100_s4 + $0x50] sm:$0xff] }
 0x133   :  { %10372 = vst [vmem:[#allocation64_spill] sm:$0xff] %v7193_v17  ;;  %v833_v14 = vmul.f32 %v7193_v17, %v6807_v13 }
 0x134   :  { %6034 = vset.pattern.permute.xlu2 %v10335_v51  ;;  %v1186_v6 = vshll.u32 %v1137_v34, 16 }
 0x135   :  { %v769_v30 = vpop.permute.xlu1 %768  ;;  %2063 = vperm.xlu2 %6034, %v6159_v47   ;;  %v7188_v61 = vpop.permute.xlu2 %2244  ;;  %v596_v47 = vshll.u32 %v368_v55, 16  ;;  %v595_v55 = vrot.slane %v593_v11, 3  ;;  %v1087_v11 = vrot.slane %v7093_v33, 1 }
 0x136   :  { %v7197_v5 = vrot.slane %v769_v30, 7  ;;  %v7199_v45 = vpop.f32.mrf.mxu1  ;;  %6033 = vset.pattern.permute.xlu1 %v10313_v53  ;;  %v7229_v54 = vpop.permute.xlu0 %1452  ;;  %v1188_v56 = vrot.slane %v1186_v6, 4  ;;  %1680 = vmatpush.bf16.msrb.mxu3 %v5894_v37 }
 0x137   :  { %1470 = vperm.xlu1 %6033, %v7207_v50   ;;  %v598_v25 = vrot.slane %v596_v47, 4 }
 0x138   :  { %10373 = vst [vmem:[#allocation65_spill] sm:$0xff] %v7197_v5  ;;  %v7212_v30 = vsel %vm770_vm3, %v798_v27, %v7197_v5  ;;  %5411 = vmatmul.msk.bf16.gmra.mxu2 %vm482_vm2, %v1329_v60  ;;  %v1183_v27 = vshrl.u32 %v1137_v34, 16  ;;  %v10192_v60 = vrot.slane %v7057_v26, 1  ;;  %v7244_v34 = vld [vmem:[%s10097_s1 + $0x40] sm:$0xff] }
 0x139   :  { %10374 = vst [vmem:[#allocation66_spill] sm:$0xff] %v7212_v30  ;;  %v834_v3 = vmul.f32 %v7212_v30, %v6877_v19  ;;  %5392 = vmatmul.msk.bf16.gmra.mxu1 %vm482_vm2, %v1181_v59  ;;  %v903_v30 = vshrl.u32 %v7062_v48, 16  ;;  %v7250_v33 = vor.u32 %v598_v25, %v595_v55 }
 0x13a   :  { %v7256_v17 = vsel %vm298_vm5, %v1087_v11, %v10192_v60  ;;  %v1185_v29 = vrot.slane %v1183_v27, 3 }
 0x13b   :  { %v7223_v28 = vpack.c.bf16 %v834_v3, %v833_v14  ;;  %v200_v3 = vadd.f32 %v6974_v41, %v6507_v49  ;;  %v905_v49 = vor.u32 %v903_v30, %v7096_v63  ;;  %10376 = vst [vmem:[#allocation68_spill] sm:$0xff] %v7256_v17  ;;  %v600_v55 = vsel %vm556_vm6, %v7161_v10, %v7250_v33 }
 0x13c   :  { %v10377_v30 = vrot.slane %v7048_v0, 1  ;;  %v1127_v6 = vmul.f32 %v7256_v17, %v6745_v36  ;;  %v7279_v10 = vor.u32 %v1188_v56, %v1185_v29 }
 0x13d   :  { %6036 = vset.pattern.permute.xlu2 %v10320_v43  ;;  %v907_v59 = vshll.u32 %v7223_v28, 16 }
 0x13e   :  { %v7237_v14 = vpop.f32.mrf.mxu1  ;;  %v7239_v47 = vpop.permute.xlu1 %1066  ;;  %1763 = vperm.xlu2 %6036, %v7244_v34   ;;  %v7269_v25 = vsel %vm298_vm5, %v10377_v30, %v1087_v11  ;;  %v1330_v11 = vpack.c.bf16 %v6633_v4, %v6590_v18  ;;  %v7299_v30 = vrot.slane %v7105_v62, 7 }
 0x13f   :  { %10375 = vst [vmem:[#allocation67_spill] sm:$0xff] %v7237_v14  ;;  %v7247_v48 = vpop.permute.xlu2 %1742  ;;  %6035 = vset.pattern.permute.xlu1 %v10335_v51  ;;  %v909_v41 = vrot.slane %v907_v59, 1  ;;  %v7271_v59 = vmax.f32 %v200_v3, 0.0  ;;  %v1126_v0 = vmul.f32 %v7269_v25, %v6728_v39 }
 0x140   :  { %2067 = vperm.xlu1 %6035, %v7019_v12   ;;  %10378 = vst [vmem:[#allocation69_spill] sm:$0xff] %v7269_v25  ;;  %v5896_v25 = vld [vmem:[%s10100_s4 + $0x60] sm:$0xff] }
 0x141   :  { %v910_v63 = vsel %vm850_vm4, %v905_v49, %v909_v41  ;;  %v835_v12 = vmul.f32 %v7197_v5, %v7271_v59  ;;  %v1138_v3 = vpack.c.bf16 %v1127_v6, %v1126_v0  ;;  %10380 = vst [vmem:[#allocation71_spill] sm:$0xff] %v7299_v30  ;;  %v5897_v6 = vld [vmem:[%s10100_s4 + $0x68] sm:$0xff] }
 0x142   :  { %5353 = vmatmul.msk.bf16.gmra.mxu0 %vm482_vm2, %v600_v55  ;;  %5376 = vmatmul.msk.bf16.gmra.mxu3 %vm482_vm2, %v910_v63  ;;  %v7291_v55 = vpop.permute.xlu0 %1458  ;;  %v1190_v63 = vsel %vm556_vm6, %v7183_v2, %v7279_v10  ;;  %v911_v2 = vshrl.u32 %v7223_v28, 16 }
 0x143   :  { %v844_v56 = vpack.c.bf16 %v835_v12, %v835_v12  ;;  %v1192_v0 = vshrl.u32 %v1138_v3, 16  ;;  %1987 = vmatpush.bf16.msra.mxu0 %v5897_v6  ;;  %v1538_v6 = vmul.f32 %v7299_v30, %v6519_v57 }
 0x144   :  { %v913_v17 = vor.u32 %v911_v2, %v909_v41  ;;  %v10385_v41 = vrot.slane %v7003_v23, 1 }
 0x145   :  { %v915_v62 = vshll.u32 %v844_v56, 16  ;;  %v1194_v28 = vrot.slane %v1192_v0, 3 }
 0x146   :  { %v7283_v27 = vpop.f32.mrf.mxu1  ;;  %6039 = vset.pattern.permute.xlu2 %v10315_v20 }
 0x147   :  { %10379 = vst [vmem:[#allocation70_spill] sm:$0xff] %v7283_v27  ;;  %v1447_v49 = vpop.permute.xlu1 %1446  ;;  %2268 = vperm.xlu2 %6039, %v7207_v50   ;;  %v7289_v37 = vpop.permute.xlu2 %2247  ;;  %1988 = vmatpush.bf16.msra.mxu0 %v5896_v25 }
 0x148   :  { %v1491_v29 = vrot.slane %v1447_v49, 7  ;;  %5412 = vmatmul.msk.bf16.gmra.mxu2 %vm482_vm2, %v1330_v11  ;;  %6038 = vset.pattern.permute.xlu1 %v10315_v20  ;;  %v1195_v11 = vshll.u32 %v1138_v3, 16  ;;  %v1091_v49 = vrot.slane %v7147_v44, 1  ;;  %v1493_v44 = vrot.slane %v7151_v52, 7  ;;  %v7340_v52 = vld [vmem:[%s10097_s1 + $0x58] sm:$0xff] }
 0x149   :  { %5393 = vmatmul.msk.bf16.gmra.mxu1 %vm482_vm2, %v1190_v63  ;;  %2265 = vperm.xlu1 %6038, %v7244_v34   ;;  %v10383_v63 = vrot.slane %v7057_v26, 1 }
 0x14a   :  { %v7308_v12 = vsel %vm770_vm3, %v7299_v30, %v1491_v29  ;;  %v1197_v56 = vrot.slane %v1195_v11, 4  ;;  %v7333_v2 = vsel %vm298_vm5, %v1091_v49, %v10385_v41  ;;  %v917_v11 = vrot.slane %v915_v62, 1  ;;  %v7352_v30 = vpop.f32.mrf.mxu3 }
 0x14b   :  { %10381 = vst [vmem:[#allocation72_spill] sm:$0xff] %v7308_v12  ;;  %v1539_v60 = vmul.f32 %v7308_v12, %v6552_v16  ;;  %v7328_v12 = vsel %vm298_vm5, %v10383_v63, %v1091_v49  ;;  %v7344_v26 = vsel %vm770_vm3, %v1491_v29, %v1493_v44  ;;  %v609_v49 = vsel %vm556_vm6, %v7250_v33, %v6850_v38  ;;  %v7350_v63 = vpop.permute.xlu0 %1467 }
 0x14c   :  { %10384 = vst [vmem:[#allocation74_spill] sm:$0xff] %v7328_v12  ;;  %v918_v25 = vsel %vm850_vm4, %v913_v17, %v917_v11  ;;  %v1128_v29 = vmul.f32 %v7328_v12, %v6787_v7  ;;  %v1129_v38 = vmul.f32 %v7333_v2, %v6805_v42  ;;  %v1540_v62 = vmul.f32 %v7344_v26, %v6558_v24 }
 0x14d   :  { %10386 = vst [vmem:[#allocation75_spill] sm:$0xff] %v7333_v2  ;;  %v1555_v41 = vpack.c.bf16 %v1539_v60, %v1538_v6  ;;  %v10388_v60 = vrot.slane %v7229_v54, 7  ;;  %v7374_v6 = vor.u32 %v1197_v56, %v1194_v28  ;;  %v1787_v56 = vrot.slane %v7247_v48, 1 }
 0x14e   :  { %v7315_v5 = vpop.f32.mrf.mxu1  ;;  %10387 = vst [vmem:[#allocation76_spill] sm:$0xff] %v7344_v26  ;;  %v1139_v12 = vpack.c.bf16 %v1129_v38, %v1128_v29 }
 0x14f   :  { %10382 = vst [vmem:[#allocation73_spill] sm:$0xff] %v7315_v5  ;;  %6041 = vset.pattern.permute.xlu2 %v10313_v53  ;;  %v7369_v33 = vsel %vm770_vm3, %v1493_v44, %v10388_v60  ;;  %v1572_v2 = vshll.u32 %v1555_v41, 16  ;;  %v1199_v44 = vsel %vm556_vm6, %v7279_v10, %v7374_v6  ;;  %v1570_v48 = vshrl.u32 %v1555_v41, 16 }
 0x150   :  { %v7335_v3 = vpop.permute.xlu1 %2241  ;;  %1476 = vperm.xlu2 %6041, %v7340_v52   ;;  %v1456_v0 = vpop.permute.xlu2 %1455  ;;  %10389 = vst [vmem:[#allocation77_spill] sm:$0xff] %v7369_v33  ;;  %v1541_v17 = vmul.f32 %v7369_v33, %v6582_v58  ;;  %v1201_v10 = vshrl.u32 %v1139_v12, 16  ;;  %v1204_v33 = vshll.u32 %v1139_v12, 16  ;;  %v10397_v41 = vrot.slane %v7229_v54, 7 }
 0x151   :  { %6040 = vset.pattern.permute.xlu1 %v10313_v53  ;;  %v1574_v38 = vrot.slane %v1572_v2, 1  ;;  %v7407_v2 = vrot.slane %v7239_v47, 1  ;;  %v10399_v12 = vrot.slane %v7291_v55, 7 }
 0x152   :  { %1473 = vperm.xlu1 %6040, %v7357_v1   ;;  %5354 = vmatmul.msk.bf16.gmra.mxu0 %vm482_vm2, %v609_v49  ;;  %v1331_v49 = vpack.c.bf16 %v6672_v31, %v6643_v32  ;;  %v7382_v5 = vpack.c.bf16 %v1541_v17, %v1540_v62  ;;  %v1497_v62 = vrot.slane %v1456_v0, 7 }
 0x153   :  { %5377 = vmatmul.msk.bf16.gmra.mxu3 %vm482_vm2, %v918_v25  ;;  %v1746_v17 = vpop.permute.xlu0 %1745  ;;  %10395 = vst [vmem:[#allocation83_spill] sm:$0xff] %v7407_v2  ;;  %v1575_v14 = vor.u32 %v1574_v38, %v1570_v48 }
 0x154   :  { %v1789_v26 = vrot.slane %v1746_v17, 1  ;;  %v7424_v47 = vsel %vm770_vm3, %v1497_v62, %v10399_v12 }
 0x155   :  { %10400 = vst [vmem:[#allocation86_spill] sm:$0xff] %v7424_v47 }
 0x156   :  { %v7378_v11 = vpop.f32.mrf.mxu1  ;;  %v7431_v38 = vsel %vm298_vm5, %v1787_v56, %v1789_v26 }
 0x157   :  { %10390 = vst [vmem:[#allocation78_spill] sm:$0xff] %v7378_v11 }
 0x158   :  { %5413 = vmatmul.msk.bf16.gmra.mxu2 %vm482_vm2, %v1331_v49  ;;  %6043 = vset.pattern.permute.xlu2 %v10320_v43  ;;  %v7399_v49 = vpop.f32.mrf.mxu3  ;;  %10402 = vst [vmem:[#allocation88_spill] sm:$0xff] %v7431_v38 }
 0x159   :  { %5394 = vmatmul.msk.bf16.gmra.mxu1 %vm482_vm2, %v1199_v44  ;;  %v1740_v28 = vpop.permute.xlu1 %1739  ;;  %1769 = vperm.xlu2 %6043, %v7357_v1   ;;  %v7394_v29 = vpop.permute.xlu2 %2051  ;;  %10393 = vst [vmem:[#allocation81_spill] sm:$0xff] %v7399_v49  ;;  %v7419_v49 = vsel %vm770_vm3, %v10397_v41, %v1497_v62  ;;  %v1543_v62 = vmul.f32 %v7424_v47, %v6633_v4 }
 0x15a   :  { %v7392_v25 = vrot.slane %v1740_v28, 1  ;;  %10392 = vst [vmem:[#allocation80_spill] sm:$0xff] %v7394_v29  ;;  %6042 = vset.pattern.permute.xlu1 %v10335_v51  ;;  %v1577_v28 = vshll.u32 %v7382_v5, 16  ;;  %v1542_v48 = vmul.f32 %v7419_v49, %v6590_v18 }
 0x15b   :  { %2075 = vperm.xlu1 %6042, %v7070_v40   ;;  %10398 = vst [vmem:[#allocation85_spill] sm:$0xff] %v7419_v49 }
 0x15c   :  { %10391 = vst [vmem:[#allocation79_spill] sm:$0xff] %v7392_v25  ;;  %v7403_v44 = vsel %vm298_vm5, %v7392_v25, %v1787_v56  ;;  %v1834_v0 = vmul.f32 %v7392_v25, %v6519_v57  ;;  %v1579_v17 = vrot.slane %v1577_v28, 1  ;;  %v1203_v57 = vrot.slane %v1201_v10, 3 }
 0x15d   :  { %10394 = vst [vmem:[#allocation82_spill] sm:$0xff] %v7403_v44  ;;  %v1835_v40 = vmul.f32 %v7403_v44, %v6552_v16  ;;  %v1206_v25 = vrot.slane %v1204_v33, 4  ;;  %v7428_v44 = vsel %vm298_vm5, %v1095_v22, %v7407_v2  ;;  %v10403_v56 = vrot.slane %v7003_v23, 1 }
 0x15e   :  { %v7413_v60 = vpop.f32.mrf.mxu1  ;;  %10401 = vst [vmem:[#allocation87_spill] sm:$0xff] %v7428_v44  ;;  %v1580_v10 = vsel %vm850_vm4, %v1575_v14, %v1579_v17 }
 0x15f   :  { %10396 = vst [vmem:[#allocation84_spill] sm:$0xff] %v7413_v60  ;;  %v1851_v15 = vpack.c.bf16 %v1835_v40, %v1834_v0  ;;  %v7448_v0 = vsel %vm298_vm5, %v10403_v56, %v1095_v22  ;;  %v1131_v40 = vmul.f32 %v7428_v44, %v6877_v19  ;;  %v1207_v23 = vor.u32 %v1206_v25, %v1203_v57 }
 0x160   :  { %10404 = vst [vmem:[#allocation89_spill] sm:$0xff] %v7448_v0  ;;  %v1836_v22 = vmul.f32 %v7431_v38, %v6558_v24  ;;  %v1130_v44 = vmul.f32 %v7448_v0, %v6807_v13 }
 0x161   :  { %v7433_v54 = vpop.permute.xlu1 %1748  ;;  %6045 = vset.pattern.permute.xlu2 %v10315_v20  ;;  %v1866_v12 = vshrl.u32 %v1851_v15, 16  ;;  %v1208_v25 = vsel %vm556_vm6, %v7374_v6, %v1207_v23 }
 0x162   :  { %v10207_v33 = vrot.slane %v7433_v54, 1  ;;  %2271 = vperm.xlu2 %6045, %v7357_v1   ;;  %v7443_v28 = vpop.permute.xlu2 %1754  ;;  %v1140_v60 = vpack.c.bf16 %v1131_v40, %v1130_v44  ;;  %v7483_v44 = vld [vmem:[%s10097_s1 + $0x68] sm:$0xff] }
 0x163   :  { %5430 = vmatmul.msk.bf16.vlgmr.msrb.gmra.mxu3 %vm482_vm2, %v1580_v10  ;;  %6044 = vset.pattern.permute.xlu1 %v10320_v43  ;;  %v1869_v10 = vshll.u32 %v1851_v15, 16  ;;  %v1868_v57 = vrot.slane %v1866_v12, 3 }
 0x164   :  { %v7457_v14 = vsel %vm298_vm5, %v1789_v26, %v10207_v33  ;;  %1772 = vperm.xlu1 %6044, %v7340_v52   ;;  %v7460_v41 = vpop.f32.mrf.mxu3  ;;  %v1332_v26 = vpack.c.bf16 %v6728_v39, %v6676_v46  ;;  %v7470_v33 = vpack.c.bf16 %v1543_v62, %v1542_v48  ;;  %v1210_v40 = vshrl.u32 %v1140_v60, 16 }
 0x165   :  { %10405 = vst [vmem:[#allocation90_spill] sm:$0xff] %v7457_v14  ;;  %v1837_v56 = vmul.f32 %v7457_v14, %v6582_v58  ;;  %v1871_v15 = vrot.slane %v1869_v10, 4  ;;  %v1213_v12 = vshll.u32 %v1140_v60, 16 }
 0x166   :  { %v541_v47 = vpop.f32.mrf.mxu1  ;;  %v1585_v48 = vshll.u32 %v7470_v33, 16  ;;  %v1212_v21 = vrot.slane %v1210_v40, 3 }
 0x167   :  { %v1852_v49 = vpack.c.bf16 %v1837_v56, %v1836_v22  ;;  %v1215_v11 = vrot.slane %v1213_v12, 4 }
 0x168   :  { %5414 = vmatmul.msk.bf16.gmra.mxu2 %vm482_vm2, %v1332_v26  ;;  %v1581_v26 = vshrl.u32 %v7382_v5, 16 }
 0x169   :  { %v1874_v38 = vshrl.u32 %v1852_v49, 16  ;;  %v1877_v14 = vshll.u32 %v1852_v49, 16  ;;  %5395 = vmatmul.msk.bf16.gmra.mxu1 %vm482_vm2, %v1208_v25  ;;  %v7500_v25 = vrot.slane %v1585_v48, 1 }
 0x16a   :  { %v7476_v0 = vpop.permute.xlu1 %2250  ;;  %6048 = vset.pattern.permute.xlu2 %v10313_v53  ;;  %v1583_v60 = vor.u32 %v1581_v26, %v1579_v17  ;;  %v1216_v17 = vor.u32 %v1215_v11, %v1212_v21 }
 0x16b   :  { %v1876_v62 = vrot.slane %v1874_v38, 3  ;;  %v1879_v22 = vrot.slane %v1877_v14, 4  ;;  %1482 = vperm.xlu2 %6048, %v7483_v44   ;;  %v7486_v6 = vpop.permute.xlu2 %1461  ;;  %v7494_v38 = vld [vmem:[%s10097_s1 + $0x60] sm:$0xff]  ;;  %v1872_v14 = vor.u32 %v1871_v15, %v1868_v57  ;;  %v5899_v57 = vld [vmem:[%s10100_s4 + $0x78] sm:$0xff]  ;;  %v1132_v15 = vmul.f32 %v7407_v2, %v7271_v59 }
 0x16c   :  { %6047 = vset.pattern.permute.xlu1 %v10313_v53  ;;  %v7489_v49 = vpop.f32.mrf.mxu3  ;;  %v1588_v27 = vsel %vm850_vm4, %v1583_v60, %v7500_v25  ;;  %2181 = vmatpush.bf16.msrb.mxu1 %v5899_v57  ;;  %v1217_v21 = vsel %vm556_vm6, %v1207_v23, %v1216_v17 }
 0x16d   :  { %10406 = vst [vmem:[#allocation91_spill] sm:$0xff] %v7489_v49  ;;  %1479 = vperm.xlu1 %6047, %v7494_v38   ;;  %v7497_v10 = vor.u32 %v1879_v22, %v1876_v62  ;;  %v1141_v40 = vpack.c.bf16 %v1132_v15, %v1132_v15 }
 0x16e   :  { %v543_v56 = vpop.f32.mrf.mxu1 }
 0x16f   :  { %v1881_v49 = vsel %vm556_vm6, %v1872_v14, %v7497_v10  ;;  %v1219_v12 = vshrl.u32 %v1141_v40, 16 }
 0x170   :  { %5450 = vmatmul.msk.bf16.vlgmr.msra.gmra.mxu0 %vm482_vm2, %v1881_v49  ;;  %v5898_v49 = vld [vmem:[%s10100_s4 + $0x70] sm:$0xff] }
 0x171   :  { %2182 = vmatpush.bf16.msrb.mxu1 %v5898_v49 }
 0x173   :  { %5431 = vmatmul.msk.bf16.gmra.mxu3 %vm482_vm2, %v1588_v27  ;;  %v7511_v5 = vpop.permute.xlu1 %2047  ;;  %6050 = vset.pattern.permute.xlu2 %v10335_v51  ;;  %v1333_v27 = vpack.c.bf16 %v6787_v7, %v6745_v36 }
 0x174   :  { %v7516_v48 = vpop.f32.mrf.mxu3  ;;  %2083 = vperm.xlu2 %6050, %v7207_v50   ;;  %v7519_v62 = vpop.permute.xlu2 %2055  ;;  %v10213_v50 = vrot.slane %v7443_v28, 1 }
 0x175   :  { %6049 = vset.pattern.permute.xlu1 %v10335_v51 }
 0x176   :  { %v546_v22 = vpop.f32.mrf.mxu1  ;;  %2079 = vperm.xlu1 %6049, %v7244_v34   ;;  %v1222_v34 = vshll.u32 %v1141_v40, 16  ;;  %v1221_v40 = vrot.slane %v1219_v12, 3 }
 0x178   :  { %5415 = vmatmul.msk.bf16.gmra.mxu2 %vm482_vm2, %v1333_v27  ;;  %v10408_v27 = vrot.slane %v7433_v54, 1  ;;  %v5901_v54 = vld [vmem:[%s10100_s4 + $0x88] sm:$0xff] }
 0x179   :  { %5396 = vmatmul.msk.bf16.gmra.mxu1 %vm482_vm2, %v1217_v21  ;;  %v1224_v21 = vrot.slane %v1222_v34, 4  ;;  %2477 = vmatpush.bf16.msra.mxu2 %v5901_v54 }
 0x17b   :  { %v707_v11 = vpop.f32.mrf.mxu2 }
 0x17c   :  { %v7532_v14 = vadd.f32 %v707_v11, %v541_v47  ;;  %v1752_v26 = vpop.permute.xlu1 %1751  ;;  %v7534_v60 = vpop.f32.mrf.mxu3  ;;  %6053 = vset.pattern.permute.xlu2 %v10315_v20 }
 0x17d   :  { %10407 = vst [vmem:[#allocation92_spill] sm:$0xff] %v7534_v60  ;;  %v1793_v57 = vrot.slane %v1752_v26, 1  ;;  %2277 = vperm.xlu2 %6053, %v7494_v38   ;;  %v7538_v15 = vpop.permute.xlu2 %1760 }
 0x17e   :  { %v7540_v23 = vpop.f32.mrf.mxu1  ;;  %6052 = vset.pattern.permute.xlu1 %v10320_v43 }
 0x17f   :  { %v7546_v49 = vsel %vm298_vm5, %v10408_v27, %v1793_v57  ;;  %v7551_v47 = vsel %vm298_vm5, %v1793_v57, %v10213_v50  ;;  %1778 = vperm.xlu1 %6052, %v7483_v44   ;;  %v1225_v57 = vor.u32 %v1224_v21, %v1221_v40 }
 0x180   :  { %10409 = vst [vmem:[#allocation93_spill] sm:$0xff] %v7546_v49  ;;  %v1838_v11 = vmul.f32 %v7546_v49, %v6590_v18  ;;  %v1839_v26 = vmul.f32 %v7551_v47, %v6633_v4 }
 0x181   :  { %10410 = vst [vmem:[#allocation94_spill] sm:$0xff] %v7551_v47  ;;  %v5900_v47 = vld [vmem:[%s10100_s4 + $0x80] sm:$0xff] }
 0x182   :  { %v1853_v27 = vpack.c.bf16 %v1839_v26, %v1838_v11  ;;  %2478 = vmatpush.bf16.msra.mxu2 %v5900_v47  ;;  %v1226_v11 = vsel %vm556_vm6, %v1216_v17, %v1225_v57  ;;  %v7599_v17 = vrot.slane %v7335_v3, 7 }
 0x183   :  { %v709_v2 = vpop.f32.mrf.mxu2 }
 0x184   :  { %v7561_v60 = vadd.f32 %v709_v2, %v543_v56  ;;  %v1883_v50 = vshrl.u32 %v1853_v27, 16  ;;  %v1886_v7 = vshll.u32 %v1853_v27, 16  ;;  %v7563_v12 = vpop.f32.mrf.mxu3  ;;  %v7576_v2 = vld [vmem:[%s10097_s1 + $0x70] sm:$0xff]  ;;  %v1334_v56 = vpack.c.bf16 %v6807_v13, %v6805_v42  ;;  %10412 = vst [vmem:[#allocation96_spill] sm:$0xff] %v7599_v17 }
 0x185   :  { %v7565_v34 = vpop.permute.xlu1 %2256  ;;  %6055 = vset.pattern.permute.xlu2 %v10313_v53 }
 0x186   :  { %10411 = vst [vmem:[#allocation95_spill] sm:$0xff] %v7561_v60  ;;  %v7571_v49 = vpop.f32.mrf.mxu1  ;;  %1485 = vperm.xlu2 %6055, %v7576_v2   ;;  %v7581_v40 = vpop.permute.xlu2 %2262  ;;  %v1885_v21 = vrot.slane %v1883_v50, 3  ;;  %v1888_v53 = vrot.slane %v1886_v7, 4  ;;  %v1501_v50 = vrot.slane %v7486_v6, 7  ;;  %v2289_v6 = vrot.slane %v7188_v61, 7 }
 0x187   :  { %6054 = vset.pattern.permute.xlu1 %v10315_v20  ;;  %v2111_v60 = vmul.f32 %v7394_v29, %v6558_v24 }
 0x188   :  { %5416 = vmatmul.msk.bf16.gmra.mxu2 %vm482_vm2, %v1334_v56  ;;  %2280 = vperm.xlu1 %6054, %v7483_v44   ;;  %v7587_v26 = vor.u32 %v1888_v53, %v1885_v21  ;;  %v10413_v53 = vrot.slane %v7291_v55, 7  ;;  %v7623_v61 = vsel %vm770_vm3, %v7599_v17, %v2289_v6 }
 0x189   :  { %5397 = vmatmul.msk.bf16.gmra.mxu1 %vm482_vm2, %v1226_v11  ;;  %v10222_v11 = vrot.slane %v7476_v0, 7  ;;  %10415 = vst [vmem:[#allocation98_spill] sm:$0xff] %v7623_v61 }
 0x18a   :  { %v1890_v54 = vsel %vm556_vm6, %v7497_v10, %v7587_v26 }
 0x18b   :  { %v712_v7 = vpop.f32.mrf.mxu2  ;;  %v682_v27 = vpop.f32.mrf.mxu0  ;;  %5451 = vmatmul.msk.bf16.gmra.mxu0 %vm482_vm2, %v1890_v54 }
 0x18c   :  { %v7595_v47 = vadd.f32 %v712_v7, %v546_v22  ;;  %v683_v56 = vadd.f32 %v682_v27, %v7046_v9  ;;  %v7611_v22 = vsel %vm770_vm3, %v10413_v53, %v1501_v50  ;;  %v7618_v54 = vpop.f32.mrf.mxu3  ;;  %v2336_v27 = vmul.f32 %v7599_v17, %v6552_v16 }
 0x18d   :  { %10414 = vst [vmem:[#allocation97_spill] sm:$0xff] %v7611_v22  ;;  %v1589_v17 = vshrl.u32 %v7470_v33, 16  ;;  %v6167_v33 = vld [vmem:[%s10097_s1 + $0x78] sm:$0xff] }
 0x18e   :  { %v7601_v57 = vpop.f32.mrf.mxu1  ;;  %v7603_v21 = vpop.permute.xlu1 %1464  ;;  %6058 = vset.pattern.permute.xlu2 %v10335_v51  ;;  %v1004_v10 = vadd.f32 %v7352_v30, %v683_v56  ;;  %v2291_v30 = vrot.slane %v7289_v37, 7  ;;  %v2110_v56 = vmul.f32 %v7511_v5, %v6552_v16  ;;  %v1335_v16 = vpack.c.bf16 %v7271_v59, %v6877_v19 }
 0x18f   :  { %v10218_v9 = vrot.slane %v7603_v21, 7  ;;  %2091 = vperm.xlu2 %6058, %v7340_v52   ;;  %v7615_v3 = vpop.permute.xlu2 %2063  ;;  %v1544_v52 = vmul.f32 %v7611_v22, %v6643_v32 }
 0x190   :  { %6057 = vset.pattern.permute.xlu1 %v10335_v51  ;;  %v7659_v22 = vsel %vm770_vm3, %v2289_v6, %v2291_v30 }
 0x191   :  { %v7628_v55 = vsel %vm770_vm3, %v1501_v50, %v10218_v9  ;;  %2087 = vperm.xlu1 %6057, %v7357_v1   ;;  %v2337_v50 = vmul.f32 %v7623_v61, %v6558_v24  ;;  %v7645_v1 = vsel %vm770_vm3, %v2291_v30, %v10222_v11  ;;  %10419 = vst [vmem:[#allocation102_spill] sm:$0xff] %v7659_v22  ;;  %v1799_v61 = vrot.slane %v7538_v15, 1 }
 0x192   :  { %10416 = vst [vmem:[#allocation99_spill] sm:$0xff] %v7628_v55  ;;  %v1545_v7 = vmul.f32 %v7628_v55, %v6672_v31  ;;  %v2339_v24 = vmul.f32 %v7645_v1, %v6590_v18 }
 0x193   :  { %v714_v53 = vpop.f32.mrf.mxu2  ;;  %10417 = vst [vmem:[#allocation100_spill] sm:$0xff] %v7645_v1  ;;  %v7654_v55 = vpop.f32.mrf.mxu0  ;;  %v2353_v6 = vpack.c.bf16 %v2337_v50, %v2336_v27  ;;  %v1591_v1 = vor.u32 %v1589_v17, %v7500_v25  ;;  %v10420_v27 = vrot.slane %v7443_v28, 1 }
 0x194   :  { %v7648_v37 = vadd.f32 %v714_v53, %v7540_v23  ;;  %v7650_v9 = vpack.c.bf16 %v1545_v7, %v1544_v52  ;;  %v7664_v52 = vpop.permute.xlu0 %1766  ;;  %v2126_v7 = vpack.c.bf16 %v2111_v60, %v2110_v56 }
 0x196   :  { %10418 = vst [vmem:[#allocation101_spill] sm:$0xff] %v7648_v37  ;;  %v1272_v11 = vpop.f32.mrf.mxu1  ;;  %v1593_v23 = vshll.u32 %v7650_v9, 16 }
 0x197   :  { %v7668_v53 = vadd.f32 %v1272_v11, %v1004_v10  ;;  %v1758_v37 = vpop.permute.xlu1 %1757  ;;  %6060 = vset.pattern.permute.xlu2 %v10320_v43  ;;  %v10228_v10 = vrot.slane %v7664_v52, 1  ;;  %v2338_v11 = vmul.f32 %v7659_v22, %v6582_v58 }
 0x198   :  { %v1797_v30 = vrot.slane %v1758_v37, 1  ;;  %5417 = vmatmul.msk.bf16.gmra.mxu2 %vm482_vm2, %v1335_v16  ;;  %v7672_v15 = vpop.f32.mrf.mxu3  ;;  %1784 = vperm.xlu2 %6060, %v6167_v33   ;;  %v1764_v29 = vpop.permute.xlu2 %1763  ;;  %v7678_v60 = vrot.slane %v1593_v23, 1  ;;  %v2370_v23 = vshll.u32 %v2353_v6, 16 }
 0x199   :  { %5470 = vmatmul.msk.bf16.vlgmr.msrb.gmra.mxu1 %vm482_vm2, %v2126_v7  ;;  %6059 = vset.pattern.permute.xlu1 %v10320_v43  ;;  %v1801_v25 = vrot.slane %v1764_v29, 1  ;;  %v7696_v37 = vpack.c.bf16 %v2339_v24, %v2338_v11 }
 0x19a   :  { %v7688_v56 = vsel %vm298_vm5, %v10420_v27, %v1797_v30  ;;  %v7691_v50 = vsel %vm298_vm5, %v1797_v30, %v1799_v61  ;;  %1781 = vperm.xlu1 %6059, %v7576_v2   ;;  %v1596_v17 = vsel %vm850_vm4, %v1591_v1, %v7678_v60 }
 0x19b   :  { %10421 = vst [vmem:[#allocation103_spill] sm:$0xff] %v7688_v56  ;;  %v1840_v16 = vmul.f32 %v7688_v56, %v6643_v32  ;;  %v1841_v43 = vmul.f32 %v7691_v50, %v6672_v31  ;;  %v717_v28 = vpop.f32.mrf.mxu2  ;;  %5432 = vmatmul.msk.bf16.gmra.mxu3 %vm482_vm2, %v1596_v17  ;;  %v7707_v27 = vsel %vm298_vm5, %v1799_v61, %v1801_v25  ;;  %v2368_v17 = vshrl.u32 %v2353_v6, 16 }
 0x19c   :  { %10422 = vst [vmem:[#allocation104_spill] sm:$0xff] %v7691_v50  ;;  %v7704_v7 = vadd.f32 %v717_v28, %v7571_v49  ;;  %v7712_v1 = vsel %vm298_vm5, %v1801_v25, %v10228_v10  ;;  %v2375_v49 = vshll.u32 %v7696_v37, 16 }
 0x19d   :  { %v1854_v29 = vpack.c.bf16 %v1841_v43, %v1840_v16  ;;  %v687_v30 = vpop.f32.mrf.mxu0  ;;  %10423 = vst [vmem:[#allocation105_spill] sm:$0xff] %v7707_v27  ;;  %v2295_v16 = vrot.slane %v7178_v35, 7  ;;  %v2372_v43 = vrot.slane %v2370_v23, 1 }
 0x19e   :  { %10424 = vst [vmem:[#allocation106_spill] sm:$0xff] %v7712_v1  ;;  %v688_v24 = vadd.f32 %v687_v30, %v7123_v8  ;;  %v7715_v11 = vpop.f32.mrf.mxu1  ;;  %v7726_v8 = vpop.permute.xlu0 %2059  ;;  %v1842_v30 = vmul.f32 %v7707_v27, %v6676_v46 }
 0x19f   :  { %v1892_v50 = vshrl.u32 %v1854_v29, 16  ;;  %v1895_v56 = vshll.u32 %v1854_v29, 16  ;;  %v1843_v29 = vmul.f32 %v7712_v1, %v6728_v39 }
 0x1a0   :  { %v7720_v61 = vpop.permute.xlu1 %2259  ;;  %v7722_v28 = vpop.f32.mrf.mxu3  ;;  %6063 = vset.pattern.permute.xlu2 %v10335_v51  ;;  %v1006_v25 = vadd.f32 %v7460_v41, %v688_v24  ;;  %v2112_v41 = vmul.f32 %v7519_v62, %v6582_v58  ;;  %v10425_v24 = vrot.slane %v7565_v34, 7 }
 0x1a1   :  { %2095 = vperm.xlu2 %6063, %v7494_v38   ;;  %v7733_v35 = vpop.permute.xlu2 %2268  ;;  %v1894_v23 = vrot.slane %v1892_v50, 3  ;;  %v1897_v10 = vrot.slane %v1895_v56, 4  ;;  %v7745_v38 = vrot.slane %v2375_v49, 1  ;;  %v2113_v56 = vmul.f32 %v7726_v8, %v6590_v18 }
 0x1a2   :  { %6062 = vset.pattern.permute.xlu1 %v10315_v20  ;;  %v7741_v22 = vsel %vm770_vm3, %v2295_v16, %v10425_v24  ;;  %v10428_v20 = vrot.slane %v7476_v0, 7  ;;  %v1855_v50 = vpack.c.bf16 %v1843_v29, %v1842_v30  ;;  %v1505_v49 = vrot.slane %v7350_v63, 7 }
 0x1a3   :  { %10426 = vst [vmem:[#allocation107_spill] sm:$0xff] %v7741_v22  ;;  %v719_v27 = vpop.f32.mrf.mxu2  ;;  %2286 = vperm.xlu1 %6062, %v6167_v33   ;;  %v7743_v1 = vor.u32 %v1897_v10, %v1894_v23  ;;  %v2373_v10 = vor.u32 %v2372_v43, %v2368_v17  ;;  %v2341_v23 = vmul.f32 %v7741_v22, %v6643_v32 }
 0x1a4   :  { %v7750_v6 = vadd.f32 %v719_v27, %v7601_v57  ;;  %v7755_v58 = vsel %vm770_vm3, %v10428_v20, %v2295_v16  ;;  %v2127_v57 = vpack.c.bf16 %v2113_v56, %v2112_v41  ;;  %v1901_v17 = vshrl.u32 %v1855_v50, 16 }
 0x1a5   :  { %10429 = vst [vmem:[#allocation109_spill] sm:$0xff] %v7755_v58  ;;  %v1899_v33 = vsel %vm556_vm6, %v7587_v26, %v7743_v1  ;;  %v7764_v27 = vpop.f32.mrf.mxu0  ;;  %v2378_v16 = vsel %vm850_vm4, %v2373_v10, %v7745_v38  ;;  %v2340_v26 = vmul.f32 %v7755_v58, %v6633_v4  ;;  %v1904_v43 = vshll.u32 %v1855_v50, 16 }
 0x1a6   :  { %10427 = vst [vmem:[#allocation108_spill] sm:$0xff] %v7750_v6  ;;  %v1277_v18 = vpop.f32.mrf.mxu1  ;;  %5452 = vmatmul.msk.bf16.gmra.mxu0 %vm482_vm2, %v1899_v33  ;;  %v10430_v41 = vrot.slane %v7603_v21, 7  ;;  %v1903_v10 = vrot.slane %v1901_v17, 3  ;;  %v2379_v17 = vshrl.u32 %v7696_v37, 16  ;;  %v7880_v6 = vpop.permute.xlu0 %2071 }
 0x1a7   :  { %v7766_v0 = vadd.f32 %v1277_v18, %v1006_v25  ;;  %v7780_v25 = vpack.c.bf16 %v2341_v23, %v2340_v26  ;;  %v1906_v23 = vrot.slane %v1904_v43, 4  ;;  %v1597_v26 = vshrl.u32 %v7650_v9, 16  ;;  %10441 = vst [vmem:[#allocation115_spill] sm:$0xff] %v7880_v6 }
 0x1a8   :  { %5490 = vmatmul.msk.bf16.vlgmr.msra.gmra.mxu2 %vm482_vm2, %v2378_v16  ;;  %v989_v63 = vpop.f32.mrf.mxu3  ;;  %v7785_v24 = vsel %vm770_vm3, %v10430_v41, %v1505_v49  ;;  %v10433_v43 = vmov 3   ;;  %v10434_v9 = vrot.slane %v7565_v34, 7 }
 0x1a9   :  { %v7774_v30 = vadd.f32 %v989_v63, %v7532_v14  ;;  %5471 = vmatmul.msk.bf16.gmra.mxu1 %vm482_vm2, %v2127_v57  ;;  %v7777_v29 = vpop.permute.xlu1 %1470  ;;  %2103 = vperm.xlu2 %6063, %v7576_v2   ;;  %10431 = vst [vmem:[#allocation110_spill] sm:$0xff] %v7785_v24  ;;  %v1546_v21 = vmul.f32 %v7785_v24, %v6676_v46  ;;  %v2299_v57 = vrot.slane %v7720_v61, 7 }
 0x1aa   :  { %v10232_v56 = vrot.slane %v7777_v29, 7  ;;  %v7788_v20 = vpop.permute.xlu2 %1476  ;;  %v7814_v41 = vor.u32 %v1906_v23, %v1903_v10 }
 0x1ab   :  { %v1386_v50 = vpop.f32.mrf.mxu2  ;;  %6064 = vset.pattern.permute.xlu1 %v10335_v51  ;;  %v2383_v51 = vshll.u32 %v7780_v25, 16 }
 0x1ac   :  { %v7794_v14 = vsel %vm770_vm3, %v1505_v49, %v10232_v56  ;;  %v7797_v2 = vadd.f32 %v1386_v50, %v7668_v53  ;;  %2099 = vperm.xlu1 %6064, %v7483_v44   ;;  %v2301_v49 = vrot.slane %v7581_v40, 7  ;;  %v2114_v40 = vmul.f32 %v7615_v3, %v6633_v4 }
 0x1ad   :  { %10432 = vst [vmem:[#allocation111_spill] sm:$0xff] %v7794_v14  ;;  %v1547_v33 = vmul.f32 %v7794_v14, %v6728_v39  ;;  %v2387_v56 = vshrl.u32 %v7780_v25, 16 }
 0x1ae   :  { %v7804_v18 = vpop.f32.mrf.mxu1  ;;  %v7830_v10 = vsel %vm770_vm3, %v2299_v57, %v2301_v49 }
 0x1af   :  { %v692_v53 = vpop.f32.mrf.mxu0  ;;  %v7809_v16 = vpack.c.bf16 %v1547_v33, %v1546_v21  ;;  %v1599_v21 = vor.u32 %v1597_v26, %v7678_v60  ;;  %v7827_v33 = vsel %vm770_vm3, %v10434_v9, %v2299_v57  ;;  %10436 = vst [vmem:[#allocation113_spill] sm:$0xff] %v7830_v10  ;;  %v2381_v57 = vor.u32 %v2379_v17, %v7745_v38 }
 0x1b0   :  { %v693_v44 = vadd.f32 %v692_v53, %v7199_v45  ;;  %v2385_v45 = vrot.slane %v2383_v51, 1  ;;  %10435 = vst [vmem:[#allocation112_spill] sm:$0xff] %v7827_v33  ;;  %v1908_v51 = vsel %vm556_vm6, %v7743_v1, %v7814_v41 }
 0x1b1   :  { %v1601_v63 = vshll.u32 %v7809_v16, 16  ;;  %6069 = vset.pattern.permute.xlu2 %v10433_v43 }
 0x1b2   :  { %v7820_v50 = vpop.permute.xlu1 %2067  ;;  %v1008_v61 = vadd.f32 %v7516_v48, %v693_v44  ;;  %v10437_v48 = vmov 0   ;;  %v2343_v44 = vmul.f32 %v7830_v10, %v6676_v46 }
 0x1b3   :  { %v2115_v37 = vmul.f32 %v7820_v50, %v6643_v32  ;;  %v7834_v23 = vpop.f32.mrf.mxu2  ;;  %v7836_v4 = vpop.permute.xlu2 %1769  ;;  %v7838_v53 = vrot.slane %v1601_v63, 1  ;;  %v2342_v32 = vmul.f32 %v7827_v33, %v6672_v31 }
 0x1b4   :  { %6066 = vset.pattern.permute.xlu1 %v10437_v48  ;;  %v7916_v33 = vpop.permute.xlu0 %2274 }
 0x1b5   :  { %v2128_v60 = vpack.c.bf16 %v2115_v37, %v2114_v40  ;;  %v1604_v34 = vsel %vm850_vm4, %v1599_v21, %v7838_v53  ;;  %v2386_v21 = vsel %vm850_vm4, %v2381_v57, %v2385_v45  ;;  %v7858_v1 = vpack.c.bf16 %v2343_v44, %v2342_v32  ;;  %v7863_v37 = vpop.f32.mrf.mxu3 }
 0x1b6   :  { %v1282_v26 = vpop.f32.mrf.mxu1  ;;  %5433 = vmatmul.msk.bf16.gmra.mxu3 %vm482_vm2, %v1604_v34  ;;  %5453 = vmatmul.msk.bf16.gmra.mxu0 %vm482_vm2, %v1908_v51  ;;  %10438 = vst [vmem:[#allocation114_spill] sm:$0xff] %v7863_v37  ;;  %v2389_v37 = vor.u32 %v2387_v56, %v2385_v45  ;;  %v10445_v45 = vrot.slane %v7788_v20, 7 }
 0x1b7   :  { %v1316_v63 = vadd.f32 %v1282_v26, %v1008_v61  ;;  %v7853_v40 = vpop.f32.mrf.mxu0  ;;  %v2391_v51 = vshll.u32 %v7858_v1, 16 }
 0x1b8   :  { %5491 = vmatmul.msk.bf16.gmra.mxu2 %vm482_vm2, %v2386_v21  ;;  %v2305_v21 = vrot.slane %v7733_v35, 7 }
 0x1b9   :  { %5472 = vmatmul.msk.bf16.gmra.mxu1 %vm482_vm2, %v2128_v60  ;;  %v10439_v60 = vld [vmem:[#allocation70_spill] sm:$0xff] }
 0x1bb   :  { %v1391_v38 = vpop.f32.mrf.mxu2  ;;  %v2266_v17 = vpop.permute.xlu1 %2265 }
 0x1bc   :  { %v7861_v9 = vadd.f32 %v1391_v38, %v7766_v0  ;;  %v7865_v34 = vpop.permute.xlu2 %2271  ;;  %v2303_v57 = vrot.slane %v2266_v17, 7  ;;  %v2393_v0 = vrot.slane %v2391_v51, 1 }
 0x1be   :  { %v7867_v61 = vpop.f32.mrf.mxu1  ;;  %v7876_v43 = vsel %vm770_vm3, %v2301_v49, %v2303_v57  ;;  %v7883_v17 = vsel %vm770_vm3, %v2303_v57, %v2305_v21  ;;  %v10443_v57 = vrot.slane %v7777_v29, 7 }
 0x1bf   :  { %v697_v26 = vpop.f32.mrf.mxu0  ;;  %10440 = vst [vmem:[#allocation70_spill] sm:$0xff] %v7876_v43  ;;  %v2344_v25 = vmul.f32 %v7876_v43, %v6728_v39  ;;  %v2345_v38 = vmul.f32 %v7883_v17, %v6745_v36 }
 0x1c0   :  { %v698_v32 = vadd.f32 %v697_v26, %v10439_v60  ;;  %10442 = vst [vmem:[#allocation116_spill] sm:$0xff] %v7883_v17 }
 0x1c2   :  { %v1010_v44 = vadd.f32 %v7563_v12, %v698_v32  ;;  %v2394_v32 = vsel %vm850_vm4, %v2389_v37, %v2393_v0  ;;  %v10447_v37 = vld [vmem:[#allocation34_spill] sm:$0xff] }
 0x1c3   :  { %v7878_v48 = vpop.f32.mrf.mxu2 }
 0x1c4   :  { %v1474_v35 = vpop.permute.xlu1 %1473 }
 0x1c5   :  { %v1509_v26 = vrot.slane %v1474_v35, 7  ;;  %v994_v60 = vpop.f32.mrf.mxu3  ;;  %v7885_v12 = vpop.permute.xlu2 %1482 }
 0x1c6   :  { %v7890_v51 = vadd.f32 %v994_v60, %v7595_v47  ;;  %v1287_v49 = vpop.f32.mrf.mxu1 }
 0x1c7   :  { %v7898_v56 = vsel %vm770_vm3, %v10443_v57, %v1509_v26  ;;  %v7903_v35 = vsel %vm770_vm3, %v1509_v26, %v10445_v45  ;;  %v1318_v43 = vadd.f32 %v1287_v49, %v1010_v44  ;;  %v7905_v10 = vpop.f32.mrf.mxu0  ;;  %v7914_v57 = vpack.c.bf16 %v2345_v38, %v2344_v25 }
 0x1c8   :  { %10444 = vst [vmem:[#allocation117_spill] sm:$0xff] %v7898_v56  ;;  %v1548_v47 = vmul.f32 %v7898_v56, %v6745_v36  ;;  %v1549_v60 = vmul.f32 %v7903_v35, %v10447_v37  ;;  %5492 = vmatmul.msk.bf16.gmra.mxu2 %vm482_vm2, %v2394_v32  ;;  %v1605_v44 = vshrl.u32 %v7809_v16, 16  ;;  %v2116_v32 = vmul.f32 %v7880_v6, %v6672_v31  ;;  %v10451_v31 = vld [vmem:[#allocation78_spill] sm:$0xff] }
 0x1c9   :  { %10446 = vst [vmem:[#allocation118_spill] sm:$0xff] %v7903_v35  ;;  %v2307_v16 = vrot.slane %v7865_v34, 7  ;;  %v2399_v35 = vshll.u32 %v7914_v57, 16 }
 0x1ca   :  { %v7912_v29 = vpack.c.bf16 %v1549_v60, %v1548_v47 }
 0x1cb   :  { %v1396_v17 = vpop.f32.mrf.mxu2 }
 0x1cc   :  { %v7918_v26 = vadd.f32 %v1396_v17, %v1316_v63  ;;  %v1609_v49 = vshll.u32 %v7912_v29, 16  ;;  %v1607_v63 = vor.u32 %v1605_v44, %v7838_v53  ;;  %v7947_v44 = vsel %vm770_vm3, %v2305_v21, %v2307_v16 }
 0x1cd   :  { %v7922_v45 = vpop.permute.xlu1 %2075  ;;  %v7924_v56 = vpop.f32.mrf.mxu3  ;;  %10452 = vst [vmem:[#allocation78_spill] sm:$0xff] %v7947_v44 }
 0x1ce   :  { %10448 = vst [vmem:[#allocation34_spill] sm:$0xff] %v7922_v45  ;;  %v2117_v38 = vmul.f32 %v7922_v45, %v6676_v46  ;;  %v7930_v25 = vpop.f32.mrf.mxu1  ;;  %v7932_v47 = vpop.permute.xlu2 %2083  ;;  %v7935_v17 = vrot.slane %v1609_v49, 1  ;;  %v2395_v49 = vshrl.u32 %v7858_v1, 16 }
 0x1cf   :  { %10449 = vst [vmem:[#allocation119_spill] sm:$0xff] %v7924_v56  ;;  %v702_v60 = vpop.f32.mrf.mxu0  ;;  %v2401_v56 = vrot.slane %v2399_v35, 1 }
 0x1d0   :  { %10450 = vst [vmem:[#allocation120_spill] sm:$0xff] %v7932_v47  ;;  %v2129_v14 = vpack.c.bf16 %v2117_v38, %v2116_v32  ;;  %v703_v24 = vadd.f32 %v702_v60, %v10451_v31  ;;  %v1612_v46 = vsel %vm850_vm4, %v1607_v63, %v7935_v17  ;;  %v1805_v32 = vrot.slane %v7836_v4, 1 }
 0x1d1   :  { %5434 = vmatmul.msk.bf16.gmra.mxu3 %vm482_vm2, %v1612_v46  ;;  %v10453_v38 = vrot.slane %v7916_v33, 7  ;;  %v2397_v60 = vor.u32 %v2395_v49, %v2393_v0 }
 0x1d2   :  { %5473 = vmatmul.msk.bf16.gmra.mxu1 %vm482_vm2, %v2129_v14  ;;  %v1012_v53 = vadd.f32 %v7672_v15, %v703_v24  ;;  %v2346_v14 = vmul.f32 %v7947_v44, %v10447_v37 }
 0x1d3   :  { %v7949_v34 = vpop.f32.mrf.mxu2  ;;  %v7956_v63 = vsel %vm770_vm3, %v2307_v16, %v10453_v38  ;;  %v2402_v4 = vsel %vm850_vm4, %v2397_v60, %v2401_v56  ;;  %v10455_v16 = vrot.slane %v7664_v52, 1  ;;  %v7977_v38 = vpop.permute.xlu0 %1775 }
 0x1d4   :  { %10454 = vst [vmem:[#allocation121_spill] sm:$0xff] %v7956_v63  ;;  %v2347_v21 = vmul.f32 %v7956_v63, %v6805_v42 }
 0x1d5   :  { %v7971_v0 = vsel %vm298_vm5, %v10455_v16, %v1805_v32 }
 0x1d6   :  { %v999_v15 = vpop.f32.mrf.mxu3  ;;  %v1292_v24 = vpop.f32.mrf.mxu1  ;;  %10456 = vst [vmem:[#allocation122_spill] sm:$0xff] %v7971_v0  ;;  %v7984_v60 = vpack.c.bf16 %v2347_v21, %v2346_v14 }
 0x1d7   :  { %v7963_v31 = vadd.f32 %v999_v15, %v7704_v7  ;;  %v1320_v1 = vadd.f32 %v1292_v24, %v1012_v53  ;;  %v7965_v35 = vpop.permute.xlu1 %1772  ;;  %v7975_v49 = vpop.permute.xlu2 %2277  ;;  %v1844_v53 = vmul.f32 %v7971_v0, %v6745_v36 }
 0x1d8   :  { %v1807_v46 = vrot.slane %v7965_v35, 1  ;;  %5493 = vmatmul.msk.bf16.gmra.mxu2 %vm482_vm2, %v2402_v4  ;;  %v1515_v4 = vrot.slane %v7885_v12, 7  ;;  %v2407_v45 = vshll.u32 %v7984_v60, 16 }
 0x1da   :  { %v7980_v7 = vsel %vm298_vm5, %v1805_v32, %v1807_v46 }
 0x1db   :  { %10457 = vst [vmem:[#allocation123_spill] sm:$0xff] %v7980_v7  ;;  %v1845_v52 = vmul.f32 %v7980_v7, %v10447_v37  ;;  %v1401_v15 = vpop.f32.mrf.mxu2  ;;  %v1489_v14 = vpop.permute.xlu0 %1488  ;;  %v2403_v7 = vshrl.u32 %v7914_v57, 16 }
 0x1dc   :  { %v7988_v24 = vadd.f32 %v1401_v15, %v1318_v43  ;;  %v10458_v43 = vrot.slane %v7788_v20, 7 }
 0x1dd   :  { %v1856_v35 = vpack.c.bf16 %v1845_v52, %v1844_v53 }
 0x1de   :  { %v7991_v16 = vpop.f32.mrf.mxu1 }
 0x1df   :  { %v1910_v63 = vshrl.u32 %v1856_v35, 16  ;;  %v1913_v44 = vshll.u32 %v1856_v35, 16  ;;  %v1480_v32 = vpop.permute.xlu1 %1479 }
 0x1e0   :  { %v1513_v6 = vrot.slane %v1480_v32, 7  ;;  %v1486_v0 = vpop.permute.xlu2 %1485  ;;  %v1519_v32 = vrot.slane %v1489_v14, 7 }
 0x1e1   :  { %v1912_v21 = vrot.slane %v1910_v63, 3  ;;  %v1915_v22 = vrot.slane %v1913_v44, 4  ;;  %v2405_v63 = vor.u32 %v2403_v7, %v2401_v56  ;;  %v8009_v44 = vrot.slane %v2407_v45, 1 }
 0x1e2   :  { %v7998_v53 = vsel %vm770_vm3, %v10458_v43, %v1513_v6  ;;  %v8001_v12 = vsel %vm770_vm3, %v1513_v6, %v1515_v4  ;;  %v1517_v57 = vrot.slane %v1486_v0, 7  ;;  %v1613_v56 = vshrl.u32 %v7912_v29, 16 }
 0x1e3   :  { %10459 = vst [vmem:[#allocation124_spill] sm:$0xff] %v7998_v53  ;;  %v1550_v52 = vmul.f32 %v7998_v53, %v6805_v42  ;;  %v1551_v15 = vmul.f32 %v8001_v12, %v6807_v13  ;;  %v8007_v35 = vpop.f32.mrf.mxu2  ;;  %v8011_v20 = vor.u32 %v1915_v22, %v1912_v21 }
 0x1e4   :  { %10460 = vst [vmem:[#allocation125_spill] sm:$0xff] %v8001_v12  ;;  %v2410_v12 = vsel %vm850_vm4, %v2405_v63, %v8009_v44  ;;  %v8022_v0 = vsel %vm770_vm3, %v1515_v4, %v1517_v57  ;;  %v8025_v22 = vsel %vm770_vm3, %v1517_v57, %v1519_v32 }
 0x1e5   :  { %v1561_v43 = vpack.c.bf16 %v1551_v15, %v1550_v52  ;;  %v1917_v6 = vsel %vm556_vm6, %v7814_v41, %v8011_v20  ;;  %10461 = vst [vmem:[#allocation126_spill] sm:$0xff] %v8022_v0  ;;  %v1615_v41 = vor.u32 %v1613_v56, %v7935_v17  ;;  %v1552_v4 = vmul.f32 %v8022_v0, %v6877_v19 }
 0x1e6   :  { %v1297_v58 = vpop.f32.mrf.mxu1  ;;  %5454 = vmatmul.msk.bf16.gmra.mxu0 %vm482_vm2, %v1917_v6  ;;  %10462 = vst [vmem:[#allocation127_spill] sm:$0xff] %v8025_v22  ;;  %v1553_v14 = vmul.f32 %v8025_v22, %v7271_v59 }
 0x1e7   :  { %v1322_v53 = vadd.f32 %v1297_v58, %v7774_v30  ;;  %v1617_v45 = vshll.u32 %v1561_v43, 16  ;;  %v2119_v58 = vmul.f32 %v7932_v47, %v6745_v36 }
 0x1e8   :  { %5494 = vmatmul.msk.bf16.gmra.mxu2 %vm482_vm2, %v2410_v12  ;;  %v8028_v7 = vpop.permute.xlu1 %2079  ;;  %v1562_v17 = vpack.c.bf16 %v1553_v14, %v1552_v4  ;;  %v8065_v4 = vpop.f32.mrf.mxu3 }
 0x1e9   :  { %v2118_v30 = vmul.f32 %v8028_v7, %v6728_v39  ;;  %v1619_v29 = vrot.slane %v1617_v45, 1  ;;  %v1809_v39 = vrot.slane %v7977_v38, 1  ;;  %10465 = vst [vmem:[#allocation130_spill] sm:$0xff] %v8065_v4 }
 0x1eb   :  { %v2130_v21 = vpack.c.bf16 %v2119_v58, %v2118_v30  ;;  %v1406_v52 = vpop.f32.mrf.mxu2  ;;  %v1620_v12 = vsel %vm850_vm4, %v1615_v41, %v1619_v29  ;;  %v8050_v57 = vsel %vm298_vm5, %v1807_v46, %v1809_v39  ;;  %v1621_v30 = vshrl.u32 %v1561_v43, 16 }
 0x1ec   :  { %v8040_v15 = vadd.f32 %v1406_v52, %v1320_v1  ;;  %5435 = vmatmul.msk.bf16.gmra.mxu3 %vm482_vm2, %v1620_v12  ;;  %10463 = vst [vmem:[#allocation128_spill] sm:$0xff] %v8050_v57  ;;  %v1625_v1 = vshll.u32 %v1562_v17, 16  ;;  %v1846_v38 = vmul.f32 %v8050_v57, %v6805_v42  ;;  %v2311_v46 = vrot.slane %v7975_v49, 7 }
 0x1ed   :  { %5474 = vmatmul.msk.bf16.gmra.mxu1 %vm482_vm2, %v2130_v21  ;;  %v1623_v52 = vor.u32 %v1621_v30, %v1619_v29  ;;  %v10466_v57 = vrot.slane %v7916_v33, 7  ;;  %v8085_v33 = vpop.f32.mrf.mxu0 }
 0x1ee   :  { %v8045_v36 = vpop.f32.mrf.mxu1  ;;  %v1627_v12 = vrot.slane %v1625_v1, 1 }
 0x1f0   :  { %v1628_v4 = vsel %vm850_vm4, %v1623_v52, %v1627_v12 }
 0x1f1   :  { %v8047_v63 = vpop.permute.xlu1 %1778 }
 0x1f2   :  { %v10252_v6 = vrot.slane %v8047_v63, 1 }
 0x1f3   :  { %v8053_v56 = vpop.f32.mrf.mxu2 }
 0x1f4   :  { %v8058_v45 = vsel %vm298_vm5, %v1809_v39, %v10252_v6  ;;  %v1554_v6 = vmul.f32 0.0, %v1519_v32 }
 0x1f5   :  { %10464 = vst [vmem:[#allocation129_spill] sm:$0xff] %v8058_v45  ;;  %v1847_v58 = vmul.f32 %v8058_v45, %v6807_v13  ;;  %v8073_v45 = vsel %vm770_vm3, %v10466_v57, %v2311_v46 }
 0x1f6   :  { %v1302_v41 = vpop.f32.mrf.mxu1  ;;  %10467 = vst [vmem:[#allocation131_spill] sm:$0xff] %v8073_v45  ;;  %v2348_v29 = vmul.f32 %v8073_v45, %v6807_v13 }
 0x1f7   :  { %v1857_v14 = vpack.c.bf16 %v1847_v58, %v1846_v38  ;;  %v1324_v21 = vadd.f32 %v1302_v41, %v7890_v51  ;;  %v8100_v41 = vpop.f32.mrf.mxu3 }
 0x1f9   :  { %v1919_v22 = vshrl.u32 %v1857_v14, 16  ;;  %v1922_v39 = vshll.u32 %v1857_v14, 16  ;;  %v2411_v14 = vshrl.u32 %v7984_v60, 16  ;;  %v8120_v60 = vpop.f32.mrf.mxu0 }
 0x1fa   :  { %v8068_v0 = vpop.permute.xlu1 %2280 }
 0x1fb   :  { %v10256_v49 = vrot.slane %v8068_v0, 7  ;;  %v1411_v43 = vpop.f32.mrf.mxu2  ;;  %v1921_v38 = vrot.slane %v1919_v22, 3  ;;  %v1924_v51 = vrot.slane %v1922_v39, 4  ;;  %v1563_v22 = vpack.c.bf16 %v1554_v6, %v1554_v6 }
 0x1fc   :  { %v8077_v58 = vadd.f32 %v1411_v43, %v1322_v53  ;;  %5436 = vmatmul.msk.bf16.gmra.mxu3 %vm482_vm2, %v1628_v4  ;;  %v8102_v4 = vpop.permute.xlu2 %2091 }
 0x1fd   :  { %v8083_v32 = vsel %vm770_vm3, %v2311_v46, %v10256_v49  ;;  %v8093_v53 = vor.u32 %v1924_v51, %v1921_v38  ;;  %10470 = vst [vmem:[#allocation134_spill] sm:$0xff] %v8102_v4  ;;  %v8107_v39 = vshll.u32 %v1563_v22, 16  ;;  %v2121_v38 = vmul.f32 %v8102_v4, %v6805_v42 }
 0x1fe   :  { %10468 = vst [vmem:[#allocation132_spill] sm:$0xff] %v8083_v32  ;;  %v2349_v57 = vmul.f32 %v8083_v32, %v6877_v19  ;;  %v8091_v1 = vpop.f32.mrf.mxu1  ;;  %v2413_v51 = vor.u32 %v2411_v14, %v8009_v44 }
 0x1ff   :  { %10469 = vst [vmem:[#allocation133_spill] sm:$0xff] %v8091_v1  ;;  %v1926_v46 = vsel %vm556_vm6, %v8011_v20, %v8093_v53  ;;  %v10259_v32 = vrot.slane %v8107_v39, 1 }
 0x200   :  { %v8095_v30 = vpack.c.bf16 %v2349_v57, %v2348_v29  ;;  %5455 = vmatmul.msk.bf16.gmra.mxu0 %vm482_vm2, %v1926_v46  ;;  %10471 = vst [vmem:[#allocation135_spill] sm:$0xff] %v8107_v39  ;;  %v1629_v57 = vshrl.u32 %v1562_v17, 16  ;;  %v8131_v17 = vpop.f32.mrf.mxu3 }
 0x202   :  { %v2415_v52 = vshll.u32 %v8095_v30, 16  ;;  %v1631_v42 = vor.u32 %v1629_v57, %v1627_v12  ;;  %v2284_v57 = vpop.permute.xlu0 %2283 }
 0x203   :  { %v8109_v43 = vpop.f32.mrf.mxu2  ;;  %v8111_v6 = vpop.permute.xlu1 %2087 }
 0x204   :  { %10472 = vst [vmem:[#allocation136_spill] sm:$0xff] %v8111_v6  ;;  %v2120_v20 = vmul.f32 %v8111_v6, %v10447_v37  ;;  %v8118_v29 = vrot.slane %v2415_v52, 1  ;;  %v5909_v37 = vld [vmem:[%s10101_s5 + $0x38] sm:$0xff]  ;;  %v1785_v44 = vpop.permute.xlu2 %1784 }
 0x205   :  { %2685 = vmatpush.bf16.msra.mxu3 %v5909_v37  ;;  %v1815_v14 = vrot.slane %v1785_v44, 1  ;;  %v8155_v37 = vpop.f32.mrf.mxu0  ;;  %v5905_v6 = vld [vmem:[%s10101_s5 + $0x18] sm:$0xff] }
 0x206   :  { %v2131_v46 = vpack.c.bf16 %v2121_v38, %v2120_v20  ;;  %v1307_v22 = vpop.f32.mrf.mxu1  ;;  %v2418_v49 = vsel %vm850_vm4, %v2413_v51, %v8118_v29  ;;  %v1636_v38 = vsel %vm850_vm4, %v1631_v42, %v10259_v32  ;;  %2854 = vmatpush.bf16.msrb.mxu0 %v5905_v6 }
 0x207   :  { %v1326_v45 = vadd.f32 %v1307_v22, %v7963_v31  ;;  %5495 = vmatmul.msk.bf16.gmra.mxu2 %vm482_vm2, %v2418_v49  ;;  %v5908_v31 = vld [vmem:[%s10101_s5 + $0x30] sm:$0xff]  ;;  %v1850_v32 = vmul.f32 0.0, %v1815_v14 }
 0x208   :  { %5475 = vmatmul.msk.bf16.gmra.mxu1 %vm482_vm2, %v2131_v46  ;;  %v10475_v46 = vrot.slane %v8047_v63, 1  ;;  %v2315_v63 = vrot.slane %v2284_v57, 7  ;;  %v8166_v39 = vpop.f32.mrf.mxu3 }
 0x209   :  { %2686 = vmatpush.bf16.msra.mxu3 %v5908_v31 }
 0x20b   :  { %v1416_v52 = vpop.f32.mrf.mxu2 }
 0x20c   :  { %v8139_v12 = vadd.f32 %v1416_v52, %v1324_v21  ;;  %v1782_v49 = vpop.permute.xlu1 %1781  ;;  %5437 = vmatmul.msk.bf16.gmra.mxu3 %vm482_vm2, %v1636_v38  ;;  %v5907_v21 = vld [vmem:[%s10101_s5 + $0x28] sm:$0xff]  ;;  %v8197_v6 = vpop.permute.xlu2 %2095 }
 0x20d   :  { %v1813_v20 = vrot.slane %v1782_v49, 1  ;;  %2687 = vmatpush.bf16.msra.mxu3 %v5907_v21  ;;  %v5906_v49 = vld [vmem:[%s10101_s5 + $0x20] sm:$0xff] }
 0x20e   :  { %10473 = vst [vmem:[#allocation137_spill] sm:$0xff] %v8139_v12  ;;  %v8142_v51 = vpop.f32.mrf.mxu1 }
 0x20f   :  { %10474 = vst [vmem:[#allocation138_spill] sm:$0xff] %v8142_v51  ;;  %v8147_v22 = vsel %vm298_vm5, %v10475_v46, %v1813_v20  ;;  %v8150_v42 = vsel %vm298_vm5, %v1813_v20, %v1815_v14 }
 0x210   :  { %10476 = vst [vmem:[#allocation139_spill] sm:$0xff] %v8147_v22  ;;  %v1848_v44 = vmul.f32 %v8147_v22, %v6877_v19  ;;  %v1849_v52 = vmul.f32 %v8150_v42, %v7271_v59  ;;  %v10479_v22 = vrot.slane %v8068_v0, 7 }
 0x211   :  { %10477 = vst [vmem:[#allocation140_spill] sm:$0xff] %v8150_v42  ;;  %2688 = vmatpush.bf16.msra.mxu3 %v5906_v49 }
 0x212   :  { %v1858_v38 = vpack.c.bf16 %v1849_v52, %v1848_v44  ;;  %v8171_v42 = vsel %vm770_vm3, %v10479_v22, %v2315_v63 }
 0x213   :  { %v8161_v31 = vpop.f32.mrf.mxu2  ;;  %10480 = vst [vmem:[#allocation142_spill] sm:$0xff] %v8171_v42  ;;  %v2350_v0 = vmul.f32 %v8171_v42, %v7271_v59 }
 0x214   :  { %10478 = vst [vmem:[#allocation141_spill] sm:$0xff] %v8161_v31  ;;  %v1928_v20 = vshrl.u32 %v1858_v38, 16  ;;  %v1931_v46 = vshll.u32 %v1858_v38, 16  ;;  %v8178_v38 = vpop.f32.mrf.mxu0 }
 0x215   :  { %v2287_v4 = vpop.permute.xlu1 %2286 }
 0x216   :  { %v2317_v57 = vrot.slane %v2287_v4, 7  ;;  %v8173_v21 = vpop.f32.mrf.mxu1  ;;  %v1930_v44 = vrot.slane %v1928_v20, 3  ;;  %v1933_v52 = vrot.slane %v1931_v46, 4  ;;  %v1859_v4 = vpack.c.bf16 %v1850_v32, %v1850_v32  ;;  %v5904_v20 = vld [vmem:[%s10101_s5 + $0x10] sm:$0xff]  ;;  %v5913_v32 = vld [vmem:[%s10101_s5 + $0x58] sm:$0xff] }
 0x217   :  { %2855 = vmatpush.bf16.msrb.mxu0 %v5904_v20  ;;  %3053 = vmatpush.bf16.msra.mxu1 %v5913_v32  ;;  %v8218_v20 = vpop.f32.mrf.mxu3  ;;  %v5912_v32 = vld [vmem:[%s10101_s5 + $0x50] sm:$0xff] }
 0x218   :  { %v2318_v14 = vsel %vm770_vm3, %v2315_v63, %v2317_v57  ;;  %v8181_v51 = vor.u32 %v1933_v52, %v1930_v44  ;;  %v1940_v42 = vshll.u32 %v1859_v4, 16 }
 0x219   :  { %v8185_v22 = vmul.f32 0.0, %v2318_v14  ;;  %v1937_v14 = vshrl.u32 %v1859_v4, 16 }
 0x21a   :  { %v1935_v49 = vsel %vm556_vm6, %v8093_v53, %v8181_v51  ;;  %v2419_v53 = vshrl.u32 %v8095_v30, 16  ;;  %v2122_v30 = vmul.f32 %v8197_v6, %v6807_v13  ;;  %v1942_v47 = vrot.slane %v1940_v42, 4 }
 0x21b   :  { %10481 = vst [vmem:[#allocation143_spill] sm:$0xff] %v8185_v22  ;;  %v8194_v46 = vpack.c.bf16 %v8185_v22, %v2350_v0  ;;  %v1421_v63 = vpop.f32.mrf.mxu2  ;;  %5456 = vmatmul.msk.bf16.gmra.mxu0 %vm482_vm2, %v1935_v49  ;;  %v5917_v49 = vld [vmem:[%s10101_s5 + $0x78] sm:$0xff]  ;;  %v1939_v12 = vrot.slane %v1937_v14, 3  ;;  %3054 = vmatpush.bf16.msra.mxu1 %v5912_v32 }
 0x21c   :  { %v8199_v44 = vadd.f32 %v1421_v63, %v1326_v45  ;;  %v5903_v45 = vld [vmem:[%s10101_s5 + $0x8] sm:$0xff]  ;;  %v2421_v63 = vor.u32 %v2419_v53, %v8118_v29  ;;  %3280 = vmatpush.bf16.msrb.mxu2 %v5917_v49  ;;  %v8227_v13 = vpop.f32.mrf.mxu0  ;;  %v5916_v29 = vld [vmem:[%s10101_s5 + $0x70] sm:$0xff]  ;;  %v2352_v53 = vmul.f32 0.0, %v2317_v57 }
 0x21d   :  { %v2423_v52 = vshll.u32 %v8194_v46, 16  ;;  %2856 = vmatpush.bf16.msrb.mxu0 %v5903_v45  ;;  %v10483_v14 = vld [vmem:[#allocation55_spill] sm:$0xff]  ;;  %v1722_v45 = vadd.f32 %v8100_v41, %v7797_v2  ;;  %v8246_v49 = vor.u32 %v1942_v47, %v1939_v12  ;;  %v5910_v2 = vld [vmem:[%s10101_s5 + $0x40] sm:$0xff]  ;;  %v2108_v41 = vpop.permute.xlu0 %2107 }
 0x21e   :  { %10482 = vst [vmem:[#allocation144_spill] sm:$0xff] %v8199_v44  ;;  %v8206_v0 = vpop.f32.mrf.mxu1  ;;  %v8208_v22 = vpop.permute.xlu1 %2099  ;;  %v685_v42 = vadd.f32 %v7654_v55, %v10483_v14  ;;  %v2361_v57 = vpack.c.bf16 %v2352_v53, %v2352_v53  ;;  %v5914_v47 = vld [vmem:[%s10101_s5 + $0x60] sm:$0xff] }
 0x21f   :  { %v2123_v4 = vmul.f32 %v8208_v22, %v6877_v19  ;;  %v2425_v44 = vrot.slane %v2423_v52, 1  ;;  %v5902_v19 = vld [vmem:[%s10101_s5] sm:$0xff]  ;;  %10484 = vst [vmem:[#allocation55_spill] sm:$0xff] %v8246_v49  ;;  %v8253_v55 = vpop.f32.mrf.mxu3  ;;  %v2030_v32 = vadd.f32 %v8120_v60, %v1722_v45 }
 0x220   :  { %3281 = vmatpush.bf16.msrb.mxu2 %v5916_v29  ;;  %v6168_v60 = vld [vmem:[%s10107_s11] sm:$0xff] }
 0x221   :  { %v2132_v31 = vpack.c.bf16 %v2123_v4, %v2122_v30  ;;  %v2426_v1 = vsel %vm850_vm4, %v2421_v63, %v2425_v44  ;;  %2857 = vmatpush.bf16.msrb.mxu0 %v5902_v19  ;;  %v10485_v4 = vld [vmem:[#allocation81_spill] sm:$0xff]  ;;  %v8264_v19 = vpop.permute.xlu2 %2103  ;;  %v2224_v29 = vadd.f32 %v8173_v21, %v2030_v32  ;;  %v8272_v14 = vperm.slane %v6168_v60, 1  ;;  %v10488_v21 = vld [vmem:[#allocation62_spill] sm:$0xff]  ;;  %v10489_v32 = vld [vmem:[#allocation67_spill] sm:$0xff] }
 0x222   :  { %5496 = vmatmul.msk.bf16.gmra.mxu2 %vm482_vm2, %v2426_v1  ;;  %v5911_v1 = vld [vmem:[%s10101_s5 + $0x48] sm:$0xff]  ;;  %v1005_v63 = vadd.f32 %v10485_v4, %v685_v42  ;;  %10486 = vst [vmem:[#allocation81_spill] sm:$0xff] %v8264_v19  ;;  %v1944_v42 = vsel %vm556_vm6, %v8181_v51, %v8246_v49  ;;  %v695_v60 = vadd.f32 %v7853_v40, %v10489_v32 }
 0x223   :  { %v8236_v52 = vpop.f32.mrf.mxu2  ;;  %5476 = vmatmul.msk.bf16.gmra.mxu1 %vm482_vm2, %v2132_v31  ;;  %v5915_v31 = vld [vmem:[%s10101_s5 + $0x68] sm:$0xff]  ;;  %v2124_v51 = vmul.f32 %v8264_v19, %v7271_v59 }
 0x224   :  { %3055 = vmatpush.bf16.msra.mxu1 %v5911_v1  ;;  %3282 = vmatpush.bf16.msrb.mxu2 %v5915_v31  ;;  %v1313_v12 = vadd.f32 %v7715_v11, %v1005_v63  ;;  %v8267_v53 = vpop.f32.mrf.mxu0  ;;  %v2427_v1 = vshrl.u32 %v8194_v46, 16  ;;  %v8278_v11 = vshll.u32 %v2361_v57, 16  ;;  %v690_v31 = vadd.f32 %v7764_v27, %v10488_v21  ;;  %v10491_v27 = vld [vmem:[#allocation73_spill] sm:$0xff] }
 0x226   :  { %v8248_v30 = vpop.f32.mrf.mxu1  ;;  %10487 = vst [vmem:[#allocation145_spill] sm:$0xff] %v8278_v11  ;;  %v1427_v4 = vadd.f32 %v7834_v23, %v1313_v12  ;;  %v2429_v46 = vor.u32 %v2427_v1, %v2425_v44  ;;  %v700_v23 = vadd.f32 %v7905_v10, %v10491_v27  ;;  %v10492_v12 = vld [vmem:[#allocation84_spill] sm:$0xff]  ;;  %v10269_v40 = vrot.slane %v8278_v11, 1 }
 0x227   :  { %v10494_v1 = vld [vmem:[#allocation92_spill] sm:$0xff]  ;;  %v1694_v21 = vpop.f32.mrf.mxu3 }
 0x228   :  { %3056 = vmatpush.bf16.msra.mxu1 %v5910_v2  ;;  %3283 = vmatpush.bf16.msrb.mxu2 %v5914_v47  ;;  %v8288_v2 = vmul.f32 0.0, %v2108_v41  ;;  %v1723_v57 = vadd.f32 %v8131_v17, %v1427_v4  ;;  %v705_v47 = vadd.f32 %v8085_v33, %v10492_v12  ;;  %v10493_v41 = vld [vmem:[#allocation91_spill] sm:$0xff]  ;;  %v1009_v17 = vadd.f32 %v10494_v1, %v695_v60  ;;  %v10495_v33 = vld [vmem:[#allocation10_spill] sm:$0xff]  ;;  %v10499_v1 = vld [vmem:[#allocation21_spill] sm:$0xff] }
 0x229   :  { %v1007_v44 = vadd.f32 %v10493_v41, %v690_v31  ;;  %v2434_v10 = vsel %vm850_vm4, %v2429_v46, %v10269_v40  ;;  %v10497_v31 = vld [vmem:[#allocation43_spill] sm:$0xff] }
 0x22a   :  { %10490 = vst [vmem:[#allocation62_spill] sm:$0xff] %v8288_v2 }
 0x22b   :  { %v2480_v45 = vpop.f32.mrf.mxu2  ;;  %5457 = vmatmul.msk.bf16.gmra.mxu0 %vm482_vm2, %v1944_v42 }
 0x22c   :  { %v2520_v63 = vadd.f32 %v2480_v45, %v2224_v29  ;;  %v2031_v29 = vadd.f32 %v8155_v37, %v1723_v57  ;;  %v2133_v45 = vpack.c.bf16 %v8288_v2, %v2124_v51  ;;  %v1315_v51 = vadd.f32 %v7804_v18, %v1007_v44  ;;  %v2002_v27 = vpop.f32.mrf.mxu0 }
 0x22d   :  { %v1011_v57 = vadd.f32 %v7618_v54, %v700_v23  ;;  %v10500_v23 = vld [vmem:[#allocation45_spill] sm:$0xff] }
 0x22e   :  { %v2537_v42 = vadd.f32 %v8272_v14, %v2520_v63  ;;  %v8292_v49 = vpop.f32.mrf.mxu1  ;;  %v2225_v4 = vadd.f32 %v8206_v0, %v2031_v29  ;;  %v10496_v63 = vld [vmem:[#allocation20_spill] sm:$0xff]  ;;  %v1317_v0 = vadd.f32 %v7867_v61, %v1009_v17  ;;  %v10498_v29 = vld [vmem:[#allocation15_spill] sm:$0xff] }
 0x22f   :  { %v1319_v18 = vadd.f32 %v7930_v25, %v1011_v57  ;;  %v10557_v57 = vld [vmem:[#allocation38_spill] sm:$0xff] }
 0x230   :  { %v8300_v59 = vmax.f32 %v2537_v42, 0.0  ;;  %v1013_v42 = vadd.f32 %v7722_v28, %v705_v47  ;;  %v1724_v47 = vadd.f32 %v8166_v39, %v7861_v9  ;;  %v1431_v61 = vadd.f32 %v7949_v34, %v1317_v0 }
 0x231   :  { %v8333_v17 = vadd.f32 %v8007_v35, %v1319_v18 }
 0x232   :  { %5497 = vmatmul.msk.bf16.gmra.mxu2 %vm482_vm2, %v2434_v10  ;;  %v2600_v37 = vmul.f32 %v8300_v59, %v10495_v33  ;;  %v2899_v32 = vmul.f32 %v8300_v59, %v10496_v63  ;;  %v3114_v60 = vmul.f32 %v8300_v59, %v10497_v31  ;;  %v1429_v33 = vadd.f32 %v7878_v48, %v1315_v51 }
 0x233   :  { %v2482_v46 = vpop.f32.mrf.mxu2  ;;  %5477 = vmatmul.msk.bf16.gmra.mxu1 %vm482_vm2, %v2133_v45  ;;  %v1321_v54 = vadd.f32 %v7991_v16, %v1013_v42  ;;  %v2032_v16 = vadd.f32 %v8178_v38, %v1724_v47  ;;  %v1726_v45 = vadd.f32 %v8253_v55, %v7918_v26  ;;  %v1727_v34 = vadd.f32 %v1694_v21, %v1431_v61  ;;  %v10504_v42 = vld [vmem:[#allocation79_spill] sm:$0xff] }
 0x234   :  { %v2521_v12 = vadd.f32 %v2482_v46, %v2225_v4  ;;  %v2615_v41 = vpack.c.bf16 %v2600_v37, %v10498_v29  ;;  %v2915_v10 = vpack.c.bf16 %v2899_v32, %v10499_v1  ;;  %v3130_v28 = vpack.c.bf16 %v3114_v60, %v10500_v23  ;;  %v10502_v60 = vld [vmem:[#allocation44_spill] sm:$0xff] }
 0x235   :  { %v8336_v48 = vadd.f32 %v8053_v56, %v1321_v54  ;;  %v1725_v25 = vadd.f32 %v8218_v20, %v1429_v33  ;;  %v2034_v56 = vadd.f32 %v8267_v53, %v1726_v45  ;;  %v2226_v31 = vadd.f32 %v8248_v30, %v2032_v16  ;;  %v10501_v20 = vld [vmem:[#allocation42_spill] sm:$0xff]  ;;  %v2005_v54 = vpop.f32.mrf.mxu0 }
 0x236   :  { %v2538_v44 = vadd.f32 %v8272_v14, %v2521_v12  ;;  %5522 = vmatmul.msk.bf16.vlgmr.msra.gmra.mxu3 %vm2656_vm7, %v2615_v41  ;;  %v2194_v39 = vpop.f32.mrf.mxu1  ;;  %v2936_v4 = vshll.u32 %v2915_v10, 16  ;;  %v3149_v35 = vshrl.u32 %v3130_v28, 16  ;;  %v3152_v32 = vshll.u32 %v3130_v28, 16  ;;  %v10505_v12 = vld [vmem:[#allocation72_spill] sm:$0xff]  ;;  %v10506_v33 = vld [vmem:[#allocation82_spill] sm:$0xff] }
 0x237   :  { %v2033_v37 = vadd.f32 %v8227_v13, %v1725_v25  ;;  %v2569_v38 = vmul.f32 %v8300_v59, %v10501_v20  ;;  %v2035_v55 = vadd.f32 %v2002_v27, %v1727_v34  ;;  %v10503_v13 = vld [vmem:[#allocation71_spill] sm:$0xff]  ;;  %v3681_v46 = vmul.f32 %v8300_v59, %v10504_v42 }
 0x238   :  { %v8342_v9 = vmax.f32 %v2538_v44, 0.0  ;;  %v3471_v21 = vmul.f32 %v8300_v59, %v10503_v13  ;;  %v2938_v30 = vrot.slane %v2936_v4, 1  ;;  %v8360_v1 = vrot.slane %v3149_v35, 3 }
 0x239   :  { %v1697_v63 = vpop.f32.mrf.mxu3  ;;  %v8362_v27 = vrot.slane %v3152_v32, 4  ;;  %v2227_v61 = vadd.f32 %v8292_v49, %v2033_v37  ;;  %v2228_v25 = vadd.f32 %v2194_v39, %v2034_v56  ;;  %v2934_v16 = vshrl.u32 %v2915_v10, 16  ;;  %v10508_v32 = vld [vmem:[#allocation22_spill] sm:$0xff]  ;;  %v10510_v56 = vld [vmem:[#allocation9_spill] sm:$0xff] }
 0x23a   :  { %v2570_v26 = vmul.f32 %v8342_v9, %v10502_v60  ;;  %v3472_v29 = vmul.f32 %v8342_v9, %v10505_v12  ;;  %v1728_v41 = vadd.f32 %v1697_v63, %v7988_v24  ;;  %v3682_v18 = vmul.f32 %v8342_v9, %v10506_v33  ;;  %v10507_v63 = vld [vmem:[#allocation8_spill] sm:$0xff] }
 0x23b   :  { %v2485_v51 = vpop.f32.mrf.mxu2  ;;  %v2601_v35 = vmul.f32 %v8342_v9, %v10507_v63  ;;  %v2939_v20 = vor.u32 %v2938_v30, %v2934_v16  ;;  %v3155_v49 = vor.u32 %v8362_v27, %v8360_v1  ;;  %v8393_v30 = vmul.f32 %v8342_v9, %v7511_v5  ;;  %v10513_v12 = vld [vmem:[#allocation96_spill] sm:$0xff] }
 0x23c   :  { %v2522_v53 = vadd.f32 %v2485_v51, %v2226_v31  ;;  %v2584_v0 = vpack.c.bf16 %v2570_v26, %v2569_v38  ;;  %v8367_v44 = vpack.c.bf16 %v3472_v29, %v3471_v21  ;;  %v3697_v45 = vpack.c.bf16 %v3682_v18, %v3681_v46  ;;  %v10509_v38 = vld [vmem:[#allocation40_spill] sm:$0xff]  ;;  %v10511_v51 = vld [vmem:[#allocation23_spill] sm:$0xff]  ;;  %v10512_v46 = vld [vmem:[#allocation41_spill] sm:$0xff] }
 0x23d   :  { %v2900_v31 = vmul.f32 %v8342_v9, %v10508_v32  ;;  %v3115_v60 = vmul.f32 %v8342_v9, %v10509_v38  ;;  %v8386_v21 = vadd.f32 %v2005_v54, %v1728_v41  ;;  %v4044_v29 = vmul.f32 %v8342_v9, %v10513_v12  ;;  %v10514_v27 = vld [vmem:[#allocation48_spill] sm:$0xff] }
 0x23e   :  { %v2539_v23 = vadd.f32 %v8272_v14, %v2522_v53  ;;  %v2731_v28 = vshrl.u32 %v2584_v0, 16  ;;  %v2734_v47 = vshll.u32 %v2584_v0, 16  ;;  %v2196_v39 = vpop.f32.mrf.mxu1  ;;  %v3507_v0 = vshll.u32 %v8367_v44, 16  ;;  %v10516_v32 = vld [vmem:[#allocation80_spill] sm:$0xff] }
 0x23f   :  { %v8400_v54 = vadd.f32 %v2196_v39, %v2035_v55  ;;  %v3505_v5 = vshrl.u32 %v8367_v44, 16  ;;  %v3715_v16 = vshrl.u32 %v3697_v45, 16 }
 0x240   :  { %v8370_v24 = vmax.f32 %v2539_v23, 0.0  ;;  %v2733_v4 = vrot.slane %v2731_v28, 3  ;;  %v2736_v34 = vrot.slane %v2734_v47, 4 }
 0x241   :  { %v1699_v10 = vpop.f32.mrf.mxu3 }
 0x242   :  { %v8380_v37 = vor.u32 %v2736_v34, %v2733_v4  ;;  %v2602_v26 = vmul.f32 %v8370_v24, %v10510_v56  ;;  %v2901_v13 = vmul.f32 %v8370_v24, %v10511_v51  ;;  %v3116_v53 = vmul.f32 %v8370_v24, %v10512_v46 }
 0x243   :  { %v2487_v42 = vpop.f32.mrf.mxu2  ;;  %v1729_v23 = vadd.f32 %v1699_v10, %v8333_v17  ;;  %v3718_v4 = vshll.u32 %v3697_v45, 16  ;;  %v8411_v17 = vmul.f32 %v8370_v24, %v10516_v32  ;;  %v3509_v10 = vrot.slane %v3507_v0, 1 }
 0x244   :  { %v2523_v1 = vadd.f32 %v2487_v42, %v2227_v61  ;;  %v2738_v33 = vsel %vm556_vm6, %v10514_v27, %v8380_v37  ;;  %v2616_v41 = vpack.c.bf16 %v2602_v26, %v2601_v35  ;;  %v2916_v18 = vpack.c.bf16 %v2901_v13, %v2900_v31  ;;  %v10515_v35 = vld [vmem:[#allocation53_spill] sm:$0xff]  ;;  %v2007_v31 = vpop.f32.mrf.mxu0  ;;  %v10518_v42 = vld [vmem:[#allocation54_spill] sm:$0xff] }
 0x245   :  { %5546 = vmatmul.msk.bf16.vlgmr.msrb.gmra.mxu0 %vm2656_vm7, %v2738_v33  ;;  %v3131_v28 = vpack.c.bf16 %v3116_v53, %v3115_v60  ;;  %v2571_v55 = vmul.f32 %v8370_v24, %v10515_v35  ;;  %v10517_v60 = vld [vmem:[#allocation76_spill] sm:$0xff]  ;;  %v8417_v45 = vadd.f32 %v2007_v31, %v1729_v23  ;;  %v10520_v33 = vld [vmem:[#allocation77_spill] sm:$0xff]  ;;  %v3720_v23 = vrot.slane %v3718_v4, 4 }
 0x246   :  { %v2540_v47 = vadd.f32 %v8272_v14, %v2523_v1  ;;  %5523 = vmatmul.msk.bf16.gmra.mxu3 %vm2656_vm7, %v2616_v41  ;;  %v2941_v61 = vshll.u32 %v2916_v18, 16  ;;  %v3473_v39 = vmul.f32 %v8370_v24, %v10517_v60  ;;  %v10519_v53 = vld [vmem:[#allocation88_spill] sm:$0xff]  ;;  %v3717_v1 = vrot.slane %v3715_v16, 3 }
 0x247   :  { %v3157_v34 = vshrl.u32 %v3131_v28, 16  ;;  %v3160_v63 = vshll.u32 %v3131_v28, 16  ;;  %v3683_v12 = vmul.f32 %v8370_v24, %v10519_v53  ;;  %v10521_v28 = vld [vmem:[#allocation98_spill] sm:$0xff]  ;;  %v2945_v32 = vshrl.u32 %v2916_v18, 16 }
 0x248   :  { %v8413_v38 = vmax.f32 %v2540_v47, 0.0  ;;  %v2943_v44 = vrot.slane %v2941_v61, 1  ;;  %v4045_v47 = vmul.f32 %v8370_v24, %v10521_v28  ;;  %v3510_v60 = vor.u32 %v3509_v10, %v3505_v5  ;;  %v10524_v5 = vld [vmem:[#allocation25_spill] sm:$0xff] }
 0x249   :  { %v3159_v56 = vrot.slane %v3157_v34, 3  ;;  %v3162_v26 = vrot.slane %v3160_v63, 4  ;;  %v10522_v63 = vld [vmem:[#allocation90_spill] sm:$0xff]  ;;  %v10556_v34 = vld [vmem:[#allocation17_spill] sm:$0xff] }
 0x24a   :  { %v2944_v13 = vsel %vm850_vm4, %v2939_v20, %v2943_v44  ;;  %v2572_v46 = vmul.f32 %v8413_v38, %v10518_v42  ;;  %v3474_v41 = vmul.f32 %v8413_v38, %v10520_v33  ;;  %v3684_v16 = vmul.f32 %v8413_v38, %v10522_v63 }
 0x24b   :  { %v2490_v27 = vpop.f32.mrf.mxu2  ;;  %5578 = vmatmul.msk.bf16.vlgmr.msra.gmra.mxu1 %vm2656_vm7, %v2944_v13  ;;  %v8427_v0 = vor.u32 %v3162_v26, %v3159_v56  ;;  %v8443_v53 = vpack.c.bf16 %v4045_v47, %v4044_v29  ;;  %v2902_v10 = vmul.f32 %v8413_v38, %v10524_v5  ;;  %v2947_v33 = vor.u32 %v2945_v32, %v2943_v44 }
 0x24c   :  { %v2524_v20 = vadd.f32 %v2490_v27, %v2228_v25  ;;  %v2585_v61 = vpack.c.bf16 %v2572_v46, %v2571_v55  ;;  %v3488_v31 = vpack.c.bf16 %v3474_v41, %v3473_v39  ;;  %v3698_v25 = vpack.c.bf16 %v3684_v16, %v3683_v12  ;;  %v10523_v55 = vld [vmem:[#allocation5_spill] sm:$0xff] }
 0x24d   :  { %v3164_v35 = vsel %vm556_vm6, %v3155_v49, %v8427_v0  ;;  %v2603_v13 = vmul.f32 %v8413_v38, %v10523_v55  ;;  %v3721_v46 = vor.u32 %v3720_v23, %v3717_v1  ;;  %v10526_v1 = vld [vmem:[#allocation26_spill] sm:$0xff]  ;;  %v10527_v23 = vld [vmem:[#allocation49_spill] sm:$0xff] }
 0x24e   :  { %v2541_v56 = vadd.f32 %v8272_v14, %v2524_v20  ;;  %5610 = vmatmul.msk.bf16.vlgmr.msrb.gmra.mxu2 %vm2656_vm7, %v3164_v35  ;;  %v2740_v4 = vshrl.u32 %v2585_v61, 16  ;;  %v2743_v26 = vshll.u32 %v2585_v61, 16  ;;  %v3512_v42 = vshll.u32 %v3488_v31, 16  ;;  %v10525_v61 = vld [vmem:[#allocation6_spill] sm:$0xff] }
 0x24f   :  { %v2199_v49 = vpop.f32.mrf.mxu1  ;;  %v3723_v28 = vshrl.u32 %v3698_v25, 16  ;;  %v3726_v20 = vshll.u32 %v3698_v25, 16  ;;  %v10528_v35 = vld [vmem:[#allocation50_spill] sm:$0xff] }
 0x250   :  { %v8445_v27 = vmax.f32 %v2541_v56, 0.0  ;;  %v2742_v18 = vrot.slane %v2740_v4, 3  ;;  %v2745_v39 = vrot.slane %v2743_v26, 4  ;;  %v3514_v41 = vrot.slane %v3512_v42, 1 }
 0x251   :  { %v3117_v56 = vmul.f32 %v8413_v38, %v10528_v35  ;;  %v3725_v32 = vrot.slane %v3723_v28, 3  ;;  %v3728_v4 = vrot.slane %v3726_v20, 4  ;;  %v10529_v28 = vld [vmem:[#allocation102_spill] sm:$0xff] }
 0x252   :  { %v8449_v12 = vor.u32 %v2745_v39, %v2742_v18  ;;  %v2604_v63 = vmul.f32 %v8445_v27, %v10525_v61  ;;  %v2903_v29 = vmul.f32 %v8445_v27, %v10526_v1  ;;  %v3118_v47 = vmul.f32 %v8445_v27, %v10527_v23 }
 0x253   :  { %v2492_v16 = vpop.f32.mrf.mxu2  ;;  %v8460_v44 = vsel %vm850_vm4, %v3510_v60, %v3514_v41  ;;  %v8467_v5 = vor.u32 %v3728_v4, %v3725_v32  ;;  %v8471_v60 = vmul.f32 %v8413_v38, %v7519_v62  ;;  %v4046_v20 = vmul.f32 %v8413_v38, %v10529_v28  ;;  %v10533_v28 = vld [vmem:[#allocation86_spill] sm:$0xff] }
 0x254   :  { %v2525_v26 = vadd.f32 %v2492_v16, %v8400_v54  ;;  %v2747_v25 = vsel %vm556_vm6, %v8380_v37, %v8449_v12  ;;  %v2617_v55 = vpack.c.bf16 %v2604_v63, %v2603_v13  ;;  %v2917_v42 = vpack.c.bf16 %v2903_v29, %v2902_v10  ;;  %v1702_v18 = vpop.f32.mrf.mxu3 }
 0x255   :  { %5547 = vmatmul.msk.bf16.gmra.mxu0 %vm2656_vm7, %v2747_v25  ;;  %v3132_v39 = vpack.c.bf16 %v3118_v47, %v3117_v56  ;;  %v2230_v54 = vadd.f32 %v2199_v49, %v8386_v21  ;;  %v3516_v13 = vshrl.u32 %v3488_v31, 16  ;;  %v8480_v1 = vsel %vm556_vm6, %v3721_v46, %v8467_v5  ;;  %v10530_v49 = vld [vmem:[#allocation58_spill] sm:$0xff]  ;;  %v10531_v31 = vld [vmem:[#allocation85_spill] sm:$0xff] }
 0x256   :  { %v2542_v61 = vadd.f32 %v8272_v14, %v2525_v26  ;;  %5524 = vmatmul.msk.bf16.gmra.mxu3 %vm2656_vm7, %v2617_v55  ;;  %v2949_v37 = vshll.u32 %v2917_v42, 16  ;;  %v4077_v62 = vshrl.u32 %v8443_v53, 16  ;;  %v8486_v23 = vadd.f32 %v1702_v18, %v8040_v15  ;;  %v10532_v26 = vld [vmem:[#allocation59_spill] sm:$0xff] }
 0x257   :  { %v3166_v10 = vshrl.u32 %v3132_v39, 16  ;;  %v3169_v63 = vshll.u32 %v3132_v39, 16  ;;  %v2573_v47 = vmul.f32 %v8445_v27, %v10530_v49  ;;  %v3475_v56 = vmul.f32 %v8445_v27, %v10531_v31  ;;  %v2201_v32 = vpop.f32.mrf.mxu1 }
 0x258   :  { %v8483_v29 = vmax.f32 %v2542_v61, 0.0  ;;  %v2951_v21 = vrot.slane %v2949_v37, 1  ;;  %v8494_v46 = vmul.f32 %v8445_v27, %v7726_v8  ;;  %v2953_v25 = vshrl.u32 %v2917_v42, 16  ;;  %v10534_v37 = vld [vmem:[#allocation93_spill] sm:$0xff]  ;;  %v10542_v42 = vld [vmem:[#allocation56_spill] sm:$0xff] }
 0x259   :  { %v3168_v16 = vrot.slane %v3166_v10, 3  ;;  %v3171_v35 = vrot.slane %v3169_v63, 4  ;;  %v3518_v55 = vor.u32 %v3516_v13, %v3514_v41  ;;  %v3685_v8 = vmul.f32 %v8445_v27, %v10534_v37  ;;  %v10535_v10 = vld [vmem:[#allocation100_spill] sm:$0xff]  ;;  %v10536_v41 = vld [vmem:[#allocation94_spill] sm:$0xff] }
 0x25a   :  { %v2952_v4 = vsel %vm850_vm4, %v2947_v33, %v2951_v21  ;;  %v2574_v15 = vmul.f32 %v8483_v29, %v10532_v26  ;;  %v3476_v61 = vmul.f32 %v8483_v29, %v10533_v28  ;;  %v4047_v63 = vmul.f32 %v8445_v27, %v10535_v10 }
 0x25b   :  { %v2495_v18 = vpop.f32.mrf.mxu2  ;;  %5579 = vmatmul.msk.bf16.gmra.mxu1 %vm2656_vm7, %v2952_v4  ;;  %v8500_v39 = vor.u32 %v3171_v35, %v3168_v16  ;;  %v3686_v13 = vmul.f32 %v8483_v29, %v10536_v41  ;;  %v2231_v16 = vadd.f32 %v2201_v32, %v8417_v45  ;;  %v4079_v32 = vshll.u32 %v8443_v53, 16  ;;  %v10538_v41 = vld [vmem:[#allocation28_spill] sm:$0xff] }
 0x25c   :  { %v2526_v33 = vadd.f32 %v2495_v18, %v2230_v54  ;;  %v2586_v49 = vpack.c.bf16 %v2574_v15, %v2573_v47  ;;  %v3489_v31 = vpack.c.bf16 %v3476_v61, %v3475_v56  ;;  %v10537_v18 = vld [vmem:[#allocation12_spill] sm:$0xff]  ;;  %v8522_v45 = vpack.c.bf16 %v4047_v63, %v4046_v20  ;;  %v10540_v63 = vld [vmem:[#allocation27_spill] sm:$0xff] }
 0x25d   :  { %v3173_v35 = vsel %vm556_vm6, %v8427_v0, %v8500_v39  ;;  %v3699_v15 = vpack.c.bf16 %v3686_v13, %v3685_v8  ;;  %v2605_v28 = vmul.f32 %v8483_v29, %v10537_v18  ;;  %v1704_v8 = vpop.f32.mrf.mxu3  ;;  %v10539_v18 = vld [vmem:[#allocation11_spill] sm:$0xff]  ;;  %v3119_v51 = vmul.f32 %v8483_v29, %v10542_v42 }
 0x25e   :  { %v2543_v26 = vadd.f32 %v8272_v14, %v2526_v33  ;;  %5611 = vmatmul.msk.bf16.gmra.mxu2 %vm2656_vm7, %v3173_v35  ;;  %v2749_v54 = vshrl.u32 %v2586_v49, 16  ;;  %v2752_v47 = vshll.u32 %v2586_v49, 16  ;;  %v3520_v37 = vshll.u32 %v3489_v31, 16 }
 0x25f   :  { %v3732_v10 = vshrl.u32 %v3699_v15, 16  ;;  %v2904_v33 = vmul.f32 %v8483_v29, %v10538_v41  ;;  %v2955_v35 = vor.u32 %v2953_v25, %v2951_v21  ;;  %v3735_v49 = vshll.u32 %v3699_v15, 16 }
 0x260   :  { %v8525_v0 = vmax.f32 %v2543_v26, 0.0  ;;  %v2751_v56 = vrot.slane %v2749_v54, 3  ;;  %v2754_v61 = vrot.slane %v2752_v47, 4  ;;  %v3522_v40 = vrot.slane %v3520_v37, 1  ;;  %v10541_v26 = vld [vmem:[#allocation57_spill] sm:$0xff] }
 0x261   :  { %v3734_v25 = vrot.slane %v3732_v10, 3  ;;  %v3737_v15 = vrot.slane %v3735_v49, 4 }
 0x262   :  { %v8529_v13 = vor.u32 %v2754_v61, %v2751_v56  ;;  %v2606_v20 = vmul.f32 %v8525_v0, %v10539_v18  ;;  %v2905_v4 = vmul.f32 %v8525_v0, %v10540_v63  ;;  %v3120_v54 = vmul.f32 %v8525_v0, %v10541_v26 }
 0x263   :  { %v2497_v47 = vpop.f32.mrf.mxu2  ;;  %v8540_v21 = vsel %vm850_vm4, %v3518_v55, %v3522_v40  ;;  %v2010_v37 = vpop.f32.mrf.mxu0  ;;  %v1731_v63 = vadd.f32 %v1704_v8, %v8336_v48  ;;  %v8549_v42 = vor.u32 %v3737_v15, %v3734_v25  ;;  %v3524_v55 = vshrl.u32 %v3489_v31, 16 }
 0x264   :  { %v2527_v56 = vadd.f32 %v2497_v47, %v2231_v16  ;;  %v2756_v61 = vsel %vm556_vm6, %v8449_v12, %v8529_v13  ;;  %v2618_v41 = vpack.c.bf16 %v2606_v20, %v2605_v28  ;;  %v8545_v18 = vpack.c.bf16 %v2905_v4, %v2904_v33  ;;  %v10543_v20 = vld [vmem:[#allocation60_spill] sm:$0xff]  ;;  %v10544_v47 = vld [vmem:[#allocation97_spill] sm:$0xff] }
 0x265   :  { %5548 = vmatmul.msk.bf16.gmra.mxu0 %vm2656_vm7, %v2756_v61  ;;  %v3133_v26 = vpack.c.bf16 %v3120_v54, %v3119_v51  ;;  %v8556_v12 = vmul.f32 %v8483_v29, %v7615_v3  ;;  %v4081_v4 = vrot.slane %v4079_v32, 1  ;;  %v8561_v48 = vsel %vm556_vm6, %v8467_v5, %v8549_v42 }
 0x266   :  { %v2544_v10 = vadd.f32 %v8272_v14, %v2527_v56  ;;  %5525 = vmatmul.msk.bf16.gmra.mxu3 %vm2656_vm7, %v2618_v41  ;;  %v2957_v16 = vshll.u32 %v8545_v18, 16  ;;  %v4084_v51 = vshll.u32 %v8522_v45, 16  ;;  %v2038_v31 = vadd.f32 %v2010_v37, %v8486_v23  ;;  %v10545_v37 = vld [vmem:[#allocation61_spill] sm:$0xff]  ;;  %v10546_v41 = vld [vmem:[#allocation103_spill] sm:$0xff] }
 0x267   :  { %v3175_v28 = vshrl.u32 %v3133_v26, 16  ;;  %v3178_v33 = vshll.u32 %v3133_v26, 16  ;;  %v2575_v3 = vmul.f32 %v8525_v0, %v10543_v20  ;;  %v3477_v25 = vmul.f32 %v8525_v0, %v10544_v47 }
 0x268   :  { %v8565_v49 = vmax.f32 %v2544_v10, 0.0  ;;  %v8567_v8 = vrot.slane %v2957_v16, 1  ;;  %v8575_v5 = vmul.f32 %v8525_v0, %v7820_v50  ;;  %v3526_v61 = vor.u32 %v3524_v55, %v3522_v40  ;;  %v10548_v55 = vld [vmem:[#allocation104_spill] sm:$0xff] }
 0x269   :  { %v3177_v54 = vrot.slane %v3175_v28, 3  ;;  %v3180_v32 = vrot.slane %v3178_v33, 4  ;;  %v3687_v26 = vmul.f32 %v8525_v0, %v10546_v41  ;;  %v4082_v50 = vor.u32 %v4081_v4, %v4077_v62  ;;  %v10549_v62 = vld [vmem:[#allocation109_spill] sm:$0xff]  ;;  %v10550_v41 = vld [vmem:[#allocation7_spill] sm:$0xff] }
 0x26a   :  { %v2204_v15 = vpop.f32.mrf.mxu1  ;;  %v2960_v23 = vsel %vm850_vm4, %v2955_v35, %v8567_v8  ;;  %v2576_v56 = vmul.f32 %v8565_v49, %v10545_v37  ;;  %v8588_v33 = vrot.slane %v4084_v51, 1  ;;  %v10547_v35 = vld [vmem:[#allocation99_spill] sm:$0xff]  ;;  %v4048_v4 = vmul.f32 %v8483_v29, %v10549_v62 }
 0x26b   :  { %v2232_v10 = vadd.f32 %v2204_v15, %v2038_v31  ;;  %v2500_v16 = vpop.f32.mrf.mxu2  ;;  %5580 = vmatmul.msk.bf16.gmra.mxu1 %vm2656_vm7, %v2960_v23  ;;  %v8584_v28 = vor.u32 %v3180_v32, %v3177_v54  ;;  %v3478_v47 = vmul.f32 %v8565_v49, %v10547_v35  ;;  %v3688_v31 = vmul.f32 %v8565_v49, %v10548_v55  ;;  %v2012_v51 = vpop.f32.mrf.mxu0 }
 0x26c   :  { %v2587_v20 = vpack.c.bf16 %v2576_v56, %v2575_v3 }
 0x26d   :  { %v2528_v15 = vadd.f32 %v2500_v16, %v2232_v10  ;;  %v3182_v54 = vsel %vm556_vm6, %v8500_v39, %v8584_v28  ;;  %v8604_v23 = vpack.c.bf16 %v3478_v47, %v3477_v25  ;;  %v3700_v37 = vpack.c.bf16 %v3688_v31, %v3687_v26  ;;  %v10552_v16 = vld [vmem:[#allocation107_spill] sm:$0xff] }
 0x26e   :  { %5612 = vmatmul.msk.bf16.gmra.mxu2 %vm2656_vm7, %v3182_v54  ;;  %v2758_v3 = vshrl.u32 %v2587_v20, 16  ;;  %v2761_v32 = vshll.u32 %v2587_v20, 16  ;;  %v2607_v10 = vmul.f32 %v8565_v49, %v10550_v41  ;;  %v8611_v39 = vsel %vm850_vm4, %v4082_v50, %v8588_v33  ;;  %v10553_v54 = vld [vmem:[#allocation37_spill] sm:$0xff]  ;;  %v10555_v31 = vld [vmem:[#allocation63_spill] sm:$0xff] }
 0x26f   :  { %v2545_v56 = vadd.f32 %v8272_v14, %v2528_v15  ;;  %10551 = vst [vmem:[#allocation67_spill] sm:$0xff] %v8611_v39  ;;  %v4049_v35 = vmul.f32 %v8525_v0, %v10552_v16  ;;  %v2906_v20 = vmul.f32 %v8565_v49, %v10553_v54  ;;  %v3528_v25 = vshll.u32 %v8604_v23, 16 }
 0x270   :  { %v2760_v55 = vrot.slane %v2758_v3, 3  ;;  %v2763_v62 = vrot.slane %v2761_v32, 4  ;;  %v2039_v26 = vadd.f32 %v2012_v51, %v1731_v63  ;;  %v3121_v15 = vmul.f32 %v8565_v49, %v10555_v31  ;;  %v10558_v51 = vld [vmem:[#allocation31_spill] sm:$0xff] }
 0x271   :  { %v8618_v47 = vmax.f32 %v2545_v56, 0.0  ;;  %v3741_v41 = vshrl.u32 %v3700_v37, 16  ;;  %v8624_v40 = vrot.slane %v3528_v25, 1  ;;  %v3744_v16 = vshll.u32 %v3700_v37, 16 }
 0x272   :  { %v2206_v53 = vpop.f32.mrf.mxu1  ;;  %v8622_v50 = vor.u32 %v2763_v62, %v2760_v55  ;;  %v8626_v3 = vpack.c.bf16 %v4049_v35, %v4048_v4  ;;  %v2961_v62 = vshrl.u32 %v8545_v18, 16  ;;  %v3532_v2 = vshrl.u32 %v8604_v23, 16 }
 0x273   :  { %10554 = vst [vmem:[#allocation73_spill] sm:$0xff] %v8618_v47  ;;  %v2233_v32 = vadd.f32 %v2206_v53, %v2039_v26  ;;  %v2608_v54 = vmul.f32 %v8618_v47, %v10556_v34  ;;  %v2907_v63 = vmul.f32 %v8618_v47, %v10557_v57  ;;  %v3122_v56 = vmul.f32 %v8618_v47, %v10558_v51  ;;  %v2502_v31 = vpop.f32.mrf.mxu2 }
 0x274   :  { %v2765_v55 = vsel %vm556_vm6, %v8529_v13, %v8622_v50  ;;  %v8639_v37 = vsel %vm850_vm4, %v3526_v61, %v8624_v40  ;;  %v3743_v4 = vrot.slane %v3741_v41, 3  ;;  %v3746_v25 = vrot.slane %v3744_v16, 4 }
 0x275   :  { %v2529_v53 = vadd.f32 %v2502_v31, %v2233_v32  ;;  %5549 = vmatmul.msk.bf16.gmra.mxu0 %vm2656_vm7, %v2765_v55  ;;  %v2619_v34 = vpack.c.bf16 %v2608_v54, %v2607_v10  ;;  %v8642_v35 = vpack.c.bf16 %v2907_v63, %v2906_v20  ;;  %v3134_v57 = vpack.c.bf16 %v3122_v56, %v3121_v15  ;;  %v10559_v31 = vld [vmem:[#allocation115_spill] sm:$0xff]  ;;  %v10561_v20 = vld [vmem:[#allocation34_spill] sm:$0xff]  ;;  %v1707_v56 = vpop.f32.mrf.mxu3 }
 0x276   :  { %v2963_v41 = vor.u32 %v2961_v62, %v8567_v8  ;;  %v3747_v32 = vor.u32 %v3746_v25, %v3743_v4  ;;  %v8651_v10 = vmul.f32 %v8565_v49, %v10559_v31  ;;  %v8655_v15 = vmul.f32 %v8618_v47, %v10561_v20  ;;  %v10565_v25 = vld [vmem:[#allocation29_spill] sm:$0xff] }
 0x277   :  { %v2546_v26 = vadd.f32 %v8272_v14, %v2529_v53  ;;  %5526 = vmatmul.msk.bf16.gmra.mxu3 %vm2656_vm7, %v2619_v34  ;;  %v2965_v13 = vshll.u32 %v8642_v35, 16  ;;  %v3184_v51 = vshrl.u32 %v3134_v57, 16  ;;  %v3187_v61 = vshll.u32 %v3134_v57, 16  ;;  %v10564_v57 = vld [vmem:[#allocation30_spill] sm:$0xff]  ;;  %v10568_v31 = vld [vmem:[#allocation105_spill] sm:$0xff] }
 0x278   :  { %10560 = vst [vmem:[#allocation84_spill] sm:$0xff] %v8651_v10  ;;  %v8663_v55 = vsel %vm556_vm6, %v8549_v42, %v3747_v32  ;;  %v4092_v4 = vshll.u32 %v8626_v3, 16  ;;  %v2577_v62 = vmul.f32 %v8618_v47, %v10564_v57  ;;  %v10566_v42 = vld [vmem:[#allocation110_spill] sm:$0xff]  ;;  %v3689_v20 = vmul.f32 %v8618_v47, %v10568_v31 }
 0x279   :  { %10562 = vst [vmem:[#allocation91_spill] sm:$0xff] %v8655_v15  ;;  %v8657_v18 = vmax.f32 %v2546_v26, 0.0  ;;  %v8659_v16 = vrot.slane %v2965_v13, 1  ;;  %v3186_v54 = vrot.slane %v3184_v51, 3  ;;  %v3189_v63 = vrot.slane %v3187_v61, 4  ;;  %v10567_v51 = vld [vmem:[#allocation111_spill] sm:$0xff] }
 0x27a   :  { %v3479_v13 = vmul.f32 %v8618_v47, %v10566_v42  ;;  %v4094_v31 = vrot.slane %v4092_v4, 1 }
 0x27b   :  { %10563 = vst [vmem:[#allocation92_spill] sm:$0xff] %v8657_v18  ;;  %v2968_v53 = vsel %vm850_vm4, %v2963_v41, %v8659_v16  ;;  %v8670_v34 = vor.u32 %v3189_v63, %v3186_v54  ;;  %v2578_v26 = vmul.f32 %v8657_v18, %v10565_v25  ;;  %v3480_v61 = vmul.f32 %v8657_v18, %v10567_v51 }
 0x27c   :  { %5581 = vmatmul.msk.bf16.gmra.mxu1 %vm2656_vm7, %v2968_v53  ;;  %v4088_v41 = vshrl.u32 %v8522_v45, 16  ;;  %v10569_v53 = vld [vmem:[#allocation106_spill] sm:$0xff] }
 0x27d   :  { %v3191_v54 = vsel %vm556_vm6, %v8584_v28, %v8670_v34  ;;  %v2588_v63 = vpack.c.bf16 %v2578_v26, %v2577_v62  ;;  %v3690_v25 = vmul.f32 %v8657_v18, %v10569_v53  ;;  %v8692_v42 = vpack.c.bf16 %v3480_v61, %v3479_v13 }
 0x27e   :  { %5613 = vmatmul.msk.bf16.gmra.mxu2 %vm2656_vm7, %v3191_v54  ;;  %v4090_v51 = vor.u32 %v4088_v41, %v8588_v33  ;;  %v2015_v54 = vpop.f32.mrf.mxu0  ;;  %v3534_v13 = vor.u32 %v3532_v2, %v8624_v40  ;;  %v10571_v33 = vld [vmem:[#allocation112_spill] sm:$0xff]  ;;  %v1732_v2 = vadd.f32 %v1707_v56, %v8077_v58 }
 0x27f   :  { %v2767_v8 = vshrl.u32 %v2588_v63, 16  ;;  %v2770_v45 = vshll.u32 %v2588_v63, 16  ;;  %v3701_v11 = vpack.c.bf16 %v3690_v25, %v3689_v20  ;;  %v3536_v28 = vshll.u32 %v8692_v42, 16  ;;  %v10572_v20 = vld [vmem:[#allocation113_spill] sm:$0xff] }
 0x280   :  { %v8698_v62 = vsel %vm850_vm4, %v4090_v51, %v4094_v31  ;;  %v4050_v4 = vmul.f32 %v8565_v49, %v10571_v33  ;;  %v4051_v23 = vmul.f32 %v8618_v47, %v10572_v20  ;;  %v1709_v51 = vpop.f32.mrf.mxu3  ;;  %v2040_v33 = vadd.f32 %v2015_v54, %v1732_v2 }
 0x281   :  { %10570 = vst [vmem:[#allocation10_spill] sm:$0xff] %v8698_v62  ;;  %v2769_v26 = vrot.slane %v2767_v8, 3  ;;  %v2772_v57 = vrot.slane %v2770_v45, 4  ;;  %v3750_v53 = vshrl.u32 %v3701_v11, 16  ;;  %v3753_v19 = vshll.u32 %v3701_v11, 16 }
 0x282   :  { %v8701_v61 = vrot.slane %v3536_v28, 1  ;;  %v8713_v11 = vpack.c.bf16 %v4051_v23, %v4050_v4 }
 0x283   :  { %v8707_v41 = vor.u32 %v2772_v57, %v2769_v26  ;;  %v3752_v63 = vrot.slane %v3750_v53, 3  ;;  %v3755_v25 = vrot.slane %v3753_v19, 4  ;;  %v4096_v19 = vshrl.u32 %v8626_v3, 16  ;;  %v10573_v26 = vld [vmem:[#allocation95_spill] sm:$0xff]  ;;  %v10574_v53 = vld [vmem:[#allocation114_spill] sm:$0xff] }
 0x284   :  { %v8711_v8 = vsel %vm850_vm4, %v3534_v13, %v8701_v61  ;;  %v4100_v57 = vshll.u32 %v8713_v11, 16  ;;  %v1015_v13 = vadd.f32 %v10574_v53, %v10573_v26  ;;  %v10580_v53 = vld [vmem:[#allocation69_spill] sm:$0xff] }
 0x285   :  { %v2209_v40 = vpop.f32.mrf.mxu1  ;;  %v2774_v45 = vsel %vm556_vm6, %v8622_v50, %v8707_v41  ;;  %v8719_v28 = vor.u32 %v3755_v25, %v3752_v63  ;;  %v4098_v56 = vor.u32 %v4096_v19, %v4094_v31  ;;  %v10578_v19 = vld [vmem:[#allocation16_spill] sm:$0xff] }
 0x286   :  { %5550 = vmatmul.msk.bf16.gmra.mxu0 %vm2656_vm7, %v2774_v45  ;;  %v4102_v4 = vrot.slane %v4100_v57, 1  ;;  %v1323_v50 = vadd.f32 %v8045_v36, %v1015_v13  ;;  %v2234_v20 = vadd.f32 %v2209_v40, %v2040_v33  ;;  %v2017_v45 = vpop.f32.mrf.mxu0  ;;  %v2609_v36 = vmul.f32 %v8657_v18, %v10578_v19  ;;  %v10579_v40 = vld [vmem:[#allocation46_spill] sm:$0xff]  ;;  %v10581_v33 = vld [vmem:[#allocation13_spill] sm:$0xff]  ;;  %v10588_v19 = vld [vmem:[#allocation116_spill] sm:$0xff] }
 0x287   :  { %v8728_v58 = vsel %vm556_vm6, %v3747_v32, %v8719_v28  ;;  %v2908_v57 = vmul.f32 %v8657_v18, %v10579_v40 }
 0x288   :  { %10575 = vst [vmem:[#allocation20_spill] sm:$0xff] %v8728_v58  ;;  %v8732_v63 = vsel %vm850_vm4, %v4098_v56, %v4102_v4  ;;  %v1437_v3 = vadd.f32 %v8109_v43, %v1323_v50  ;;  %v8736_v2 = vpop.f32.mrf.mxu3  ;;  %v3123_v43 = vmul.f32 %v8657_v18, %v10580_v53  ;;  %v10582_v56 = vld [vmem:[#allocation47_spill] sm:$0xff] }
 0x289   :  { %10576 = vst [vmem:[#allocation43_spill] sm:$0xff] %v8732_v63  ;;  %v2969_v63 = vshrl.u32 %v8642_v35, 16 }
 0x28a   :  { %v2505_v23 = vpop.f32.mrf.mxu2  ;;  %v1733_v62 = vadd.f32 %v1709_v51, %v1437_v3  ;;  %v5921_v3 = vld [vmem:[%s10101_s5 + $0x98] sm:$0xff] }
 0x28b   :  { %v2530_v25 = vadd.f32 %v2505_v23, %v2234_v20  ;;  %v10583_v20 = vld [vmem:[#allocation68_spill] sm:$0xff]  ;;  %3410 = vmatpush.bf16.msrb.mxu3 %v5921_v3  ;;  %v4104_v3 = vshrl.u32 %v8713_v11, 16 }
 0x28c   :  { %v2041_v26 = vadd.f32 %v2017_v45, %v1733_v62  ;;  %v10585_v45 = vld [vmem:[#allocation120_spill] sm:$0xff] }
 0x28d   :  { %v2547_v54 = vadd.f32 %v8272_v14, %v2530_v25  ;;  %v2211_v32 = vpop.f32.mrf.mxu1  ;;  %v8757_v25 = vmul.f32 %v8657_v18, %v8028_v7  ;;  %v3540_v7 = vshrl.u32 %v8692_v42, 16 }
 0x28e   :  { %v2235_v13 = vadd.f32 %v2211_v32, %v2041_v26  ;;  %v10587_v32 = vld [vmem:[#allocation70_spill] sm:$0xff] }
 0x28f   :  { %v8738_v31 = vmax.f32 %v2547_v54, 0.0  ;;  %10584 = vst [vmem:[#allocation21_spill] sm:$0xff] %v8757_v25  ;;  %v4052_v26 = vmul.f32 %v8657_v18, %v10587_v32 }
 0x291   :  { %10577 = vst [vmem:[#allocation15_spill] sm:$0xff] %v8738_v31  ;;  %v2610_v51 = vmul.f32 %v8738_v31, %v10581_v33  ;;  %v2909_v50 = vmul.f32 %v8738_v31, %v10582_v56  ;;  %v3124_v62 = vmul.f32 %v8738_v31, %v10583_v20  ;;  %v8761_v54 = vmul.f32 %v8738_v31, %v10585_v45 }
 0x292   :  { %v2507_v23 = vpop.f32.mrf.mxu2  ;;  %v4053_v40 = vmul.f32 %v8738_v31, %v10588_v19 }
 0x293   :  { %10586 = vst [vmem:[#allocation45_spill] sm:$0xff] %v8761_v54  ;;  %v2531_v53 = vadd.f32 %v2507_v23, %v2235_v13  ;;  %v2620_v33 = vpack.c.bf16 %v2610_v51, %v2609_v36  ;;  %v8767_v56 = vpack.c.bf16 %v2909_v50, %v2908_v57  ;;  %v3135_v20 = vpack.c.bf16 %v3124_v62, %v3123_v43  ;;  %v1714_v62 = vpop.f32.mrf.mxu3 }
 0x294   :  { %v8772_v39 = vpack.c.bf16 %v4053_v40, %v4052_v26  ;;  %v2971_v36 = vor.u32 %v2969_v63, %v8659_v16  ;;  %v10590_v16 = vld [vmem:[#allocation32_spill] sm:$0xff] }
 0x295   :  { %v2548_v45 = vadd.f32 %v8272_v14, %v2531_v53  ;;  %5527 = vmatmul.msk.bf16.gmra.mxu3 %vm2656_vm7, %v2620_v33  ;;  %v2973_v32 = vshll.u32 %v8767_v56, 16  ;;  %v3193_v19 = vshrl.u32 %v3135_v20, 16  ;;  %v3196_v13 = vshll.u32 %v3135_v20, 16  ;;  %v10591_v33 = vld [vmem:[#allocation33_spill] sm:$0xff] }
 0x296   :  { %v4108_v57 = vshll.u32 %v8772_v39, 16  ;;  %v2579_v63 = vmul.f32 %v8738_v31, %v10590_v16  ;;  %v10595_v16 = vld [vmem:[#allocation123_spill] sm:$0xff]  ;;  %v4112_v47 = vshrl.u32 %v8772_v39, 16 }
 0x297   :  { %v8779_v43 = vmax.f32 %v2548_v45, 0.0  ;;  %v8781_v35 = vrot.slane %v2973_v32, 1  ;;  %v3195_v51 = vrot.slane %v3193_v19, 3  ;;  %v3198_v50 = vrot.slane %v3196_v13, 4  ;;  %v10592_v45 = vld [vmem:[#allocation117_spill] sm:$0xff] }
 0x298   :  { %v2020_v23 = vpop.f32.mrf.mxu0  ;;  %v8784_v26 = vrot.slane %v4108_v57, 1  ;;  %v3481_v32 = vmul.f32 %v8738_v31, %v10592_v45  ;;  %v4106_v19 = vor.u32 %v4104_v3, %v4102_v4 }
 0x299   :  { %10589 = vst [vmem:[#allocation42_spill] sm:$0xff] %v8779_v43  ;;  %v2976_v40 = vsel %vm850_vm4, %v2971_v36, %v8781_v35  ;;  %v8788_v53 = vor.u32 %v3198_v50, %v3195_v51  ;;  %v2580_v20 = vmul.f32 %v8779_v43, %v10591_v33  ;;  %v10593_v36 = vld [vmem:[#allocation118_spill] sm:$0xff]  ;;  %v3692_v33 = vmul.f32 %v8779_v43, %v10595_v16  ;;  %v10597_v51 = vld [vmem:[#allocation137_spill] sm:$0xff] }
 0x29a   :  { %5582 = vmatmul.msk.bf16.gmra.mxu1 %vm2656_vm7, %v2976_v40  ;;  %v3482_v57 = vmul.f32 %v8779_v43, %v10593_v36  ;;  %v10594_v50 = vld [vmem:[#allocation122_spill] sm:$0xff]  ;;  %v8811_v4 = vsel %vm850_vm4, %v4106_v19, %v8784_v26 }
 0x29b   :  { %v3200_v11 = vsel %vm556_vm6, %v8670_v34, %v8788_v53  ;;  %v2589_v13 = vpack.c.bf16 %v2580_v20, %v2579_v63  ;;  %v3691_v40 = vmul.f32 %v8738_v31, %v10594_v50  ;;  %10596 = vst [vmem:[#allocation44_spill] sm:$0xff] %v8811_v4  ;;  %v1734_v50 = vadd.f32 %v8736_v2, %v10597_v51 }
 0x29c   :  { %5614 = vmatmul.msk.bf16.gmra.mxu2 %vm2656_vm7, %v3200_v11  ;;  %v8813_v63 = vpack.c.bf16 %v3482_v57, %v3481_v32  ;;  %v10598_v57 = vld [vmem:[#allocation101_spill] sm:$0xff] }
 0x29d   :  { %v2776_v34 = vshrl.u32 %v2589_v13, 16  ;;  %v2779_v3 = vshll.u32 %v2589_v13, 16  ;;  %v3702_v20 = vpack.c.bf16 %v3692_v33, %v3691_v40  ;;  %v3542_v13 = vor.u32 %v3540_v7, %v8701_v61  ;;  %v10599_v40 = vld [vmem:[#allocation119_spill] sm:$0xff] }
 0x29e   :  { %v3544_v11 = vshll.u32 %v8813_v63, 16  ;;  %v1017_v33 = vadd.f32 %v10599_v40, %v10598_v57  ;;  %v2042_v42 = vadd.f32 %v2020_v23, %v1734_v50  ;;  %v10603_v23 = vld [vmem:[#allocation130_spill] sm:$0xff] }
 0x29f   :  { %v2778_v45 = vrot.slane %v2776_v34, 3  ;;  %v2781_v36 = vrot.slane %v2779_v3, 4  ;;  %v3759_v54 = vshrl.u32 %v3702_v20, 16  ;;  %v3762_v31 = vshll.u32 %v3702_v20, 16  ;;  %v1717_v34 = vpop.f32.mrf.mxu3  ;;  %v10601_v20 = vld [vmem:[#allocation133_spill] sm:$0xff] }
 0x2a0   :  { %v2022_v25 = vpop.f32.mrf.mxu0  ;;  %v2214_v16 = vpop.f32.mrf.mxu1  ;;  %v8822_v32 = vrot.slane %v3544_v11, 1 }
 0x2a1   :  { %v8819_v19 = vor.u32 %v2781_v36, %v2778_v45  ;;  %v3761_v3 = vrot.slane %v3759_v54, 3  ;;  %v3764_v4 = vrot.slane %v3762_v31, 4  ;;  %v1325_v45 = vadd.f32 %v10601_v20, %v1017_v33  ;;  %v5920_v31 = vld [vmem:[%s10101_s5 + $0x90] sm:$0xff]  ;;  %v10602_v54 = vld [vmem:[#allocation108_spill] sm:$0xff] }
 0x2a2   :  { %v8831_v51 = vsel %vm850_vm4, %v3542_v13, %v8822_v32  ;;  %v2236_v61 = vadd.f32 %v2214_v16, %v2042_v42  ;;  %v1019_v11 = vadd.f32 %v10603_v23, %v10602_v54  ;;  %3411 = vmatpush.bf16.msrb.mxu3 %v5920_v31  ;;  %v10606_v16 = vld [vmem:[#allocation138_spill] sm:$0xff]  ;;  %v10607_v20 = vld [vmem:[#allocation144_spill] sm:$0xff]  ;;  %v10609_v31 = vld [vmem:[#allocation51_spill] sm:$0xff] }
 0x2a3   :  { %v2783_v2 = vsel %vm556_vm6, %v8707_v41, %v8819_v19  ;;  %10600 = vst [vmem:[#allocation71_spill] sm:$0xff] %v8831_v51  ;;  %v8835_v7 = vor.u32 %v3764_v4, %v3761_v3  ;;  %v10604_v41 = vld [vmem:[#allocation141_spill] sm:$0xff]  ;;  %v1736_v54 = vadd.f32 %v1717_v34, %v10607_v20 }
 0x2a4   :  { %5551 = vmatmul.msk.bf16.gmra.mxu0 %vm2656_vm7, %v2783_v2  ;;  %v1439_v50 = vadd.f32 %v10604_v41, %v1325_v45  ;;  %v1327_v4 = vadd.f32 %v10606_v16, %v1019_v11  ;;  %v2977_v11 = vshrl.u32 %v8767_v56, 16  ;;  %v10610_v41 = vld [vmem:[#allocation74_spill] sm:$0xff]  ;;  %v10612_v16 = vld [vmem:[#allocation52_spill] sm:$0xff] }
 0x2a5   :  { %v2510_v36 = vpop.f32.mrf.mxu2  ;;  %v8846_v13 = vsel %vm556_vm6, %v8719_v28, %v8835_v7  ;;  %v5919_v28 = vld [vmem:[%s10101_s5 + $0x88] sm:$0xff]  ;;  %v5918_v56 = vld [vmem:[%s10101_s5 + $0x80] sm:$0xff] }
 0x2a6   :  { %v2532_v57 = vadd.f32 %v2510_v36, %v2236_v61  ;;  %10605 = vst [vmem:[#allocation79_spill] sm:$0xff] %v8846_v13  ;;  %v1735_v40 = vadd.f32 %v1714_v62, %v1439_v50  ;;  %v1441_v2 = vadd.f32 %v8236_v52, %v1327_v4  ;;  %v10608_v61 = vld [vmem:[#allocation14_spill] sm:$0xff]  ;;  %v2910_v62 = vmul.f32 %v8779_v43, %v10609_v31 }
 0x2a7   :  { %v2611_v36 = vmul.f32 %v8779_v43, %v10608_v61  ;;  %v3125_v52 = vmul.f32 %v8779_v43, %v10610_v41  ;;  %v1719_v50 = vpop.f32.mrf.mxu3  ;;  %3412 = vmatpush.bf16.msrb.mxu3 %v5919_v28  ;;  %v10614_v61 = vld [vmem:[#allocation136_spill] sm:$0xff]  ;;  %v10617_v41 = vld [vmem:[#allocation78_spill] sm:$0xff] }
 0x2a8   :  { %v2549_v33 = vadd.f32 %v8272_v14, %v2532_v57  ;;  %v2025_v42 = vpop.f32.mrf.mxu0  ;;  %v2216_v3 = vpop.f32.mrf.mxu1  ;;  %v2043_v23 = vadd.f32 %v2022_v25, %v1735_v40  ;;  %v10611_v25 = vld [vmem:[#allocation18_spill] sm:$0xff]  ;;  %v10613_v40 = vld [vmem:[#allocation75_spill] sm:$0xff]  ;;  %v8875_v31 = vmul.f32 %v8779_v43, %v10614_v61  ;;  %v1737_v15 = vadd.f32 %v1719_v50, %v1441_v2 }
 0x2a9   :  { %v5925_v2 = vld [vmem:[%s10101_s5 + $0xb8] sm:$0xff] }
 0x2aa   :  { %v8852_v45 = vmax.f32 %v2549_v33, 0.0  ;;  %v2237_v34 = vadd.f32 %v2216_v3, %v2043_v23  ;;  %10615 = vst [vmem:[#allocation72_spill] sm:$0xff] %v8875_v31  ;;  %v10616_v3 = vld [vmem:[#allocation134_spill] sm:$0xff]  ;;  %3620 = vmatpush.bf16.msra.mxu0 %v5925_v2 }
 0x2ab   :  { %3413 = vmatpush.bf16.msrb.mxu3 %v5918_v56  ;;  %v10620_v56 = vld [vmem:[#allocation36_spill] sm:$0xff] }
 0x2ac   :  { %v2612_v57 = vmul.f32 %v8852_v45, %v10611_v25  ;;  %v2911_v4 = vmul.f32 %v8852_v45, %v10612_v16  ;;  %v3126_v33 = vmul.f32 %v8852_v45, %v10613_v40  ;;  %v8879_v23 = vmul.f32 %v8852_v45, %v10616_v3  ;;  %v10618_v16 = vld [vmem:[#allocation121_spill] sm:$0xff] }
 0x2ad   :  { %v2512_v20 = vpop.f32.mrf.mxu2  ;;  %v4054_v25 = vmul.f32 %v8779_v43, %v10617_v41  ;;  %v4055_v40 = vmul.f32 %v8852_v45, %v10618_v16 }
 0x2ae   :  { %v2533_v28 = vadd.f32 %v2512_v20, %v2237_v34  ;;  %v2621_v13 = vpack.c.bf16 %v2612_v57, %v2611_v36  ;;  %v2921_v51 = vpack.c.bf16 %v2911_v4, %v2910_v62  ;;  %v3136_v10 = vpack.c.bf16 %v3126_v33, %v3125_v52 }
 0x2af   :  { %v8887_v61 = vpack.c.bf16 %v4055_v40, %v4054_v25  ;;  %v2044_v34 = vadd.f32 %v2025_v42, %v1736_v54  ;;  %v2979_v36 = vor.u32 %v2977_v11, %v8781_v35  ;;  %v3548_v62 = vshrl.u32 %v8813_v63, 16  ;;  %v5924_v35 = vld [vmem:[%s10101_s5 + $0xb0] sm:$0xff] }
 0x2b0   :  { %v2550_v3 = vadd.f32 %v8272_v14, %v2533_v28  ;;  %v2219_v18 = vpop.f32.mrf.mxu1  ;;  %5528 = vmatmul.msk.bf16.gmra.mxu3 %vm2656_vm7, %v2621_v13  ;;  %v2981_v41 = vshll.u32 %v2921_v51, 16  ;;  %v3202_v43 = vshrl.u32 %v3136_v10, 16  ;;  %v3205_v16 = vshll.u32 %v3136_v10, 16  ;;  %v2027_v50 = vpop.f32.mrf.mxu0  ;;  %v10619_v10 = vld [vmem:[#allocation39_spill] sm:$0xff]  ;;  %3621 = vmatpush.bf16.msra.mxu0 %v5924_v35 }
 0x2b1   :  { %v4116_v39 = vshll.u32 %v8887_v61, 16  ;;  %v2238_v33 = vadd.f32 %v2219_v18, %v2044_v34  ;;  %v2581_v42 = vmul.f32 %v8852_v45, %v10619_v10  ;;  %v3550_v54 = vor.u32 %v3548_v62, %v8822_v32  ;;  %v5929_v28 = vld [vmem:[%s10101_s5 + $0xd8] sm:$0xff] }
 0x2b2   :  { %v8898_v52 = vmax.f32 %v2550_v3, 0.0  ;;  %v2983_v57 = vrot.slane %v2981_v41, 1  ;;  %v3204_v13 = vrot.slane %v3202_v43, 3  ;;  %v3207_v4 = vrot.slane %v3205_v16, 4  ;;  %v10621_v32 = vld [vmem:[#allocation124_spill] sm:$0xff]  ;;  %v10624_v62 = vld [vmem:[#allocation19_spill] sm:$0xff]  ;;  %3838 = vmatpush.bf16.msrb.mxu1 %v5929_v28 }
 0x2b3   :  { %v4114_v63 = vor.u32 %v4112_v47, %v8784_v26  ;;  %v8912_v18 = vrot.slane %v4116_v39, 1  ;;  %v2045_v25 = vadd.f32 %v2027_v50, %v1737_v15  ;;  %v3483_v47 = vmul.f32 %v8852_v45, %v10621_v32  ;;  %v10622_v26 = vld [vmem:[#allocation125_spill] sm:$0xff]  ;;  %v10623_v41 = vld [vmem:[#allocation128_spill] sm:$0xff] }
 0x2b4   :  { %v2984_v11 = vsel %vm850_vm4, %v2979_v36, %v2983_v57  ;;  %v8908_v20 = vor.u32 %v3207_v4, %v3204_v13  ;;  %v2582_v43 = vmul.f32 %v8898_v52, %v10620_v56  ;;  %v3484_v3 = vmul.f32 %v8898_v52, %v10622_v26  ;;  %v10625_v4 = vld [vmem:[#allocation129_spill] sm:$0xff] }
 0x2b5   :  { %v2515_v40 = vpop.f32.mrf.mxu2  ;;  %5583 = vmatmul.msk.bf16.gmra.mxu1 %vm2656_vm7, %v2984_v11  ;;  %v3693_v16 = vmul.f32 %v8852_v45, %v10623_v41  ;;  %v2613_v39 = vmul.f32 %v8898_v52, %v10624_v62  ;;  %v2985_v50 = vshrl.u32 %v2921_v51, 16  ;;  %v8939_v56 = vsel %vm850_vm4, %v4114_v63, %v8912_v18  ;;  %v5923_v32 = vld [vmem:[%s10101_s5 + $0xa8] sm:$0xff]  ;;  %v5932_v62 = vld [vmem:[%s10101_s5 + $0xf0] sm:$0xff] }
 0x2b6   :  { %v2534_v34 = vadd.f32 %v2515_v40, %v2238_v33  ;;  %v3209_v15 = vsel %vm556_vm6, %v8788_v53, %v8908_v20  ;;  %v2590_v36 = vpack.c.bf16 %v2582_v43, %v2581_v42  ;;  %v8932_v13 = vpack.c.bf16 %v3484_v3, %v3483_v47  ;;  %10626 = vst [vmem:[#allocation82_spill] sm:$0xff] %v8939_v56  ;;  %v10627_v40 = vld [vmem:[#allocation64_spill] sm:$0xff] }
 0x2b7   :  { %5615 = vmatmul.msk.bf16.gmra.mxu2 %vm2656_vm7, %v3209_v15  ;;  %v3694_v33 = vmul.f32 %v8898_v52, %v10625_v4  ;;  %v2912_v51 = vmul.f32 %v8898_v52, %v10627_v40  ;;  %v2987_v35 = vor.u32 %v2985_v50, %v2983_v57  ;;  %v5933_v47 = vld [vmem:[%s10101_s5 + $0xf8] sm:$0xff]  ;;  %3622 = vmatpush.bf16.msra.mxu0 %v5923_v32  ;;  %v5928_v57 = vld [vmem:[%s10101_s5 + $0xd0] sm:$0xff]  ;;  %v5922_v32 = vld [vmem:[%s10101_s5 + $0xa0] sm:$0xff] }
 0x2b8   :  { %v2551_v10 = vadd.f32 %v8272_v14, %v2534_v34  ;;  %v2221_v11 = vpop.f32.mrf.mxu1  ;;  %v2785_v53 = vshrl.u32 %v2590_v36, 16  ;;  %v2788_v42 = vshll.u32 %v2590_v36, 16  ;;  %v3552_v26 = vshll.u32 %v8932_v13, 16  ;;  %v10628_v34 = vld [vmem:[#allocation89_spill] sm:$0xff]  ;;  %3983 = vmatpush.bf16.msra.mxu2 %v5933_v47  ;;  %3839 = vmatpush.bf16.msrb.mxu1 %v5928_v57 }
 0x2b9   :  { %v2690_v43 = vpop.f32.mrf.mxu3  ;;  %v3703_v28 = vpack.c.bf16 %v3694_v33, %v3693_v16  ;;  %v3127_v15 = vmul.f32 %v8898_v52, %v10628_v34  ;;  %v2239_v36 = vadd.f32 %v2221_v11, %v2045_v25  ;;  %v10630_v25 = vld [vmem:[#allocation66_spill] sm:$0xff] }
 0x2ba   :  { %v8950_v3 = vmax.f32 %v2551_v10, 0.0  ;;  %v2787_v63 = vrot.slane %v2785_v53, 3  ;;  %v2790_v41 = vrot.slane %v2788_v42, 4  ;;  %v8960_v50 = vrot.slane %v3552_v26, 1  ;;  %v10629_v10 = vld [vmem:[#allocation24_spill] sm:$0xff]  ;;  %v10631_v42 = vld [vmem:[#allocation87_spill] sm:$0xff] }
 0x2bb   :  { %v3768_v16 = vshrl.u32 %v3703_v28, 16  ;;  %v3771_v4 = vshll.u32 %v3703_v28, 16  ;;  %v10632_v26 = vld [vmem:[#allocation35_spill] sm:$0xff]  ;;  %v5927_v28 = vld [vmem:[%s10101_s5 + $0xc8] sm:$0xff]  ;;  %3623 = vmatpush.bf16.msra.mxu0 %v5922_v32 }
 0x2bc   :  { %v8962_v33 = vor.u32 %v2790_v41, %v2787_v63  ;;  %v2614_v53 = vmul.f32 %v8950_v3, %v10629_v10  ;;  %v2913_v11 = vmul.f32 %v8950_v3, %v10630_v25  ;;  %v3128_v40 = vmul.f32 %v8950_v3, %v10631_v42  ;;  %3984 = vmatpush.bf16.msra.mxu2 %v5932_v62 }
 0x2bd   :  { %v2517_v47 = vpop.f32.mrf.mxu2  ;;  %v2583_v34 = vmul.f32 %v8950_v3, %v10632_v26  ;;  %v8980_v63 = vsel %vm850_vm4, %v3550_v54, %v8960_v50  ;;  %v3770_v41 = vrot.slane %v3768_v16, 3  ;;  %v3773_v10 = vrot.slane %v3771_v4, 4  ;;  %3840 = vmatpush.bf16.msrb.mxu1 %v5927_v28  ;;  %v10633_v28 = vld [vmem:[#allocation65_spill] sm:$0xff] }
 0x2be   :  { %v2535_v25 = vadd.f32 %v2517_v47, %v2239_v36  ;;  %v2792_v42 = vsel %vm556_vm6, %v8819_v19, %v8962_v33  ;;  %v2622_v58 = vpack.c.bf16 %v2614_v53, %v2613_v39  ;;  %v2922_v2 = vpack.c.bf16 %v2913_v11, %v2912_v51 }
 0x2bf   :  { %5552 = vmatmul.msk.bf16.gmra.mxu0 %vm2656_vm7, %v2792_v42  ;;  %v3137_v57 = vpack.c.bf16 %v3128_v40, %v3127_v15  ;;  %v2591_v26 = vpack.c.bf16 %v2583_v34, %v2583_v34  ;;  %v8986_v56 = vor.u32 %v3773_v10, %v3770_v41  ;;  %v3556_v36 = vshrl.u32 %v8932_v13, 16  ;;  %v5931_v13 = vld [vmem:[%s10101_s5 + $0xe8] sm:$0xff] }
 0x2c0   :  { %v2552_v31 = vadd.f32 %v8272_v14, %v2535_v25  ;;  %5529 = vmatmul.msk.bf16.gmra.mxu3 %vm2656_vm7, %v2622_v58  ;;  %v2989_v54 = vshll.u32 %v2922_v2, 16  ;;  %v8993_v19 = vmul.f32 %v8898_v52, %v8197_v6  ;;  %v2993_v58 = vshrl.u32 %v2922_v2, 16  ;;  %3985 = vmatpush.bf16.msra.mxu2 %v5931_v13  ;;  %v10634_v10 = vld [vmem:[#allocation126_spill] sm:$0xff] }
 0x2c1   :  { %v8995_v39 = vpop.f32.mrf.mxu3  ;;  %v3211_v51 = vshrl.u32 %v3137_v57, 16  ;;  %v3214_v15 = vshll.u32 %v3137_v57, 16  ;;  %v2794_v16 = vshrl.u32 %v2591_v26, 16  ;;  %v2797_v62 = vshll.u32 %v2591_v26, 16  ;;  %v5930_v57 = vld [vmem:[%s10101_s5 + $0xe0] sm:$0xff]  ;;  %v10636_v26 = vld [vmem:[#allocation127_spill] sm:$0xff] }
 0x2c2   :  { %v8997_v4 = vmax.f32 %v2552_v31, 0.0  ;;  %v2859_v14 = vpop.f32.mrf.mxu0  ;;  %v2991_v53 = vrot.slane %v2989_v54, 1  ;;  %v9005_v6 = vsel %vm556_vm6, %v8835_v7, %v8986_v56  ;;  %v5926_v31 = vld [vmem:[%s10101_s5 + $0xc0] sm:$0xff]  ;;  %v3485_v25 = vmul.f32 %v8950_v3, %v10634_v10 }
 0x2c3   :  { %v2860_v11 = vadd.f32 %v2859_v14, %v2690_v43  ;;  %v3213_v40 = vrot.slane %v3211_v51, 3  ;;  %v3216_v32 = vrot.slane %v3214_v15, 4  ;;  %v2796_v47 = vrot.slane %v2794_v16, 3  ;;  %v10635_v43 = vld [vmem:[#allocation83_spill] sm:$0xff]  ;;  %3841 = vmatpush.bf16.msrb.mxu1 %v5926_v31  ;;  %v10638_v14 = vld [vmem:[#allocation140_spill] sm:$0xff] }
 0x2c4   :  { %v2992_v34 = vsel %vm850_vm4, %v2987_v35, %v2991_v53  ;;  %v2799_v2 = vrot.slane %v2797_v62, 4  ;;  %v2914_v41 = vmul.f32 %v8997_v4, %v10633_v28  ;;  %v3129_v42 = vmul.f32 %v8997_v4, %v10635_v43  ;;  %v10637_v16 = vld [vmem:[#allocation139_spill] sm:$0xff]  ;;  %3986 = vmatpush.bf16.msra.mxu2 %v5930_v57 }
 0x2c5   :  { %5584 = vmatmul.msk.bf16.gmra.mxu1 %vm2656_vm7, %v2992_v34  ;;  %v3217_v7 = vor.u32 %v3216_v32, %v3213_v40  ;;  %v3486_v35 = vmul.f32 %v8997_v4, %v10636_v26  ;;  %v3695_v62 = vmul.f32 %v8950_v3, %v10637_v16  ;;  %v3696_v13 = vmul.f32 %v8997_v4, %v10638_v14 }
 0x2c6   :  { %v2800_v51 = vor.u32 %v2799_v2, %v2796_v47  ;;  %v2923_v15 = vpack.c.bf16 %v2914_v41, %v2914_v41  ;;  %v3138_v32 = vpack.c.bf16 %v3129_v42, %v3129_v42  ;;  %v9035_v28 = vmul.f32 %v8950_v3, %v8208_v22 }
 0x2c7   :  { %v3218_v40 = vsel %vm556_vm6, %v8908_v20, %v3217_v7  ;;  %v9031_v34 = vpack.c.bf16 %v3486_v35, %v3485_v25  ;;  %v2995_v31 = vor.u32 %v2993_v58, %v2991_v53  ;;  %v3704_v41 = vpack.c.bf16 %v3696_v13, %v3695_v62  ;;  %v10639_v13 = vld [vmem:[#allocation131_spill] sm:$0xff] }
 0x2c8   :  { %v3058_v10 = vpop.f32.mrf.mxu1  ;;  %5616 = vmatmul.msk.bf16.gmra.mxu2 %vm2656_vm7, %v3218_v40  ;;  %v2801_v47 = vsel %vm556_vm6, %v8962_v33, %v2800_v51  ;;  %v2997_v2 = vshll.u32 %v2923_v15, 16  ;;  %v3220_v16 = vshrl.u32 %v3138_v32, 16  ;;  %v3223_v20 = vshll.u32 %v3138_v32, 16 }
 0x2c9   :  { %v3098_v43 = vadd.f32 %v3058_v10, %v2860_v11  ;;  %v2695_v26 = vpop.f32.mrf.mxu3  ;;  %v3560_v25 = vshll.u32 %v9031_v34, 16  ;;  %v3777_v35 = vshrl.u32 %v3704_v41, 16  ;;  %v3780_v14 = vshll.u32 %v3704_v41, 16  ;;  %v10640_v10 = vld [vmem:[#allocation132_spill] sm:$0xff] }
 0x2ca   :  { %v9041_v42 = vpop.f32.mrf.mxu0  ;;  %v2999_v22 = vrot.slane %v2997_v2, 1  ;;  %v3920_v40 = vpack.c.bf16 %v9035_v28, %v8993_v19  ;;  %v3222_v54 = vrot.slane %v3220_v16, 3  ;;  %v3225_v33 = vrot.slane %v3223_v20, 4  ;;  %v10671_v28 = vld [vmem:[#allocation67_spill] sm:$0xff] }
 0x2cb   :  { %v3558_v53 = vor.u32 %v3556_v36, %v8960_v50  ;;  %v9046_v58 = vrot.slane %v3560_v25, 1  ;;  %v3779_v51 = vrot.slane %v3777_v35, 3  ;;  %v3782_v57 = vrot.slane %v3780_v14, 4  ;;  %v10641_v50 = vld [vmem:[#allocation142_spill] sm:$0xff] }
 0x2cc   :  { %v3000_v11 = vsel %vm850_vm4, %v2995_v31, %v2999_v22  ;;  %v3226_v15 = vor.u32 %v3225_v33, %v3222_v54  ;;  %v4056_v32 = vmul.f32 %v8898_v52, %v10639_v13  ;;  %v4057_v2 = vmul.f32 %v8950_v3, %v10640_v10  ;;  %v10643_v22 = vld [vmem:[#allocation143_spill] sm:$0xff] }
 0x2cd   :  { %v9051_v62 = vsel %vm850_vm4, %v3558_v53, %v9046_v58  ;;  %v9057_v41 = vor.u32 %v3782_v57, %v3779_v51  ;;  %v4058_v36 = vmul.f32 %v8997_v4, %v10641_v50  ;;  %v10642_v20 = vpack.c.bf16 %v8342_v9, %v8300_v59 }
 0x2ce   :  { %v3227_v31 = vsel %vm556_vm6, %v3217_v7, %v3226_v15  ;;  %v4065_v54 = vpack.c.bf16 %v4057_v2, %v4056_v32 }
 0x2cf   :  { %5553 = vmatmul.msk.bf16.gmra.mxu0 %vm2656_vm7, %v2801_v47  ;;  %v9072_v25 = vsel %vm556_vm6, %v8986_v56, %v9057_v41  ;;  %v9075_v35 = vpack.c.bf16 %v10643_v22, %v4058_v36  ;;  %v4120_v47 = vshrl.u32 %v8887_v61, 16  ;;  %v10644_v36 = vpack.c.bf16 %v8413_v38, %v8370_v24 }
 0x2d0   :  { %v9063_v16 = vpop.f32.mrf.mxu1  ;;  %5642 = vmatmul.msk.bf16.vlgmr.msrb.gmra.mxu3 %vm2656_vm7, %v10642_v20  ;;  %v4124_v7 = vshll.u32 %v4065_v54, 16  ;;  %v4128_v56 = vshrl.u32 %v4065_v54, 16 }
 0x2d1   :  { %v3285_v14 = vpop.f32.mrf.mxu2  ;;  %v9080_v53 = vpop.f32.mrf.mxu3  ;;  %v4132_v59 = vshll.u32 %v9075_v35, 16  ;;  %v4122_v57 = vor.u32 %v4120_v47, %v8912_v18 }
 0x2d2   :  { %v9078_v33 = vadd.f32 %v3285_v14, %v3098_v43  ;;  %v2864_v51 = vpop.f32.mrf.mxu0  ;;  %v4126_v15 = vrot.slane %v4124_v7, 1 }
 0x2d3   :  { %v2865_v9 = vadd.f32 %v2864_v51, %v2695_v26  ;;  %v9084_v13 = vrot.slane %v4132_v59, 1 }
 0x2d4   :  { %v9088_v32 = vsel %vm850_vm4, %v4122_v57, %v4126_v15  ;;  %v4130_v61 = vor.u32 %v4128_v56, %v4126_v15  ;;  %v10647_v15 = vpack.c.bf16 %v8494_v46, %v8471_v60 }
 0x2d5   :  { %5585 = vmatmul.msk.bf16.gmra.mxu1 %vm2656_vm7, %v3000_v11 }
 0x2d6   :  { %v9092_v43 = vsel %vm850_vm4, %v4130_v61, %v9084_v13 }
 0x2d8   :  { %v3063_v10 = vpop.f32.mrf.mxu1  ;;  %5617 = vmatmul.msk.bf16.gmra.mxu2 %vm2656_vm7, %v3227_v31 }
 0x2d9   :  { %v3100_v26 = vadd.f32 %v3063_v10, %v2865_v9  ;;  %v9095_v2 = vpop.f32.mrf.mxu2  ;;  %v2700_v50 = vpop.f32.mrf.mxu3  ;;  %v10648_v10 = vpack.c.bf16 %v8565_v49, %v8525_v0  ;;  %v10650_v0 = vld [vmem:[#allocation92_spill] sm:$0xff]  ;;  %v10651_v49 = vld [vmem:[#allocation73_spill] sm:$0xff] }
 0x2da   :  { %v9097_v18 = vpop.f32.mrf.mxu0 }
 0x2df   :  { %5674 = vmatmul.msk.bf16.vlgmr.msra.gmra.mxu0 %vm2656_vm7, %v8460_v44  ;;  %v10645_v44 = vpack.c.bf16 %v8411_v17, %v8393_v30 }
 0x2e0   :  { %v9101_v11 = vpop.f32.mrf.mxu1  ;;  %5643 = vmatmul.msk.bf16.gmra.mxu3 %vm2656_vm7, %v10644_v36  ;;  %v10649_v36 = vpack.c.bf16 %v8575_v5, %v8556_v12 }
 0x2e1   :  { %v3290_v54 = vpop.f32.mrf.mxu2  ;;  %v9111_v14 = vpop.f32.mrf.mxu3 }
 0x2e2   :  { %v9107_v20 = vadd.f32 %v3290_v54, %v3100_v26  ;;  %v2869_v31 = vpop.f32.mrf.mxu0  ;;  %v10652_v54 = vpack.c.bf16 %v10650_v0, %v10651_v49  ;;  %v5935_v49 = vld [vmem:[%s10101_s5 + $0x108] sm:$0xff] }
 0x2e3   :  { %v2870_v22 = vadd.f32 %v2869_v31, %v2700_v50  ;;  %v5937_v31 = vld [vmem:[%s10101_s5 + $0x118] sm:$0xff] }
 0x2e4   :  { %4192 = vmatpush.bf16.msra.mxu3 %v5937_v31 }
 0x2e5   :  { %5706 = vmatmul.msk.bf16.vlgmr.msrb.gmra.mxu1 %vm2656_vm7, %v8480_v1  ;;  %v10646_v1 = vpack.c.bf16 %v8483_v29, %v8445_v27 }
 0x2e8   :  { %v3068_v47 = vpop.f32.mrf.mxu1  ;;  %5738 = vmatmul.msk.bf16.vlgmr.msra.gmra.mxu2 %vm2656_vm7, %v10645_v44  ;;  %v10655_v44 = vld [vmem:[#allocation84_spill] sm:$0xff] }
 0x2e9   :  { %v3102_v7 = vadd.f32 %v3068_v47, %v2870_v22  ;;  %v9117_v24 = vpop.f32.mrf.mxu2  ;;  %v2705_v51 = vpop.f32.mrf.mxu3  ;;  %v10654_v47 = vld [vmem:[#allocation91_spill] sm:$0xff] }
 0x2ea   :  { %v9119_v38 = vpop.f32.mrf.mxu0 }
 0x2ef   :  { %5675 = vmatmul.msk.bf16.gmra.mxu0 %vm2656_vm7, %v8540_v21 }
 0x2f0   :  { %5644 = vmatmul.msk.bf16.gmra.mxu3 %vm2656_vm7, %v10646_v1  ;;  %v9127_v59 = vpop.f32.mrf.mxu1 }
 0x2f1   :  { %v3295_v9 = vpop.f32.mrf.mxu2  ;;  %v9139_v56 = vpop.f32.mrf.mxu3 }
 0x2f2   :  { %v9129_v30 = vadd.f32 %v3295_v9, %v3102_v7  ;;  %v2874_v17 = vpop.f32.mrf.mxu0  ;;  %v10657_v9 = vld [vmem:[#allocation71_spill] sm:$0xff] }
 0x2f3   :  { %v2875_v57 = vadd.f32 %v2874_v17, %v2705_v51 }
 0x2f5   :  { %5707 = vmatmul.msk.bf16.gmra.mxu1 %vm2656_vm7, %v8561_v48 }
 0x2f8   :  { %5739 = vmatmul.msk.bf16.gmra.mxu2 %vm2656_vm7, %v10647_v15  ;;  %v10659_v15 = vld [vmem:[#allocation15_spill] sm:$0xff] }
 0x2f9   :  { %v9137_v21 = vpop.f32.mrf.mxu2  ;;  %v3073_v27 = vpop.f32.mrf.mxu1 }
 0x2fa   :  { %v3104_v29 = vadd.f32 %v3073_v27, %v2875_v57  ;;  %v9141_v61 = vpop.f32.mrf.mxu0  ;;  %v2710_v46 = vpop.f32.mrf.mxu3  ;;  %v10658_v57 = vld [vmem:[#allocation42_spill] sm:$0xff] }
 0x2fb   :  { %v10660_v27 = vpack.c.bf16 %v10658_v57, %v10659_v15 }
 0x2ff   :  { %5676 = vmatmul.msk.bf16.gmra.mxu0 %vm2656_vm7, %v8639_v37 }
 0x300   :  { %5645 = vmatmul.msk.bf16.gmra.mxu3 %vm2656_vm7, %v10648_v10 }
 0x301   :  { %v3300_v48 = vpop.f32.mrf.mxu2  ;;  %v9157_v37 = vpop.f32.mrf.mxu1 }
 0x302   :  { %v9149_v60 = vadd.f32 %v3300_v48, %v3104_v29  ;;  %v9176_v7 = vpop.f32.mrf.mxu3 }
 0x303   :  { %v2879_v26 = vpop.f32.mrf.mxu0 }
 0x304   :  { %v2880_v50 = vadd.f32 %v2879_v26, %v2710_v46  ;;  %v10661_v46 = vld [vmem:[#allocation79_spill] sm:$0xff] }
 0x305   :  { %5708 = vmatmul.msk.bf16.gmra.mxu1 %vm2656_vm7, %v8663_v55  ;;  %v10653_v55 = vld [vmem:[#allocation20_spill] sm:$0xff]  ;;  %v5936_v26 = vld [vmem:[%s10101_s5 + $0x110] sm:$0xff] }
 0x306   :  { %4193 = vmatpush.bf16.msra.mxu3 %v5936_v26 }
 0x308   :  { %5740 = vmatmul.msk.bf16.gmra.mxu2 %vm2656_vm7, %v10649_v36  ;;  %v10663_v36 = vld [vmem:[#allocation21_spill] sm:$0xff] }
 0x309   :  { %v9170_v12 = vpop.f32.mrf.mxu2 }
 0x30a   :  { %4194 = vmatpush.bf16.msra.mxu3 %v5935_v49 }
 0x30b   :  { %v9178_v51 = vpop.f32.mrf.mxu0 }
 0x30f   :  { %5677 = vmatmul.msk.bf16.gmra.mxu0 %vm2656_vm7, %v8711_v8  ;;  %v10656_v8 = vpack.c.bf16 %v10654_v47, %v10655_v44 }
 0x310   :  { %5646 = vmatmul.msk.bf16.gmra.mxu3 %vm2656_vm7, %v10652_v54 }
 0x315   :  { %5709 = vmatmul.msk.bf16.gmra.mxu1 %vm2656_vm7, %v10653_v55  ;;  %v5934_v55 = vld [vmem:[%s10101_s5 + $0x100] sm:$0xff] }
 0x316   :  { %4195 = vmatpush.bf16.msra.mxu3 %v5934_v55 }
 0x317   :  { %v3078_v5 = vpop.f32.mrf.mxu1 }
 0x318   :  { %v3106_v22 = vadd.f32 %v3078_v5, %v2880_v50  ;;  %5741 = vmatmul.msk.bf16.gmra.mxu2 %vm2656_vm7, %v10656_v8  ;;  %v2715_v29 = vpop.f32.mrf.mxu3  ;;  %v10662_v50 = vld [vmem:[#allocation45_spill] sm:$0xff]  ;;  %v10665_v5 = vpack.c.bf16 %v8898_v52, %v8852_v45 }
 0x319   :  { %v10664_v0 = vpack.c.bf16 %v10662_v50, %v10663_v36 }
 0x31f   :  { %v3305_v1 = vpop.f32.mrf.mxu2  ;;  %5678 = vmatmul.msk.bf16.gmra.mxu0 %vm2656_vm7, %v10657_v9  ;;  %v9200_v54 = vpop.f32.mrf.mxu1  ;;  %v10666_v9 = vld [vmem:[#allocation72_spill] sm:$0xff] }
 0x320   :  { %v9182_v17 = vadd.f32 %v3305_v1, %v3106_v22  ;;  %5647 = vmatmul.msk.bf16.gmra.mxu3 %vm2656_vm7, %v10660_v27  ;;  %v2717_v31 = vpop.f32.mrf.mxu3  ;;  %v10667_v57 = vpack.c.bf16 %v8879_v23, %v10666_v9 }
 0x321   :  { %v2884_v10 = vpop.f32.mrf.mxu0 }
 0x322   :  { %v2885_v48 = vadd.f32 %v2884_v10, %v2715_v29 }
 0x325   :  { %5710 = vmatmul.msk.bf16.gmra.mxu1 %vm2656_vm7, %v10661_v46 }
 0x327   :  { %v9211_v22 = vpop.f32.mrf.mxu2 }
 0x328   :  { %5742 = vmatmul.msk.bf16.gmra.mxu2 %vm2656_vm7, %v10664_v0 }
 0x329   :  { %v2886_v1 = vpop.f32.mrf.mxu0 }
 0x32f   :  { %5679 = vmatmul.msk.bf16.gmra.mxu0 %vm2656_vm7, %v8980_v63  ;;  %v2887_v63 = vadd.f32 %v2886_v1, %v2717_v31 }
 0x330   :  { %5648 = vmatmul.msk.bf16.gmra.mxu3 %vm2656_vm7, %v10665_v5 }
 0x332   :  { %v3083_v47 = vpop.f32.mrf.mxu1 }
 0x333   :  { %v3108_v44 = vadd.f32 %v3083_v47, %v2885_v48  ;;  %v2720_v8 = vpop.f32.mrf.mxu3 }
 0x335   :  { %5711 = vmatmul.msk.bf16.gmra.mxu1 %vm2656_vm7, %v9005_v6  ;;  %v10668_v6 = vpack.c.bf16 %v8997_v4, %v8950_v3 }
 0x338   :  { %5743 = vmatmul.msk.bf16.gmra.mxu2 %vm2656_vm7, %v10667_v57 }
 0x33a   :  { %v3085_v15 = vpop.f32.mrf.mxu1  ;;  %v3310_v27 = vpop.f32.mrf.mxu2 }
 0x33b   :  { %v9219_v45 = vadd.f32 %v3085_v15, %v2887_v63  ;;  %v3335_v52 = vadd.f32 %v3310_v27, %v3108_v44  ;;  %v2722_v29 = vpop.f32.mrf.mxu3  ;;  %v10673_v27 = vld [vmem:[#allocation55_spill] sm:$0xff] }
 0x33c   :  { %v2889_v10 = vpop.f32.mrf.mxu0 }
 0x33d   :  { %v2890_v46 = vadd.f32 %v2889_v10, %v2720_v8 }
 0x33f   :  { %5680 = vmatmul.msk.bf16.gmra.mxu0 %vm2656_vm7, %v9051_v62  ;;  %v3564_v62 = vshrl.u32 %v9031_v34, 16 }
 0x340   :  { %5649 = vmatmul.msk.bf16.gmra.mxu3 %vm2656_vm7, %v10668_v6 }
 0x341   :  { %v3566_v3 = vor.u32 %v3564_v62, %v9046_v58  ;;  %v10675_v62 = vld [vmem:[#allocation10_spill] sm:$0xff] }
 0x342   :  { %v3088_v23 = vpop.f32.mrf.mxu1  ;;  %v3312_v48 = vpop.f32.mrf.mxu2 }
 0x343   :  { %v3110_v26 = vadd.f32 %v3088_v23, %v2890_v46  ;;  %v2725_v50 = vpop.f32.mrf.mxu3  ;;  %v10674_v46 = vld [vmem:[#allocation62_spill] sm:$0xff] }
 0x344   :  { %v2891_v36 = vpop.f32.mrf.mxu0 }
 0x345   :  { %5712 = vmatmul.msk.bf16.gmra.mxu1 %vm2656_vm7, %v9072_v25  ;;  %v2892_v0 = vadd.f32 %v2891_v36, %v2722_v29  ;;  %v10669_v25 = vld [vmem:[#allocation135_spill] sm:$0xff]  ;;  %v3785_v29 = vsel %vm556_vm6, %v9057_v41, %v10673_v27 }
 0x346   :  { %v10670_v1 = vrot.slane %v10669_v25, 1 }
 0x348   :  { %5744 = vmatmul.msk.bf16.gmra.mxu2 %vm2656_vm7, %v3920_v40  ;;  %v3567_v19 = vsel %vm850_vm4, %v3566_v3, %v10670_v1  ;;  %v10672_v40 = vld [vmem:[#allocation81_spill] sm:$0xff]  ;;  %v10676_v3 = vld [vmem:[#allocation43_spill] sm:$0xff] }
 0x349   :  { %v3913_v58 = vmul.f32 %v8997_v4, %v10672_v40 }
 0x34a   :  { %v3090_v49 = vpop.f32.mrf.mxu1 }
 0x34b   :  { %v9235_v31 = vadd.f32 %v3090_v49, %v2892_v0  ;;  %v3315_v55 = vpop.f32.mrf.mxu2  ;;  %v2727_v5 = vpop.f32.mrf.mxu3  ;;  %v3921_v6 = vpack.c.bf16 %v10674_v46, %v3913_v58  ;;  %v5943_v46 = vld [vmem:[%s10102_s6 + $0x28] sm:$0xff] }
 0x34c   :  { %v9237_v47 = vadd.f32 %v3315_v55, %v3110_v26  ;;  %v2894_v44 = vpop.f32.mrf.mxu0 }
 0x34d   :  { %v2895_v8 = vadd.f32 %v2894_v44, %v2725_v50 }
 0x34f   :  { %5681 = vmatmul.msk.bf16.gmra.mxu0 %vm2656_vm7, %v3567_v19  ;;  %v10678_v19 = vld [vmem:[#allocation82_spill] sm:$0xff] }
 0x350   :  { %5770 = vmatmul.msk.bf16.vlgmr.msra.gmra.mxu3 %vm2656_vm7, %v10671_v28 }
 0x352   :  { %v3093_v34 = vpop.f32.mrf.mxu1 }
 0x353   :  { %v3112_v9 = vadd.f32 %v3093_v34, %v2895_v8  ;;  %v9247_v57 = vpop.f32.mrf.mxu2  ;;  %v3415_v63 = vpop.f32.mrf.mxu3  ;;  %v10677_v8 = vld [vmem:[#allocation44_spill] sm:$0xff] }
 0x354   :  { %v9250_v15 = vadd.f32 %v3415_v63, %v9078_v33  ;;  %v2896_v10 = vpop.f32.mrf.mxu0 }
 0x355   :  { %5713 = vmatmul.msk.bf16.gmra.mxu1 %vm2656_vm7, %v3785_v29  ;;  %v2897_v23 = vadd.f32 %v2896_v10, %v2727_v5 }
 0x358   :  { %5745 = vmatmul.msk.bf16.gmra.mxu2 %vm2656_vm7, %v3921_v6  ;;  %v5951_v6 = vld [vmem:[%s10104_s8 + $0x28] sm:$0xff] }
 0x35a   :  { %v3095_v4 = vpop.f32.mrf.mxu1 }
 0x35b   :  { %v9258_v26 = vadd.f32 %v3095_v4, %v2897_v23  ;;  %v3320_v50 = vpop.f32.mrf.mxu2  ;;  %v9260_v36 = vpop.f32.mrf.mxu3 }
 0x35c   :  { %v9262_v33 = vadd.f32 %v3320_v50, %v3112_v9  ;;  %v5953_v9 = vld [vmem:[%s10104_s8 + $0x38] sm:$0xff]  ;;  %v3625_v10 = vpop.f32.mrf.mxu0 }
 0x35d   :  { %4944 = vmatpush.bf16.msrb.mxu2 %v5953_v9 }
 0x360   :  { %5771 = vmatmul.msk.bf16.gmra.mxu3 %vm2656_vm7, %v10675_v62 }
 0x362   :  { %v3843_v23 = vpop.f32.mrf.mxu1 }
 0x363   :  { %v3420_v41 = vpop.f32.mrf.mxu3  ;;  %v3322_v63 = vpop.f32.mrf.mxu2 }
 0x364   :  { %v9267_v0 = vadd.f32 %v3420_v41, %v9107_v20  ;;  %v3627_v41 = vpop.f32.mrf.mxu0 }
 0x36b   :  { %v9269_v49 = vpop.f32.mrf.mxu3  ;;  %v3988_v4 = vpop.f32.mrf.mxu2 }
 0x370   :  { %5772 = vmatmul.msk.bf16.gmra.mxu3 %vm2656_vm7, %v10676_v3  ;;  %v5941_v3 = vld [vmem:[%s10102_s6 + $0x18] sm:$0xff] }
 0x373   :  { %v3425_v55 = vpop.f32.mrf.mxu3 }
 0x374   :  { %v9274_v5 = vadd.f32 %v3425_v55, %v9129_v30  ;;  %v5949_v55 = vld [vmem:[%s10104_s8 + $0x18] sm:$0xff] }
 0x37b   :  { %v9276_v44 = vpop.f32.mrf.mxu3 }
 0x380   :  { %5773 = vmatmul.msk.bf16.gmra.mxu3 %vm2656_vm7, %v10677_v8  ;;  %v3845_v8 = vpop.f32.mrf.mxu1 }
 0x383   :  { %v3430_v25 = vpop.f32.mrf.mxu3 }
 0x384   :  { %v9281_v1 = vadd.f32 %v3430_v25, %v9149_v60  ;;  %v5945_v60 = vld [vmem:[%s10102_s6 + $0x38] sm:$0xff]  ;;  %v4136_v25 = vshrl.u32 %v9075_v35, 16  ;;  %v10679_v35 = vld [vmem:[#allocation145_spill] sm:$0xff] }
 0x385   :  { %4359 = vmatpush.bf16.msrb.mxu0 %v5945_v60 }
 0x386   :  { %v4138_v60 = vor.u32 %v4136_v25, %v9084_v13 }
 0x388   :  { %v3848_v13 = vpop.f32.mrf.mxu1 }
 0x38b   :  { %v9283_v20 = vpop.f32.mrf.mxu3 }
 0x390   :  { %5774 = vmatmul.msk.bf16.gmra.mxu3 %vm2656_vm7, %v10678_v19  ;;  %v5948_v19 = vld [vmem:[%s10104_s8 + $0x10] sm:$0xff] }
 0x393   :  { %v3435_v28 = vpop.f32.mrf.mxu3 }
 0x394   :  { %v9288_v34 = vadd.f32 %v3435_v28, %v9182_v17  ;;  %v5944_v17 = vld [vmem:[%s10102_s6 + $0x30] sm:$0xff]  ;;  %v3990_v28 = vpop.f32.mrf.mxu2 }
 0x395   :  { %4360 = vmatpush.bf16.msrb.mxu0 %v5944_v17  ;;  %v3630_v17 = vpop.f32.mrf.mxu0 }
 0x399   :  { %4361 = vmatpush.bf16.msrb.mxu0 %v5943_v46 }
 0x39b   :  { %v9290_v30 = vpop.f32.mrf.mxu3 }
 0x3a0   :  { %5775 = vmatmul.msk.bf16.gmra.mxu3 %vm2656_vm7, %v9088_v32  ;;  %v5952_v32 = vld [vmem:[%s10104_s8 + $0x30] sm:$0xff] }
 0x3a1   :  { %4945 = vmatpush.bf16.msrb.mxu2 %v5952_v32  ;;  %v5939_v32 = vld [vmem:[%s10102_s6 + $0x8] sm:$0xff] }
 0x3a3   :  { %v3440_v40 = vpop.f32.mrf.mxu3 }
 0x3a4   :  { %v9294_v58 = vadd.f32 %v3440_v40, %v3335_v52  ;;  %v3336_v52 = vadd.f32 %v3312_v48, %v9219_v45  ;;  %v5942_v45 = vld [vmem:[%s10102_s6 + $0x20] sm:$0xff] }
 0x3a5   :  { %4946 = vmatpush.bf16.msrb.mxu2 %v5951_v6  ;;  %v5950_v48 = vld [vmem:[%s10104_s8 + $0x20] sm:$0xff]  ;;  %4362 = vmatpush.bf16.msrb.mxu0 %v5942_v45 }
 0x3a6   :  { %v5938_v6 = vld [vmem:[%s10102_s6] sm:$0xff] }
 0x3a7   :  { %v5946_v45 = vld [vmem:[%s10104_s8] sm:$0xff] }
 0x3a9   :  { %4947 = vmatpush.bf16.msrb.mxu2 %v5950_v48  ;;  %4363 = vmatpush.bf16.msrb.mxu0 %v5941_v3  ;;  %v3993_v48 = vpop.f32.mrf.mxu2  ;;  %v3632_v3 = vpop.f32.mrf.mxu0 }
 0x3ab   :  { %v3442_v27 = vpop.f32.mrf.mxu3 }
 0x3ac   :  { %v9309_v29 = vadd.f32 %v3442_v27, %v3336_v52  ;;  %v5947_v52 = vld [vmem:[%s10104_s8 + $0x8] sm:$0xff] }
 0x3ad   :  { %4948 = vmatpush.bf16.msrb.mxu2 %v5949_v55 }
 0x3b0   :  { %5776 = vmatmul.msk.bf16.gmra.mxu3 %vm2656_vm7, %v9092_v43  ;;  %v3338_v43 = vadd.f32 %v9247_v57, %v9235_v31  ;;  %v10680_v31 = vrot.slane %v10679_v35, 1 }
 0x3b1   :  { %4949 = vmatpush.bf16.msrb.mxu2 %v5948_v19 }
 0x3b2   :  { %v4139_v57 = vsel %vm850_vm4, %v4138_v60, %v10680_v31  ;;  %v3665_v60 = vadd.f32 %v3625_v10, %v9250_v15 }
 0x3b3   :  { %v3445_v50 = vpop.f32.mrf.mxu3 }
 0x3b4   :  { %v9326_v62 = vadd.f32 %v3445_v50, %v9237_v47  ;;  %v5940_v47 = vld [vmem:[%s10102_s6 + $0x10] sm:$0xff]  ;;  %v3340_v50 = vadd.f32 %v3322_v63, %v9258_v26  ;;  %v3635_v26 = vpop.f32.mrf.mxu0 }
 0x3b5   :  { %4364 = vmatpush.bf16.msrb.mxu0 %v5940_v47  ;;  %4950 = vmatpush.bf16.msrb.mxu2 %v5947_v52  ;;  %v3995_v47 = vpop.f32.mrf.mxu2 }
 0x3b9   :  { %4365 = vmatpush.bf16.msrb.mxu0 %v5939_v32  ;;  %4951 = vmatpush.bf16.msrb.mxu2 %v5946_v45 }
 0x3bb   :  { %v3447_v40 = vpop.f32.mrf.mxu3 }
 0x3bc   :  { %v9344_v9 = vadd.f32 %v3447_v40, %v3338_v43  ;;  %v2862_v43 = vadd.f32 %v9041_v42, %v8995_v39  ;;  %v9377_v39 = vld [vmem:[%s10107_s11] sm:$0xff] }
 0x3bd   :  { %4366 = vmatpush.bf16.msrb.mxu0 %v5938_v6  ;;  %v9380_v42 = vperm.slane %v9377_v39, 2 }
 0x3be   :  { %v3099_v19 = vadd.f32 %v9063_v16, %v2862_v43  ;;  %v3998_v16 = vpop.f32.mrf.mxu2 }
 0x3c0   :  { %5777 = vmatmul.msk.bf16.gmra.mxu3 %vm2656_vm7, %v4139_v57  ;;  %v3326_v40 = vadd.f32 %v9095_v2, %v3099_v19  ;;  %v3883_v57 = vadd.f32 %v3843_v23, %v3665_v60  ;;  %v2867_v23 = vadd.f32 %v9097_v18, %v9080_v53  ;;  %v3667_v19 = vadd.f32 %v3630_v17, %v9267_v0 }
 0x3c1   :  { %v2872_v17 = vadd.f32 %v9119_v38, %v9111_v14 }
 0x3c2   :  { %v3456_v31 = vadd.f32 %v9260_v36, %v3326_v40  ;;  %v4028_v32 = vadd.f32 %v3988_v4, %v3883_v57 }
 0x3c3   :  { %v3450_v27 = vpop.f32.mrf.mxu3 }
 0x3c4   :  { %v9357_v46 = vadd.f32 %v3450_v27, %v9262_v33  ;;  %v3850_v33 = vpop.f32.mrf.mxu1  ;;  %v3666_v63 = vadd.f32 %v3627_v41, %v3456_v31  ;;  %v3637_v41 = vpop.f32.mrf.mxu0  ;;  %v3885_v31 = vadd.f32 %v3848_v13, %v3667_v19  ;;  %v3103_v13 = vadd.f32 %v9127_v59, %v2872_v17 }
 0x3c6   :  { %v3884_v27 = vadd.f32 %v3845_v8, %v3666_v63  ;;  %v3101_v8 = vadd.f32 %v9101_v11, %v2867_v23  ;;  %v4000_v40 = vpop.f32.mrf.mxu2  ;;  %v4030_v18 = vadd.f32 %v3993_v48, %v3885_v31  ;;  %v3330_v48 = vadd.f32 %v9137_v21, %v3103_v13 }
 0x3c8   :  { %v4029_v2 = vadd.f32 %v3990_v28, %v3884_v27  ;;  %v3328_v43 = vadd.f32 %v9117_v24, %v3101_v8  ;;  %v3460_v23 = vadd.f32 %v9276_v44, %v3330_v48 }
 0x3ca   :  { %v3670_v14 = vadd.f32 %v3637_v41, %v3460_v23 }
 0x3cb   :  { %v3452_v55 = vpop.f32.mrf.mxu3 }
 0x3cc   :  { %v9366_v25 = vadd.f32 %v3452_v55, %v3340_v50  ;;  %v3853_v52 = vpop.f32.mrf.mxu1  ;;  %v3640_v11 = vpop.f32.mrf.mxu0 }
 0x3ce   :  { %v4003_v0 = vpop.f32.mrf.mxu2 }
 0x3d3   :  { %v4197_v35 = vpop.f32.mrf.mxu3 }
 0x3d4   :  { %v4237_v6 = vadd.f32 %v4197_v35, %v4028_v32  ;;  %v3855_v55 = vpop.f32.mrf.mxu1  ;;  %v3458_v35 = vadd.f32 %v9269_v49, %v3328_v43 }
 0x3d6   :  { %v4254_v36 = vadd.f32 %v9380_v42, %v4237_v6  ;;  %v3668_v53 = vadd.f32 %v3632_v3, %v3458_v35 }
 0x3d8   :  { %v4270_v45 = vmax.f32 %v4254_v36, 0.0  ;;  %v3886_v57 = vadd.f32 %v3850_v33, %v3668_v53  ;;  %v3669_v33 = vadd.f32 %v3635_v26, %v9274_v5  ;;  %v3642_v36 = vpop.f32.mrf.mxu0  ;;  %v2877_v26 = vadd.f32 %v9141_v61, %v9139_v56 }
 0x3da   :  { %v4031_v32 = vadd.f32 %v3995_v47, %v3886_v57 }
 0x3db   :  { %v4199_v15 = vpop.f32.mrf.mxu3 }
 0x3dc   :  { %v4238_v10 = vadd.f32 %v4199_v15, %v4029_v2  ;;  %v3858_v27 = vpop.f32.mrf.mxu1 }
 0x3de   :  { %v4255_v4 = vadd.f32 %v9380_v42, %v4238_v10 }
 0x3e0   :  { %v4271_v50 = vmax.f32 %v4255_v4, 0.0  ;;  %v3887_v4 = vadd.f32 %v3853_v52, %v3669_v33  ;;  %v3645_v5 = vpop.f32.mrf.mxu0 }
 0x3e2   :  { %v4286_v28 = vpack.c.bf16 %v4271_v50, %v4270_v45  ;;  %v4032_v38 = vadd.f32 %v3998_v16, %v3887_v4  ;;  %v4005_v45 = vpop.f32.mrf.mxu2  ;;  %v3888_v50 = vadd.f32 %v3855_v55, %v3670_v14 }
 0x3e3   :  { %v4202_v60 = vpop.f32.mrf.mxu3 }
 0x3e4   :  { %4367 = vmatmul.bf16.vlgmr.msrb.gmra.mxu0 %v4286_v28  ;;  %4952 = vmatmul.bf16.vlgmr.msrb.gmra.mxu2 %v4286_v28  ;;  %v4239_v63 = vadd.f32 %v4202_v60, %v4030_v18  ;;  %v3860_v8 = vpop.f32.mrf.mxu1  ;;  %v4033_v43 = vadd.f32 %v4000_v40, %v3888_v50  ;;  %v3105_v60 = vadd.f32 %v9157_v37, %v2877_v26 }
 0x3e5   :  { %v3671_v40 = vadd.f32 %v3640_v11, %v9281_v1  ;;  %v2882_v1 = vadd.f32 %v9178_v51, %v9176_v7 }
 0x3e6   :  { %v4256_v24 = vadd.f32 %v9380_v42, %v4239_v63  ;;  %v3332_v55 = vadd.f32 %v9170_v12, %v3105_v60 }
 0x3e7   :  { %v3889_v57 = vadd.f32 %v3858_v27, %v3671_v40  ;;  %v3107_v11 = vadd.f32 %v9200_v54, %v2882_v1 }
 0x3e8   :  { %v4272_v15 = vmax.f32 %v4256_v24, 0.0  ;;  %v3462_v18 = vadd.f32 %v9283_v20, %v3332_v55  ;;  %v3647_v63 = vpop.f32.mrf.mxu0 }
 0x3e9   :  { %v4034_v61 = vadd.f32 %v4003_v0, %v3889_v57 }
 0x3ea   :  { %v4008_v16 = vpop.f32.mrf.mxu2  ;;  %v3672_v56 = vadd.f32 %v3642_v36, %v3462_v18 }
 0x3eb   :  { %v4204_v6 = vpop.f32.mrf.mxu3 }
 0x3ec   :  { %v4240_v2 = vadd.f32 %v4204_v6, %v4031_v32  ;;  %v3863_v52 = vpop.f32.mrf.mxu1  ;;  %v3890_v32 = vadd.f32 %v3860_v8, %v3672_v56 }
 0x3ee   :  { %v4257_v49 = vadd.f32 %v9380_v42, %v4240_v2  ;;  %v4035_v24 = vadd.f32 %v4005_v45, %v3890_v32 }
 0x3f0   :  { %v4273_v3 = vmax.f32 %v4257_v49, 0.0  ;;  %v3650_v0 = vpop.f32.mrf.mxu0 }
 0x3f2   :  { %v4287_v47 = vpack.c.bf16 %v4273_v3, %v4272_v15  ;;  %v4010_v2 = vpop.f32.mrf.mxu2  ;;  %v3334_v15 = vadd.f32 %v9211_v22, %v3107_v11  ;;  %v3673_v3 = vadd.f32 %v3645_v5, %v9288_v34 }
 0x3f3   :  { %v4207_v10 = vpop.f32.mrf.mxu3 }
 0x3f4   :  { %4372 = vmatmul.bf16.gmra.mxu0 %v4287_v47  ;;  %4957 = vmatmul.bf16.gmra.mxu2 %v4287_v47  ;;  %v4241_v59 = vadd.f32 %v4207_v10, %v4032_v38  ;;  %v3865_v37 = vpop.f32.mrf.mxu1  ;;  %v3464_v36 = vadd.f32 %v9290_v30, %v3334_v15  ;;  %v3891_v10 = vadd.f32 %v3863_v52, %v3673_v3 }
 0x3f6   :  { %v4258_v21 = vadd.f32 %v9380_v42, %v4241_v59  ;;  %v3674_v51 = vadd.f32 %v3647_v63, %v3464_v36  ;;  %v4036_v23 = vadd.f32 %v4008_v16, %v3891_v10 }
 0x3f8   :  { %v4274_v35 = vmax.f32 %v4258_v21, 0.0  ;;  %v3892_v4 = vadd.f32 %v3865_v37, %v3674_v51  ;;  %v3652_v14 = vpop.f32.mrf.mxu0 }
 0x3fa   :  { %v4013_v7 = vpop.f32.mrf.mxu2  ;;  %v4037_v8 = vadd.f32 %v4010_v2, %v3892_v4 }
 0x3fb   :  { %v4209_v19 = vpop.f32.mrf.mxu3 }
 0x3fc   :  { %v4242_v28 = vadd.f32 %v4209_v19, %v4033_v43  ;;  %v3868_v33 = vpop.f32.mrf.mxu1  ;;  %v3675_v19 = vadd.f32 %v3650_v0, %v9294_v58 }
 0x3fe   :  { %v4259_v44 = vadd.f32 %v9380_v42, %v4242_v28  ;;  %v3893_v5 = vadd.f32 %v3868_v33, %v3675_v19 }
 0x400   :  { %v4275_v41 = vmax.f32 %v4259_v44, 0.0  ;;  %v3655_v26 = vpop.f32.mrf.mxu0  ;;  %v3676_v44 = vadd.f32 %v3652_v14, %v9309_v29  ;;  %v4038_v52 = vadd.f32 %v4013_v7, %v3893_v5  ;;  %v10682_v5 = vmov 3  }
 0x401   :  { %v3677_v63 = vadd.f32 %v3655_v26, %v9326_v62  ;;  %v10683_v26 = vmov 1  }
 0x402   :  { %v4288_v31 = vpack.c.bf16 %v4275_v41, %v4274_v35  ;;  %v4015_v59 = vpop.f32.mrf.mxu2 }
 0x403   :  { %v4212_v53 = vpop.f32.mrf.mxu3 }
 0x404   :  { %4377 = vmatmul.bf16.gmra.mxu0 %v4288_v31  ;;  %4962 = vmatmul.bf16.gmra.mxu2 %v4288_v31  ;;  %v4243_v6 = vadd.f32 %v4212_v53, %v4034_v61  ;;  %v3870_v34 = vpop.f32.mrf.mxu1 }
 0x405   :  { %v3894_v35 = vadd.f32 %v3870_v34, %v3676_v44 }
 0x406   :  { %v4260_v12 = vadd.f32 %v9380_v42, %v4243_v6 }
 0x407   :  { %v4039_v55 = vadd.f32 %v4015_v59, %v3894_v35  ;;  %v9429_v59 = vperm.slane %v9377_v39, 3  ;;  %v10684_v35 = vmov 2  }
 0x408   :  { %v4276_v27 = vmax.f32 %v4260_v12, 0.0  ;;  %v3657_v18 = vpop.f32.mrf.mxu0 }
 0x40a   :  { %v4018_v16 = vpop.f32.mrf.mxu2 }
 0x40b   :  { %v4214_v17 = vpop.f32.mrf.mxu3 }
 0x40c   :  { %v4244_v49 = vadd.f32 %v4214_v17, %v4035_v24  ;;  %v3873_v60 = vpop.f32.mrf.mxu1  ;;  %v3678_v24 = vadd.f32 %v3657_v18, %v9344_v9 }
 0x40d   :  { %v3895_v37 = vadd.f32 %v3873_v60, %v3677_v63 }
 0x40e   :  { %v4261_v20 = vadd.f32 %v9380_v42, %v4244_v49 }
 0x40f   :  { %v4040_v2 = vadd.f32 %v4018_v16, %v3895_v37 }
 0x410   :  { %v4277_v13 = vmax.f32 %v4261_v20, 0.0  ;;  %v3660_v49 = vpop.f32.mrf.mxu0 }
 0x412   :  { %v4289_v48 = vpack.c.bf16 %v4277_v13, %v4276_v27  ;;  %v4020_v29 = vpop.f32.mrf.mxu2 }
 0x413   :  { %v4217_v47 = vpop.f32.mrf.mxu3 }
 0x414   :  { %4382 = vmatmul.bf16.gmra.mxu0 %v4289_v48  ;;  %4967 = vmatmul.bf16.gmra.mxu2 %v4289_v48  ;;  %v4245_v54 = vadd.f32 %v4217_v47, %v4036_v23  ;;  %v3875_v61 = vpop.f32.mrf.mxu1  ;;  %v3679_v48 = vadd.f32 %v3660_v49, %v9357_v46 }
 0x415   :  { %v3896_v17 = vadd.f32 %v3875_v61, %v3678_v24 }
 0x416   :  { %v4262_v22 = vadd.f32 %v9380_v42, %v4245_v54 }
 0x417   :  { %v4041_v1 = vadd.f32 %v4020_v29, %v3896_v17 }
 0x418   :  { %v4278_v43 = vmax.f32 %v4262_v22, 0.0  ;;  %v3662_v47 = vpop.f32.mrf.mxu0 }
 0x419   :  { %v3680_v7 = vadd.f32 %v3662_v47, %v9366_v25 }
 0x41a   :  { %v4023_v0 = vpop.f32.mrf.mxu2 }
 0x41b   :  { %v4219_v38 = vpop.f32.mrf.mxu3 }
 0x41c   :  { %v4246_v45 = vadd.f32 %v4219_v38, %v4037_v8  ;;  %v3878_v20 = vpop.f32.mrf.mxu1 }
 0x41d   :  { %v3897_v36 = vadd.f32 %v3878_v20, %v3679_v48 }
 0x41e   :  { %v4263_v50 = vadd.f32 %v9380_v42, %v4246_v45 }
 0x41f   :  { %v4042_v51 = vadd.f32 %v4023_v0, %v3897_v36 }
 0x420   :  { %v4279_v30 = vmax.f32 %v4263_v50, 0.0 }
 0x422   :  { %v4290_v21 = vpack.c.bf16 %v4279_v30, %v4278_v43  ;;  %v4025_v23 = vpop.f32.mrf.mxu2 }
 0x423   :  { %v4222_v28 = vpop.f32.mrf.mxu3 }
 0x424   :  { %4387 = vmatmul.bf16.gmra.mxu0 %v4290_v21  ;;  %4972 = vmatmul.bf16.gmra.mxu2 %v4290_v21  ;;  %v4247_v41 = vadd.f32 %v4222_v28, %v4038_v52  ;;  %v3880_v10 = vpop.f32.mrf.mxu1 }
 0x425   :  { %v3898_v4 = vadd.f32 %v3880_v10, %v3680_v7 }
 0x426   :  { %v4264_v31 = vadd.f32 %v9380_v42, %v4247_v41 }
 0x427   :  { %v4043_v8 = vadd.f32 %v4025_v23, %v3898_v4  ;;  %v9510_v23 = vld [vmem:[%s10103_s7 + $0x48] sm:$0xff] }
 0x428   :  { %v4280_v57 = vmax.f32 %v4264_v31, 0.0 }
 0x42b   :  { %v4224_v40 = vpop.f32.mrf.mxu3 }
 0x42c   :  { %v4248_v53 = vadd.f32 %v4224_v40, %v4039_v55 }
 0x42e   :  { %v4265_v58 = vadd.f32 %v9380_v42, %v4248_v53 }
 0x430   :  { %v4281_v56 = vmax.f32 %v4265_v58, 0.0 }
 0x432   :  { %v4291_v32 = vpack.c.bf16 %v4281_v56, %v4280_v57 }
 0x433   :  { %v4227_v6 = vpop.f32.mrf.mxu3 }
 0x434   :  { %4392 = vmatmul.bf16.gmra.mxu0 %v4291_v32  ;;  %4977 = vmatmul.bf16.gmra.mxu2 %v4291_v32  ;;  %v4249_v12 = vadd.f32 %v4227_v6, %v4040_v2 }
 0x436   :  { %v4266_v27 = vadd.f32 %v9380_v42, %v4249_v12 }
 0x438   :  { %v4282_v15 = vmax.f32 %v4266_v27, 0.0 }
 0x43b   :  { %v4229_v11 = vpop.f32.mrf.mxu3 }
 0x43c   :  { %v4250_v13 = vadd.f32 %v4229_v11, %v4041_v1 }
 0x43e   :  { %v4267_v62 = vadd.f32 %v9380_v42, %v4250_v13 }
 0x440   :  { %v4283_v3 = vmax.f32 %v4267_v62, 0.0 }
 0x442   :  { %v4292_v33 = vpack.c.bf16 %v4283_v3, %v4282_v15 }
 0x443   :  { %v4232_v9 = vpop.f32.mrf.mxu3 }
 0x444   :  { %4397 = vmatmul.bf16.gmra.mxu0 %v4292_v33  ;;  %4982 = vmatmul.bf16.gmra.mxu2 %v4292_v33  ;;  %v4251_v54 = vadd.f32 %v4232_v9, %v4042_v51  ;;  %v9505_v51 = vld [vmem:[%s10103_s7 + $0x8] sm:$0xff] }
 0x446   :  { %v4268_v38 = vadd.f32 %v9380_v42, %v4251_v54 }
 0x448   :  { %v4284_v45 = vmax.f32 %v4268_v38, 0.0 }
 0x44b   :  { %v4234_v14 = vpop.f32.mrf.mxu3 }
 0x44c   :  { %v4252_v22 = vadd.f32 %v4234_v14, %v4043_v8 }
 0x44e   :  { %v4269_v46 = vadd.f32 %v9380_v42, %v4252_v22  ;;  %v10681_v42 = vmov 0  }
 0x450   :  { %v4285_v34 = vmax.f32 %v4269_v46, 0.0 }
 0x452   :  { %v4293_v50 = vpack.c.bf16 %v4285_v34, %v4284_v45 }
 0x454   :  { %4402 = vmatmul.bf16.gmra.mxu0 %v4293_v50  ;;  %4987 = vmatmul.bf16.gmra.mxu2 %v4293_v50 }
 0x461   :  { %v4368_v25 = vpop.f32.mrf.mxu0 }
 0x462   :  { %v4369_v43 = vadd.f32 %v4368_v25, %v9429_v59 }
 0x464   :  { %v4408_v30 = vmax.f32 %v4369_v43, 0.0 }
 0x466   :  { %4748 = vperm.xlu2 %6069, %v4408_v30   ;;  %4643 = vperm.xlu0 %6068, %v4408_v30  }
 0x467   :  { %4434 = vperm.xlu1 %6066, %v4408_v30   ;;  %v9441_v55 = vpop.f32.mrf.mxu2 }
 0x469   :  { %v4370_v19 = vpop.f32.mrf.mxu0 }
 0x46a   :  { %v4371_v21 = vadd.f32 %v4370_v19, %v9429_v59  ;;  %v9534_v19 = vld [vmem:[%s10103_s7] sm:$0xff] }
 0x46c   :  { %v4409_v28 = vmax.f32 %v4371_v21, 0.0  ;;  %v9539_v21 = vld [vmem:[%s10103_s7 + $0x40] sm:$0xff] }
 0x46e   :  { %6070 = vset.pattern.permute.xlu2 %v10681_v42  ;;  %6073 = vset.pattern.permute.xlu0 %v10682_v5 }
 0x46f   :  { %6067 = vset.pattern.permute.xlu1 %v10683_v26  ;;  %4439 = vperm.xlu2 %6070, %v4409_v28   ;;  %v9447_v18 = vpop.f32.mrf.mxu2 }
 0x470   :  { %4752 = vperm.xlu0 %6073, %v4409_v28   ;;  %4538 = vperm.xlu1 %6067, %v4408_v30  }
 0x471   :  { %v4373_v44 = vpop.f32.mrf.mxu0 }
 0x472   :  { %v4374_v52 = vadd.f32 %v4373_v44, %v9429_v59  ;;  %v9545_v44 = vld [vmem:[%s10103_s7 + $0x80] sm:$0xff] }
 0x474   :  { %v4410_v60 = vmax.f32 %v4374_v52, 0.0 }
 0x477   :  { %6071 = vset.pattern.permute.xlu2 %v10683_v26  ;;  %v9453_v63 = vpop.f32.mrf.mxu2 }
 0x478   :  { %6075 = vset.pattern.permute.xlu0 %v10683_v26  ;;  %6072 = vset.pattern.permute.xlu1 %v10684_v35 }
 0x479   :  { %4542 = vperm.xlu2 %6071, %v4409_v28   ;;  %4546 = vperm.xlu0 %6075, %v4410_v60   ;;  %v4375_v41 = vpop.f32.mrf.mxu0 }
 0x47a   :  { %4647 = vperm.xlu1 %6072, %v4409_v28   ;;  %v4376_v16 = vadd.f32 %v4375_v41, %v9429_v59 }
 0x47c   :  { %v4411_v40 = vmax.f32 %v4376_v16, 0.0 }
 0x47f   :  { %v9460_v24 = vpop.f32.mrf.mxu2 }
 0x481   :  { %6076 = vset.pattern.permute.xlu2 %v10684_v35  ;;  %6081 = vset.pattern.permute.xlu0 %v10682_v5  ;;  %v4378_v31 = vpop.f32.mrf.mxu0 }
 0x482   :  { %6074 = vset.pattern.permute.xlu1 %v10681_v42  ;;  %4651 = vperm.xlu2 %6076, %v4410_v60   ;;  %v4379_v53 = vadd.f32 %v4378_v31, %v9429_v59  ;;  %v9554_v31 = vld [vmem:[%s10103_s7 + $0xc0] sm:$0xff] }
 0x483   :  { %4760 = vperm.xlu0 %6081, %v4411_v40   ;;  %4444 = vperm.xlu1 %6074, %v4410_v60  }
 0x484   :  { %v4412_v57 = vmax.f32 %v4379_v53, 0.0 }
 0x487   :  { %v9466_v2 = vpop.f32.mrf.mxu2 }
 0x489   :  { %v4380_v58 = vpop.f32.mrf.mxu0 }
 0x48a   :  { %6078 = vset.pattern.permute.xlu2 %v10681_v42  ;;  %v4381_v56 = vadd.f32 %v4380_v58, %v9429_v59 }
 0x48b   :  { %6082 = vset.pattern.permute.xlu0 %v10681_v42  ;;  %6077 = vset.pattern.permute.xlu1 %v10682_v5 }
 0x48c   :  { %4449 = vperm.xlu2 %6078, %v4411_v40   ;;  %4454 = vperm.xlu0 %6082, %v4412_v57   ;;  %v4413_v32 = vmax.f32 %v4381_v56, 0.0 }
 0x48d   :  { %4756 = vperm.xlu1 %6077, %v4410_v60  }
 0x48f   :  { %v9474_v11 = vpop.f32.mrf.mxu2 }
 0x491   :  { %v4383_v61 = vpop.f32.mrf.mxu0 }
 0x492   :  { %v4384_v12 = vadd.f32 %v4383_v61, %v9429_v59 }
 0x494   :  { %6083 = vset.pattern.permute.xlu2 %v10683_v26  ;;  %6088 = vset.pattern.permute.xlu0 %v10684_v35  ;;  %v4414_v1 = vmax.f32 %v4384_v12, 0.0 }
 0x495   :  { %6079 = vset.pattern.permute.xlu1 %v10683_v26  ;;  %4554 = vperm.xlu2 %6083, %v4412_v57  }
 0x496   :  { %4663 = vperm.xlu0 %6088, %v4413_v32   ;;  %4550 = vperm.xlu1 %6079, %v4411_v40  }
 0x497   :  { %v9479_v13 = vpop.f32.mrf.mxu2 }
 0x499   :  { %v4385_v29 = vpop.f32.mrf.mxu0 }
 0x49a   :  { %v4386_v6 = vadd.f32 %v4385_v29, %v9429_v59 }
 0x49c   :  { %v4415_v37 = vmax.f32 %v4386_v6, 0.0  ;;  %v9574_v6 = vld [vmem:[%s10103_s7 + $0x88] sm:$0xff] }
 0x49d   :  { %6084 = vset.pattern.permute.xlu2 %v10684_v35 }
 0x49e   :  { %6080 = vset.pattern.permute.xlu1 %v10684_v35  ;;  %4659 = vperm.xlu2 %6084, %v4412_v57  }
 0x49f   :  { %4655 = vperm.xlu1 %6080, %v4411_v40   ;;  %6095 = vset.pattern.permute.xlu0 %v10683_v26  ;;  %v9490_v48 = vpop.f32.mrf.mxu2 }
 0x4a0   :  { %4566 = vperm.xlu0 %6095, %v4415_v37  }
 0x4a1   :  { %v4388_v17 = vpop.f32.mrf.mxu0 }
 0x4a2   :  { %v4389_v49 = vadd.f32 %v4388_v17, %v9429_v59  ;;  %v9579_v17 = vld [vmem:[%s10103_s7 + $0xc8] sm:$0xff] }
 0x4a4   :  { %v4416_v20 = vmax.f32 %v4389_v49, 0.0 }
 0x4a6   :  { %6089 = vset.pattern.permute.xlu2 %v10682_v5 }
 0x4a7   :  { %6085 = vset.pattern.permute.xlu1 %v10682_v5  ;;  %4768 = vperm.xlu2 %6089, %v4413_v32   ;;  %v9499_v10 = vpop.f32.mrf.mxu2 }
 0x4a8   :  { %4764 = vperm.xlu1 %6085, %v4412_v57   ;;  %6097 = vset.pattern.permute.xlu0 %v10682_v5 }
 0x4a9   :  { %4776 = vperm.xlu0 %6097, %v4415_v37   ;;  %v4390_v27 = vpop.f32.mrf.mxu0 }
 0x4aa   :  { %v4391_v0 = vadd.f32 %v4390_v27, %v9429_v59 }
 0x4ac   :  { %v9485_v3 = vmax.f32 %v4391_v0, 0.0 }
 0x4af   :  { %6090 = vset.pattern.permute.xlu2 %v10681_v42  ;;  %v9521_v50 = vpop.f32.mrf.mxu2 }
 0x4b0   :  { %6086 = vset.pattern.permute.xlu1 %v10681_v42  ;;  %4464 = vperm.xlu2 %6090, %v4414_v1  }
 0x4b1   :  { %4459 = vperm.xlu1 %6086, %v4413_v32   ;;  %6100 = vset.pattern.permute.xlu0 %v10684_v35  ;;  %v4393_v15 = vpop.f32.mrf.mxu0 }
 0x4b2   :  { %4675 = vperm.xlu0 %6100, %v4416_v20   ;;  %v4394_v33 = vadd.f32 %v4393_v15, %v9429_v59 }
 0x4b4   :  { %v9494_v9 = vmax.f32 %v4394_v33, 0.0  ;;  %v9601_v33 = vld [vmem:[%s10103_s7 + $0x10] sm:$0xff] }
 0x4b7   :  { %v9549_v40 = vpop.f32.mrf.mxu2 }
 0x4b8   :  { %6091 = vset.pattern.permute.xlu2 %v10683_v26 }
 0x4b9   :  { %6087 = vset.pattern.permute.xlu1 %v10683_v26  ;;  %4562 = vperm.xlu2 %6091, %v4414_v1   ;;  %v4395_v36 = vpop.f32.mrf.mxu0 }
 0x4ba   :  { %4558 = vperm.xlu1 %6087, %v4413_v32   ;;  %6101 = vset.pattern.permute.xlu0 %v10682_v5  ;;  %v4396_v7 = vadd.f32 %v4395_v36, %v9429_v59 }
 0x4bb   :  { %4780 = vperm.xlu0 %6101, %v4416_v20  }
 0x4bc   :  { %v9513_v54 = vmax.f32 %v4396_v7, 0.0  ;;  %v9609_v7 = vld [vmem:[%s10103_s7 + $0x90] sm:$0xff] }
 0x4c0   :  { %v9482_v62 = vpop.permute.xlu2 %4748 }
 0x4c1   :  { %6093 = vset.pattern.permute.xlu2 %v10682_v5  ;;  %v4398_v38 = vpop.f32.mrf.mxu0  ;;  %v4811_v61 = vmul.f32 %v9554_v31, %v9482_v62 }
 0x4c2   :  { %6092 = vset.pattern.permute.xlu1 %v10684_v35  ;;  %4772 = vperm.xlu2 %6093, %v4414_v1   ;;  %v4399_v45 = vadd.f32 %v4398_v38, %v9429_v59 }
 0x4c3   :  { %4667 = vperm.xlu1 %6092, %v4414_v1   ;;  %6102 = vset.pattern.permute.xlu0 %v10681_v42  ;;  %v9582_v1 = vpop.f32.mrf.mxu2 }
 0x4c4   :  { %4479 = vperm.xlu0 %6102, %v9485_v3   ;;  %v9524_v43 = vmax.f32 %v4399_v45, 0.0 }
 0x4c9   :  { %v4440_v47 = vpop.permute.xlu2 %4439  ;;  %v4400_v30 = vpop.f32.mrf.mxu0 }
 0x4ca   :  { %6096 = vset.pattern.permute.xlu2 %v10684_v35  ;;  %v4513_v8 = vmul.f32 %v4440_v47, %v9505_v51  ;;  %v4401_v28 = vadd.f32 %v4400_v30, %v9429_v59 }
 0x4cb   :  { %6094 = vset.pattern.permute.xlu1 %v10681_v42  ;;  %4671 = vperm.xlu2 %6096, %v4415_v37  }
 0x4cc   :  { %4469 = vperm.xlu1 %6094, %v4415_v37   ;;  %6107 = vset.pattern.permute.xlu0 %v10683_v26  ;;  %v9558_v57 = vmax.f32 %v4401_v28, 0.0 }
 0x4cd   :  { %4578 = vperm.xlu0 %6107, %v9494_v9  }
 0x4d1   :  { %v4403_v62 = vpop.f32.mrf.mxu0 }
 0x4d2   :  { %v4404_v36 = vadd.f32 %v4403_v62, %v9429_v59  ;;  %v9661_v62 = vperm.slane %v9377_v39, 5 }
 0x4d3   :  { %6098 = vset.pattern.permute.xlu2 %v10681_v42  ;;  %v4543_v4 = vpop.permute.xlu2 %4542 }
 0x4d4   :  { %6099 = vset.pattern.permute.xlu1 %v10683_v26  ;;  %4474 = vperm.xlu2 %6098, %v4416_v20   ;;  %v4602_v14 = vmul.f32 %v9510_v23, %v4543_v4 }
 0x4d5   :  { %4570 = vperm.xlu1 %6099, %v4416_v20   ;;  %6112 = vset.pattern.permute.xlu0 %v10684_v35 }
 0x4d6   :  { %v4618_v22 = vadd.f32 %v4602_v14, %v4513_v8  ;;  %4687 = vperm.xlu0 %6112, %v9513_v54  }
 0x4d8   :  { %v4644_v46 = vpop.permute.xlu0 %4643 }
 0x4d9   :  { %v4435_v34 = vpop.permute.xlu1 %4434  ;;  %v4706_v53 = vmul.f32 %v9545_v44, %v4644_v46  ;;  %v9616_v46 = vmax.f32 %v4404_v36, 0.0  ;;  %v4405_v28 = vpop.f32.mrf.mxu0 }
 0x4da   :  { %v4512_v41 = vmul.f32 %v4435_v34, %v9534_v19 }
 0x4dc   :  { %6103 = vset.pattern.permute.xlu2 %v10683_v26  ;;  %v4652_v25 = vpop.permute.xlu2 %4651 }
 0x4dd   :  { %6104 = vset.pattern.permute.xlu1 %v10684_v35  ;;  %4574 = vperm.xlu2 %6103, %v9485_v3   ;;  %v4708_v45 = vmul.f32 %v9609_v7, %v4652_v25  ;;  %v9632_v25 = vld [vmem:[%s10103_s7 + $0x20] sm:$0xff] }
 0x4de   :  { %4679 = vperm.xlu1 %6104, %v9485_v3   ;;  %6114 = vset.pattern.permute.xlu0 %v10681_v42 }
 0x4df   :  { %4494 = vperm.xlu0 %6114, %v9524_v43  }
 0x4e2   :  { %v4753_v52 = vpop.permute.xlu0 %4752  ;;  %v4539_v60 = vpop.permute.xlu1 %4538 }
 0x4e3   :  { %v4601_v16 = vmul.f32 %v9539_v21, %v4539_v60  ;;  %v4812_v20 = vmul.f32 %v9579_v17, %v4753_v52  ;;  %v9627_v60 = vld [vmem:[%s10103_s7 + $0x60] sm:$0xff] }
 0x4e5   :  { %v4617_v58 = vadd.f32 %v4601_v16, %v4512_v41  ;;  %6108 = vset.pattern.permute.xlu2 %v10684_v35  ;;  %v4406_v41 = vadd.f32 %v4405_v28, %v9429_v59  ;;  %v9643_v16 = vld [vmem:[%s10103_s7 + $0xa0] sm:$0xff] }
 0x4e6   :  { %6105 = vset.pattern.permute.xlu1 %v10682_v5  ;;  %4683 = vperm.xlu2 %6108, %v9494_v9   ;;  %v9562_v56 = vpop.permute.xlu2 %4449  ;;  %10687 = vst [vmem:[#allocation40_spill] sm:$0xff] %v9643_v16 }
 0x4e7   :  { %v4722_v32 = vadd.f32 %v4706_v53, %v4617_v58  ;;  %4784 = vperm.xlu1 %6105, %v9485_v3   ;;  %6121 = vset.pattern.permute.xlu0 %v10683_v26  ;;  %v9596_v3 = vld [vmem:[%s10103_s7 + $0x50] sm:$0xff]  ;;  %v9649_v59 = vmax.f32 %v4406_v41, 0.0 }
 0x4e8   :  { %4590 = vperm.xlu0 %6121, %v9558_v57  }
 0x4e9   :  { %v9569_v29 = vadd.f32 %v4811_v61, %v4722_v32 }
 0x4eb   :  { %10685 = vst [vmem:[#allocation8_spill] sm:$0xff] %v9569_v29  ;;  %v4547_v37 = vpop.permute.xlu0 %4546  ;;  %v9782_v29 = vld [vmem:[%s10103_s7 + $0xe8] sm:$0xff] }
 0x4ec   :  { %v4648_v12 = vpop.permute.xlu1 %4647  ;;  %v4603_v14 = vmul.f32 %v9596_v3, %v4547_v37 }
 0x4ed   :  { %v4707_v49 = vmul.f32 %v9574_v6, %v4648_v12 }
 0x4ee   :  { %6110 = vset.pattern.permute.xlu2 %v10681_v42 }
 0x4ef   :  { %v4723_v27 = vadd.f32 %v4707_v49, %v4618_v22  ;;  %6106 = vset.pattern.permute.xlu1 %v10681_v42  ;;  %4489 = vperm.xlu2 %6110, %v9513_v54   ;;  %v4555_v0 = vpop.permute.xlu2 %4554  ;;  %v4983_v22 = vpop.f32.mrf.mxu2 }
 0x4f0   :  { %4484 = vperm.xlu1 %6106, %v9494_v9   ;;  %6123 = vset.pattern.permute.xlu0 %v10682_v5  ;;  %v4605_v58 = vmul.f32 %v9627_v60, %v4555_v0 }
 0x4f1   :  { %v9590_v15 = vadd.f32 %v4812_v20, %v4723_v27  ;;  %4800 = vperm.xlu0 %6123, %v9558_v57  }
 0x4f3   :  { %10686 = vst [vmem:[#allocation22_spill] sm:$0xff] %v9590_v15 }
 0x4f5   :  { %v9611_v4 = vpop.permute.xlu0 %4760  ;;  %v4445_v8 = vpop.permute.xlu1 %4444 }
 0x4f6   :  { %v4514_v38 = vmul.f32 %v4445_v8, %v9601_v33  ;;  %v9666_v8 = vadd.f32 %v9521_v50, %v9661_v62 }
 0x4f7   :  { %6113 = vset.pattern.permute.xlu2 %v10682_v5  ;;  %v4985_v27 = vpop.f32.mrf.mxu2 }
 0x4f8   :  { %v4619_v34 = vadd.f32 %v4603_v14, %v4514_v38  ;;  %6109 = vset.pattern.permute.xlu1 %v10682_v5  ;;  %4792 = vperm.xlu2 %6113, %v9513_v54   ;;  %v4660_v30 = vpop.permute.xlu2 %4659  ;;  %v9671_v14 = vld [vmem:[%s10103_s7 + $0x18] sm:$0xff]  ;;  %v10282_v39 = vmax.f32 %v9666_v8, 0.0 }
 0x4f9   :  { %4788 = vperm.xlu1 %6109, %v9494_v9   ;;  %6126 = vset.pattern.permute.xlu0 %v10684_v35  ;;  %v9638_v9 = vld [vmem:[%s10103_s7 + $0xd0] sm:$0xff]  ;;  %v4710_v12 = vmul.f32 %v9643_v16, %v4660_v30 }
 0x4fa   :  { %4699 = vperm.xlu0 %6126, %v9616_v46   ;;  %v4724_v52 = vadd.f32 %v4708_v45, %v4619_v34  ;;  %v4515_v45 = vmul.f32 %v9562_v56, %v9671_v14  ;;  %v4984_v56 = vadd.f32 %v4983_v22, %v9661_v62  ;;  %v9710_v22 = vld [vmem:[%s10103_s7 + $0x70] sm:$0xff] }
 0x4fe   :  { %v4455_v53 = vpop.permute.xlu0 %4454 }
 0x4ff   :  { %v4516_v61 = vmul.f32 %v4455_v53, %v9632_v25  ;;  %v4757_v32 = vpop.permute.xlu1 %4756  ;;  %v9695_v53 = vld [vmem:[%s10103_s7 + $0x98] sm:$0xff] }
 0x500   :  { %v4813_v37 = vmul.f32 %v9638_v9, %v4757_v32  ;;  %6115 = vset.pattern.permute.xlu2 %v10683_v26 }
 0x501   :  { %v4621_v49 = vadd.f32 %v4605_v58, %v4516_v61  ;;  %6111 = vset.pattern.permute.xlu1 %v10683_v26  ;;  %4586 = vperm.xlu2 %6115, %v9524_v43   ;;  %v9654_v20 = vpop.permute.xlu2 %4768  ;;  %v9700_v58 = vld [vmem:[%s10103_s7 + $0xd8] sm:$0xff]  ;;  %v5005_v61 = vmax.f32 %v4984_v56, 0.0 }
 0x502   :  { %v9656_v0 = vadd.f32 %v4813_v37, %v4724_v52  ;;  %4582 = vperm.xlu1 %6111, %v9513_v54   ;;  %6129 = vset.pattern.permute.xlu0 %v10681_v42  ;;  %v9676_v54 = vld [vmem:[%s10103_s7 + $0x58] sm:$0xff]  ;;  %v4988_v52 = vpop.f32.mrf.mxu2 }
 0x503   :  { %4509 = vperm.xlu0 %6129, %v9649_v59   ;;  %v4726_v36 = vadd.f32 %v4710_v12, %v4621_v49  ;;  %v4989_v41 = vadd.f32 %v4988_v52, %v9661_v62 }
 0x504   :  { %10688 = vst [vmem:[#allocation9_spill] sm:$0xff] %v9656_v0  ;;  %v4816_v0 = vmul.f32 %v9782_v29, %v9654_v20 }
 0x505   :  { %v5007_v49 = vmax.f32 %v4989_v41, 0.0 }
 0x508   :  { %v4551_v38 = vpop.permute.xlu1 %4550  ;;  %v9683_v50 = vpop.permute.xlu0 %4663 }
 0x509   :  { %v4604_v34 = vmul.f32 %v9676_v54, %v4551_v38  ;;  %6117 = vset.pattern.permute.xlu2 %v10682_v5  ;;  %v4814_v38 = vmul.f32 %v9700_v58, %v9611_v4  ;;  %v9729_v4 = vld [vmem:[%s10103_s7 + $0xe0] sm:$0xff] }
 0x50a   :  { %6116 = vset.pattern.permute.xlu1 %v10684_v35  ;;  %4796 = vperm.xlu2 %6117, %v9524_v43   ;;  %v4465_v30 = vpop.permute.xlu2 %4464  ;;  %10690 = vst [vmem:[#allocation41_spill] sm:$0xff] %v9729_v4 }
 0x50b   :  { %v4620_v28 = vadd.f32 %v4604_v34, %v4515_v45  ;;  %4691 = vperm.xlu1 %6116, %v9524_v43   ;;  %5064 = vperm.xlu0 %6129, %v10282_v39   ;;  %v9705_v43 = vld [vmem:[%s10103_s7 + $0x30] sm:$0xff] }
 0x50c   :  { %v4518_v34 = vmul.f32 %v4465_v30, %v9705_v43 }
 0x511   :  { %v4656_v32 = vpop.permute.xlu1 %4655 }
 0x512   :  { %v4709_v37 = vmul.f32 %v9695_v53, %v4656_v32  ;;  %6118 = vset.pattern.permute.xlu2 %v10681_v42  ;;  %v9714_v12 = vpop.permute.xlu0 %4566  ;;  %v4986_v32 = vadd.f32 %v4985_v27, %v9661_v62 }
 0x513   :  { %6120 = vset.pattern.permute.xlu1 %v10681_v42  ;;  %5079 = vperm.xlu2 %6118, %v5005_v61   ;;  %v4563_v45 = vpop.permute.xlu2 %4562 }
 0x514   :  { %v4725_v52 = vadd.f32 %v4709_v37, %v4620_v28  ;;  %v4607_v56 = vmul.f32 %v9710_v22, %v4563_v45  ;;  %6136 = vset.pattern.permute.xlu0 %v10683_v26  ;;  %4499 = vperm.xlu1 %6120, %v9558_v57   ;;  %v5006_v28 = vmax.f32 %v4986_v32, 0.0 }
 0x515   :  { %5179 = vperm.xlu0 %6136, %v5007_v49  }
 0x516   :  { %v9724_v41 = vadd.f32 %v4814_v38, %v4725_v52  ;;  %v4623_v47 = vadd.f32 %v4607_v56, %v4518_v34  ;;  %v9741_v34 = vadd.f32 %v9549_v40, %v9661_v62  ;;  %v9754_v40 = vadd.f32 %v9479_v13, %v9661_v62 }
 0x518   :  { %10689 = vst [vmem:[#allocation23_spill] sm:$0xff] %v9724_v41  ;;  %v10283_v52 = vmax.f32 %v9741_v34, 0.0 }
 0x51a   :  { %v4765_v37 = vpop.permute.xlu1 %4764 }
 0x51b   :  { %v4815_v45 = vmul.f32 %v9729_v4, %v4765_v37  ;;  %6119 = vset.pattern.permute.xlu2 %v10683_v26  ;;  %v9735_v39 = vpop.permute.xlu0 %4776  ;;  %v10286_v37 = vmax.f32 %v9754_v40, 0.0 }
 0x51c   :  { %5084 = vperm.xlu1 %6120, %v5006_v28   ;;  %5171 = vperm.xlu2 %6119, %v5005_v61   ;;  %v4773_v27 = vpop.permute.xlu2 %4772  ;;  %v9759_v61 = vld [vmem:[%s10103_s7 + $0x28] sm:$0xff] }
 0x51d   :  { %v9737_v38 = vadd.f32 %v4815_v45, %v4726_v36  ;;  %5175 = vperm.xlu0 %6136, %v5006_v28   ;;  %v9764_v28 = vld [vmem:[%s10103_s7 + $0x68] sm:$0xff] }
 0x51f   :  { %10691 = vst [vmem:[#allocation96_spill] sm:$0xff] %v9737_v38  ;;  %v9829_v38 = vld [vmem:[%s10103_s7 + $0x78] sm:$0xff] }
 0x523   :  { %v4460_v56 = vpop.permute.xlu1 %4459 }
 0x524   :  { %6125 = vset.pattern.permute.xlu1 %v10683_v26  ;;  %6122 = vset.pattern.permute.xlu2 %v10684_v35  ;;  %v9746_v32 = vpop.permute.xlu0 %4675  ;;  %v4517_v13 = vmul.f32 %v4460_v56, %v9759_v61  ;;  %v9787_v56 = vadd.f32 %v9474_v11, %v9661_v62  ;;  %v9805_v11 = vld [vmem:[%s10103_s7 + $0xf0] sm:$0xff] }
 0x525   :  { %5163 = vperm.xlu0 %6136, %v10283_v52   ;;  %4594 = vperm.xlu1 %6125, %v9616_v46   ;;  %v4672_v36 = vpop.permute.xlu2 %4671 }
 0x526   :  { %4695 = vperm.xlu2 %6122, %v9558_v57   ;;  %v9770_v57 = vld [vmem:[%s10103_s7 + $0xa8] sm:$0xff]  ;;  %v10291_v4 = vmax.f32 %v9787_v56, 0.0 }
 0x52c   :  { %v4559_v45 = vpop.permute.xlu1 %4558 }
 0x52d   :  { %v4606_v30 = vmul.f32 %v9764_v28, %v4559_v45  ;;  %5147 = vperm.xlu0 %6136, %v10286_v37   ;;  %6128 = vset.pattern.permute.xlu1 %v10681_v42  ;;  %v9777_v52 = vpop.permute.xlu0 %4780  ;;  %v4711_v45 = vmul.f32 %v9770_v57, %v9683_v50 }
 0x52e   :  { %6124 = vset.pattern.permute.xlu2 %v10681_v42  ;;  %5089 = vperm.xlu1 %6128, %v5007_v49   ;;  %v4475_v15 = vpop.permute.xlu2 %4474  ;;  %v9798_v49 = vld [vmem:[%s10103_s7 + $0xb0] sm:$0xff] }
 0x52f   :  { %v4622_v37 = vadd.f32 %v4606_v30, %v4517_v13  ;;  %4504 = vperm.xlu2 %6124, %v9616_v46  }
 0x531   :  { %v4727_v41 = vadd.f32 %v4711_v45, %v4622_v37  ;;  %v4817_v45 = vmul.f32 %v9805_v11, %v4773_v27 }
 0x533   :  { %v9800_v16 = vadd.f32 %v4816_v0, %v4727_v41  ;;  %v9815_v0 = vadd.f32 %v9453_v63, %v9661_v62 }
 0x535   :  { %5143 = vperm.xlu0 %6136, %v10291_v4   ;;  %v4668_v50 = vpop.permute.xlu1 %4667  ;;  %v4995_v63 = vmax.f32 %v9815_v0, 0.0 }
 0x536   :  { %v4712_v30 = vmul.f32 %v9798_v49, %v4668_v50  ;;  %6131 = vset.pattern.permute.xlu1 %v10684_v35  ;;  %v4480_v37 = vpop.permute.xlu0 %4479 }
 0x537   :  { %6127 = vset.pattern.permute.xlu2 %v10682_v5  ;;  %v4521_v41 = vmul.f32 %v4480_v37, %v9505_v51  ;;  %4703 = vperm.xlu1 %6131, %v9649_v59   ;;  %v4575_v13 = vpop.permute.xlu2 %4574  ;;  %v9834_v51 = vld [vmem:[%s10103_s7 + $0x38] sm:$0xff] }
 0x538   :  { %v4728_v4 = vadd.f32 %v4712_v30, %v4623_v47  ;;  %4804 = vperm.xlu2 %6127, %v9616_v46   ;;  %v4610_v50 = vmul.f32 %v9510_v23, %v4575_v13  ;;  %v9841_v23 = vld [vmem:[%s10103_s7 + $0xb8] sm:$0xff]  ;;  %v4608_v46 = vmul.f32 %v9829_v38, %v9714_v12  ;;  %v9849_v30 = vadd.f32 %v9447_v18, %v9661_v62 }
 0x539   :  { %v9854_v37 = vld [vmem:[%s10103_s7 + $0xf8] sm:$0xff]  ;;  %v4713_v12 = vmul.f32 %v9841_v23, %v4672_v36 }
 0x53a   :  { %v9823_v35 = vadd.f32 %v4817_v45, %v4728_v4  ;;  %v4626_v20 = vadd.f32 %v4610_v50, %v4521_v41  ;;  %v4994_v45 = vmax.f32 %v9849_v30, 0.0  ;;  %v4981_v50 = vadd.f32 %v9582_v1, %v9661_v62 }
 0x53b   :  { %v10692_v1 = vmax.f32 %v9741_v34, 0.0 }
 0x53d   :  { %5131 = vperm.xlu0 %6136, %v4995_v63  }
 0x53e   :  { %v4470_v47 = vpop.permute.xlu1 %4469 }
 0x53f   :  { %v4519_v4 = vmul.f32 %v4470_v47, %v9834_v51  ;;  %6132 = vset.pattern.permute.xlu1 %v10682_v5  ;;  %v4579_v27 = vpop.permute.xlu0 %4578  ;;  %v4818_v5 = vmul.f32 %v9854_v37, %v9735_v39  ;;  %v4520_v39 = vmul.f32 %v4475_v15, %v9534_v19  ;;  %v4974_v19 = vadd.f32 %v9499_v10, %v9661_v62 }
 0x540   :  { %6130 = vset.pattern.permute.xlu2 %v10683_v26  ;;  %4808 = vperm.xlu1 %6132, %v9649_v59   ;;  %v4684_v41 = vpop.permute.xlu2 %4683 }
 0x541   :  { %v4624_v13 = vadd.f32 %v4608_v46, %v4519_v4  ;;  %4598 = vperm.xlu2 %6130, %v9649_v59   ;;  %v5004_v46 = vmax.f32 %v4981_v50, 0.0 }
 0x543   :  { %v4729_v18 = vadd.f32 %v4713_v12, %v4624_v13 }
 0x545   :  { %6145 = vset.pattern.permute.xlu0 %v10681_v42  ;;  %v9866_v47 = vadd.f32 %v4818_v5, %v4729_v18  ;;  %v4714_v5 = vmul.f32 %v9545_v44, %v9746_v32 }
 0x546   :  { %5024 = vperm.xlu0 %6145, %v4994_v45  }
 0x547   :  { %v4571_v36 = vpop.permute.xlu1 %4570  ;;  %v4846_v59 = vpack.c.bf16 %v9866_v47, %v9823_v35  ;;  %v10030_v35 = vld [vmem:[%s10098_s2] sm:$0x1] }
 0x548   :  { %v4609_v4 = vmul.f32 %v9539_v21, %v4571_v36  ;;  %6133 = vset.pattern.permute.xlu1 %v10681_v42  ;;  %v9875_v12 = vpop.permute.xlu0 %4687  ;;  %v4819_v21 = vmul.f32 %v9554_v31, %v9777_v52  ;;  %v5001_v36 = vmax.f32 %v4974_v19, 0.0  ;;  %v4611_v19 = vmul.f32 %v9596_v3, %v4579_v27  ;;  %v4990_v27 = vpop.f32.mrf.mxu2 }
 0x549   :  { %6134 = vset.pattern.permute.xlu2 %v10681_v42  ;;  %5069 = vperm.xlu1 %6133, %v10692_v1   ;;  %v4490_v13 = vpop.permute.xlu2 %4489 }
 0x54a   :  { %v4625_v18 = vadd.f32 %v4609_v4, %v4520_v39  ;;  %5074 = vperm.xlu2 %6134, %v5004_v46   ;;  %v10693_v4 = vmax.f32 %v9666_v8, 0.0  ;;  %v10694_v8 = vmax.f32 %v9754_v40, 0.0 }
 0x54c   :  { %v4730_v15 = vadd.f32 %v4714_v5, %v4625_v18 }
 0x54e   :  { %v9886_v50 = vadd.f32 %v4819_v21, %v4730_v15  ;;  %6147 = vset.pattern.permute.xlu0 %v10683_v26 }
 0x550   :  { %v4680_v34 = vpop.permute.xlu1 %4679 }
 0x551   :  { %v4715_v1 = vmul.f32 %v9574_v6, %v4680_v34  ;;  %6135 = vset.pattern.permute.xlu1 %v10683_v26  ;;  %v9891_v44 = vpop.permute.xlu0 %4494 }
 0x552   :  { %5059 = vperm.xlu2 %6134, %v5001_v36   ;;  %5167 = vperm.xlu1 %6135, %v5004_v46   ;;  %v4793_v32 = vpop.permute.xlu2 %4792  ;;  %v4971_v46 = vadd.f32 %v9490_v48, %v9661_v62 }
 0x553   :  { %v4731_v10 = vadd.f32 %v4715_v1, %v4626_v20  ;;  %v4964_v1 = vadd.f32 %v9466_v2, %v9661_v62  ;;  %v9930_v2 = vld [vmem:[%s10105_s9 + $0x20] sm:$0xff] }
 0x554   :  { %v5000_v18 = vmax.f32 %v4971_v46, 0.0 }
 0x555   :  { %v4997_v3 = vmax.f32 %v4964_v1, 0.0 }
 0x559   :  { %v4785_v39 = vpop.permute.xlu1 %4784 }
 0x55a   :  { %v4820_v31 = vmul.f32 %v9579_v17, %v4785_v39  ;;  %6137 = vset.pattern.permute.xlu2 %v10683_v26  ;;  %5155 = vperm.xlu1 %6135, %v5001_v36   ;;  %v9895_v52 = vpop.permute.xlu0 %4590  ;;  %v4716_v36 = vmul.f32 %v9609_v7, %v4684_v41 }
 0x55b   :  { %5159 = vperm.xlu2 %6137, %v10693_v4   ;;  %v9899_v6 = vpop.permute.xlu2 %4586  ;;  %v4991_v4 = vadd.f32 %v4990_v27, %v9661_v62 }
 0x55c   :  { %v9901_v5 = vadd.f32 %v4820_v31, %v4731_v10  ;;  %v4613_v30 = vmul.f32 %v9627_v60, %v9899_v6 }
 0x55d   :  { %v5008_v41 = vmax.f32 %v4991_v4, 0.0 }
 0x55e   :  { %v4847_v20 = vpack.c.bf16 %v9901_v5, %v9886_v50  ;;  %v5015_v5 = vld [vmem:[%s10105_s9 + $0x30] sm:$0xff] }
 0x562   :  { %6138 = vset.pattern.permute.xlu1 %v10681_v42  ;;  %v4485_v17 = vpop.permute.xlu1 %4484 }
 0x563   :  { %v4522_v21 = vmul.f32 %v4485_v17, %v9601_v33  ;;  %6139 = vset.pattern.permute.xlu2 %v10681_v42  ;;  %5049 = vperm.xlu1 %6138, %v10694_v8   ;;  %v9913_v15 = vpop.permute.xlu0 %4800  ;;  %v4717_v8 = vmul.f32 %v9695_v53, %v9875_v12 }
 0x564   :  { %5054 = vperm.xlu2 %6139, %v5000_v18   ;;  %v9915_v48 = vpop.permute.xlu2 %4796 }
 0x565   :  { %v4627_v34 = vadd.f32 %v4611_v19, %v4522_v21 }
 0x567   :  { %v4732_v10 = vadd.f32 %v4716_v36, %v4627_v34 }
 0x56b   :  { %6140 = vset.pattern.permute.xlu1 %v10683_v26  ;;  %v4789_v33 = vpop.permute.xlu1 %4788 }
 0x56c   :  { %v4821_v40 = vmul.f32 %v9638_v9, %v4789_v33  ;;  %5039 = vperm.xlu2 %6139, %v4997_v3   ;;  %5151 = vperm.xlu1 %6140, %v5000_v18   ;;  %v9922_v39 = vpop.permute.xlu0 %4699  ;;  %v9935_v9 = vld [vmem:[%s10105_s9 + $0x60] sm:$0xff]  ;;  %v4523_v18 = vmul.f32 %v4490_v13, %v9671_v14  ;;  %v10695_v14 = vmax.f32 %v9787_v56, 0.0 }
 0x56d   :  { %v5080_v31 = vpop.permute.xlu2 %5079 }
 0x56e   :  { %v9925_v7 = vadd.f32 %v4821_v40, %v4732_v10  ;;  %v5109_v36 = vmul.f32 %v5080_v31, %v9930_v2  ;;  %v4822_v10 = vmul.f32 %v9700_v58, %v4793_v32  ;;  %v4961_v58 = vadd.f32 %v9460_v24, %v9661_v62  ;;  %v9968_v24 = vld [vmem:[%s10105_s9 + $0x28] sm:$0xff] }
 0x56f   :  { %v4954_v31 = vadd.f32 %v9441_v55, %v9661_v62 }
 0x570   :  { %v4996_v32 = vmax.f32 %v4961_v58, 0.0  ;;  %v4614_v58 = vmul.f32 %v9764_v28, %v9895_v52 }
 0x571   :  { %v4993_v4 = vmax.f32 %v4954_v31, 0.0 }
 0x574   :  { %5094 = vperm.xlu2 %6139, %v5008_v41   ;;  %5183 = vperm.xlu1 %6140, %v5008_v41   ;;  %v4583_v46 = vpop.permute.xlu1 %4582 }
 0x575   :  { %v4612_v17 = vmul.f32 %v9676_v54, %v4583_v46  ;;  %v4510_v19 = vpop.permute.xlu0 %4509 }
 0x576   :  { %v5172_v21 = vpop.permute.xlu2 %5171 }
 0x577   :  { %v4628_v34 = vadd.f32 %v4612_v17, %v4523_v18  ;;  %v5198_v1 = vmul.f32 %v9935_v9, %v5172_v21 }
 0x579   :  { %v4733_v27 = vadd.f32 %v4717_v8, %v4628_v34  ;;  %v9944_v33 = vadd.f32 %v5198_v1, %v5109_v36 }
 0x57b   :  { %v9946_v40 = vadd.f32 %v4822_v10, %v4733_v27 }
 0x57c   :  { %6142 = vset.pattern.permute.xlu2 %v10683_v26  ;;  %6141 = vset.pattern.permute.xlu1 %v10681_v42 }
 0x57d   :  { %5139 = vperm.xlu2 %6142, %v4997_v3   ;;  %5044 = vperm.xlu1 %6141, %v10695_v14   ;;  %v4692_v54 = vpop.permute.xlu1 %4691  ;;  %v9952_v53 = vpop.permute.xlu0 %5064  ;;  %v4848_v12 = vpack.c.bf16 %v9946_v40, %v9925_v7  ;;  %v10703_v40 = vld [vmem:[#allocation22_spill] sm:$0xff] }
 0x580   :  { %v4696_v13 = vpop.permute.xlu2 %4695 }
 0x581   :  { %v4719_v28 = vmul.f32 %v9770_v57, %v4696_v13 }
 0x585   :  { %6143 = vset.pattern.permute.xlu2 %v10681_v42  ;;  %5029 = vperm.xlu1 %6141, %v4995_v63   ;;  %v9974_v42 = vld [vmem:[%s10105_s9 + $0x68] sm:$0xff] }
 0x586   :  { %5034 = vperm.xlu2 %6143, %v4996_v32   ;;  %v4500_v3 = vpop.permute.xlu1 %4499 }
 0x587   :  { %v9961_v56 = vpop.permute.xlu0 %5179  ;;  %v4525_v27 = vmul.f32 %v4500_v3, %v9759_v61  ;;  %v10696_v61 = vld [vmem:[#allocation40_spill] sm:$0xff] }
 0x588   :  { %v4718_v3 = vmul.f32 %v10696_v61, %v4692_v54  ;;  %v10697_v54 = vld [vmem:[#allocation41_spill] sm:$0xff] }
 0x589   :  { %v4505_v41 = vpop.permute.xlu2 %4504  ;;  %v4630_v31 = vadd.f32 %v4614_v58, %v4525_v27  ;;  %v4823_v57 = vmul.f32 %v10697_v54, %v9915_v48  ;;  %v10698_v48 = vld [vmem:[#allocation96_spill] sm:$0xff] }
 0x58a   :  { %v4526_v14 = vmul.f32 %v4505_v41, %v9705_v43  ;;  %v4524_v43 = vmul.f32 %v9891_v44, %v9632_v25  ;;  %v5016_v58 = vld [vmem:[%s10105_s9 + $0x38] sm:$0xff] }
 0x58b   :  { %v4735_v60 = vadd.f32 %v4719_v28, %v4630_v31  ;;  %v5011_v28 = vld [vmem:[%s10105_s9 + $0x10] sm:$0xff] }
 0x58c   :  { %v4629_v41 = vadd.f32 %v4613_v30, %v4524_v43  ;;  %v5869_v43 = vld [vmem:[%s10105_s9 + $0x58] sm:$0xff] }
 0x58d   :  { %6144 = vset.pattern.permute.xlu1 %v10683_v26 }
 0x58e   :  { %5019 = vperm.xlu2 %6143, %v4993_v4   ;;  %5135 = vperm.xlu1 %6144, %v4996_v32   ;;  %v5085_v0 = vpop.permute.xlu1 %5084 }
 0x58f   :  { %v5110_v63 = vmul.f32 %v5085_v0, %v9968_v24  ;;  %v5176_v55 = vpop.permute.xlu0 %5175 }
 0x590   :  { %v5199_v62 = vmul.f32 %v9974_v42, %v5176_v55 }
 0x592   :  { %v9978_v46 = vadd.f32 %v5199_v62, %v5110_v63  ;;  %v4805_v17 = vpop.permute.xlu2 %4804 }
 0x593   :  { %v4825_v6 = vmul.f32 %v9805_v11, %v4805_v17  ;;  %v10699_v17 = vpack.c.bf16 %v9800_v16, %v10698_v48 }
 0x594   :  { %v5224_v18 = vpack.c.bf16 %v9978_v46, %v9944_v33 }
 0x596   :  { %6146 = vset.pattern.permute.xlu2 %v10683_v26  ;;  %5123 = vperm.xlu1 %6144, %v4993_v4  }
 0x597   :  { %5127 = vperm.xlu2 %6146, %v4994_v45   ;;  %v4595_v21 = vpop.permute.xlu1 %4594  ;;  %v4720_v45 = vmul.f32 %v9798_v49, %v9922_v39  ;;  %v5164_v16 = vpop.permute.xlu0 %5163 }
 0x598   :  { %v4615_v34 = vmul.f32 %v9710_v22, %v4595_v21  ;;  %v4527_v22 = vmul.f32 %v4510_v19, %v9834_v51  ;;  %v4734_v19 = vadd.f32 %v4718_v3, %v4629_v41  ;;  %v5012_v3 = vld [vmem:[%s10105_s9 + $0x18] sm:$0xff]  ;;  %v5866_v41 = vld [vmem:[%s10105_s9 + $0x40] sm:$0xff] }
 0x59a   :  { %v4631_v26 = vadd.f32 %v4615_v34, %v4526_v14  ;;  %v4839_v55 = vadd.f32 %v4823_v57, %v4734_v19  ;;  %v10701_v34 = vld [vmem:[#allocation9_spill] sm:$0xff] }
 0x59b   :  { %v4599_v8 = vpop.permute.xlu2 %4598 }
 0x59c   :  { %v4616_v32 = vmul.f32 %v9829_v38, %v4599_v8  ;;  %v4736_v52 = vadd.f32 %v4720_v45, %v4631_v26  ;;  %v10700_v8 = vld [vmem:[#allocation23_spill] sm:$0xff] }
 0x59e   :  { %v4632_v38 = vadd.f32 %v4616_v32, %v4527_v22  ;;  %v4841_v25 = vadd.f32 %v4825_v6, %v4736_v52  ;;  %v5873_v32 = vld [vmem:[%s10105_s9 + $0x78] sm:$0xff]  ;;  %v5009_v6 = vld [vmem:[%s10105_s9] sm:$0xff] }
 0x5a0   :  { %v5090_v36 = vpop.permute.xlu1 %5089 }
 0x5a1   :  { %v5111_v14 = vmul.f32 %v5090_v36, %v5015_v5 }
 0x5a4   :  { %v9986_v10 = vpop.permute.xlu2 %5074 }
 0x5a9   :  { %v4704_v1 = vpop.permute.xlu1 %4703 }
 0x5aa   :  { %v4721_v4 = vmul.f32 %v9841_v23, %v4704_v1  ;;  %v4824_v23 = vmul.f32 %v9782_v29, %v9913_v15  ;;  %v10702_v1 = vpack.c.bf16 %v10700_v8, %v10701_v34 }
 0x5ac   :  { %v4737_v49 = vadd.f32 %v4721_v4, %v4632_v38  ;;  %v5060_v39 = vpop.permute.xlu2 %5059  ;;  %v4840_v63 = vadd.f32 %v4824_v23, %v4735_v60  ;;  %v5148_v4 = vpop.permute.xlu0 %5147 }
 0x5ae   :  { %v4849_v21 = vpack.c.bf16 %v4840_v63, %v4839_v55 }
 0x5b2   :  { %v4809_v0 = vpop.permute.xlu1 %4808 }
 0x5b3   :  { %v4826_v51 = vmul.f32 %v9854_v37, %v4809_v0  ;;  %v5108_v0 = vmul.f32 %v9986_v10, %v5012_v3  ;;  %v5105_v10 = vmul.f32 %v5060_v39, %v5009_v6 }
 0x5b4   :  { %v5144_v63 = vpop.permute.xlu0 %5143 }
 0x5b5   :  { %v4842_v44 = vadd.f32 %v4826_v51, %v4737_v49  ;;  %v5160_v11 = vpop.permute.xlu2 %5159  ;;  %v5867_v49 = vld [vmem:[%s10105_s9 + $0x48] sm:$0xff] }
 0x5b6   :  { %v5195_v57 = vmul.f32 %v5867_v49, %v5160_v11 }
 0x5b7   :  { %v4850_v13 = vpack.c.bf16 %v4842_v44, %v4841_v25  ;;  %v5010_v44 = vld [vmem:[%s10105_s9 + $0x8] sm:$0xff] }
 0x5b8   :  { %v5106_v55 = vmul.f32 %v9952_v53, %v5010_v44 }
 0x5b9   :  { %4852 = vmatpush.bf16.msra.mxu1 %v4850_v13 }
 0x5bb   :  { %v5070_v62 = vpop.permute.xlu1 %5069 }
 0x5bc   :  { %v5107_v60 = vmul.f32 %v5070_v62, %v5011_v28 }
 0x5bd   :  { %4853 = vmatpush.bf16.msra.mxu1 %v4849_v21 }
 0x5be   :  { %v5055_v29 = vpop.permute.xlu2 %5054 }
 0x5bf   :  { %v5104_v48 = vmul.f32 %v5055_v29, %v5016_v58  ;;  %v5132_v29 = vpop.permute.xlu0 %5131 }
 0x5c1   :  { %4854 = vmatpush.bf16.msra.mxu1 %v4848_v12  ;;  %v10704_v12 = vld [vmem:[#allocation8_spill] sm:$0xff] }
 0x5c2   :  { %v10705_v27 = vpack.c.bf16 %v10703_v40, %v10704_v12  ;;  %v5191_v40 = vmul.f32 %v9974_v42, %v5144_v63 }
 0x5c4   :  { %v5168_v37 = vpop.permute.xlu1 %5167 }
 0x5c5   :  { %4855 = vmatpush.bf16.msra.mxu1 %v4847_v20  ;;  %v5872_v20 = vld [vmem:[%s10105_s9 + $0x70] sm:$0xff]  ;;  %v5197_v52 = vmul.f32 %v5869_v43, %v5168_v37 }
 0x5c6   :  { %v5040_v7 = vpop.permute.xlu2 %5039  ;;  %v5200_v45 = vmul.f32 %v5872_v20, %v9961_v56  ;;  %v5868_v56 = vld [vmem:[%s10105_s9 + $0x50] sm:$0xff]  ;;  %v5192_v8 = vmul.f32 %v5872_v20, %v5148_v4 }
 0x5c7   :  { %v5196_v51 = vmul.f32 %v5868_v56, %v5164_v16  ;;  %v5213_v23 = vadd.f32 %v5197_v52, %v5108_v0  ;;  %v6148_v0 = vld [vmem:[%s10106_s10] ss:$0 sm:$0xff] }
 0x5c8   :  { %v5216_v36 = vadd.f32 %v5200_v45, %v5111_v14 }
 0x5c9   :  { %4856 = vmatpush.bf16.msra.mxu1 %v4846_v59  ;;  %v5212_v13 = vadd.f32 %v5196_v51, %v5107_v60 }
 0x5cb   :  { %v5223_v37 = vpack.c.bf16 %v5213_v23, %v5212_v13 }
 0x5cc   :  { %v5156_v15 = vpop.permute.xlu1 %5155 }
 0x5cd   :  { %4857 = vmatpush.bf16.msra.mxu1 %v10699_v17  ;;  %v5194_v19 = vmul.f32 %v5866_v41, %v5156_v15  ;;  %v5211_v15 = vadd.f32 %v5195_v57, %v5106_v55 }
 0x5ce   :  { %v5095_v47 = vpop.permute.xlu2 %5094 }
 0x5cf   :  { %v5112_v22 = vmul.f32 %v5095_v47, %v5016_v58  ;;  %v5210_v62 = vadd.f32 %v5194_v19, %v5105_v10 }
 0x5d1   :  { %4858 = vmatpush.bf16.msra.mxu1 %v10702_v1  ;;  %v5222_v1 = vpack.c.bf16 %v5211_v15, %v5210_v62 }
 0x5d5   :  { %4859 = vmatpush.bf16.msra.mxu1 %v10705_v27  ;;  %v5050_v50 = vpop.permute.xlu1 %5049 }
 0x5d6   :  { %v5103_v17 = vmul.f32 %v5050_v50, %v5015_v5 }
 0x5d7   :  { %v5140_v26 = vpop.permute.xlu2 %5139 }
 0x5d8   :  { %4860 = vmatmul.bf16.vlgmr.msra.gmra.mxu1 %v10030_v35  ;;  %v5208_v33 = vadd.f32 %v5192_v8, %v5103_v17  ;;  %v5190_v46 = vmul.f32 %v9935_v9, %v5140_v26  ;;  %v5025_v26 = vpop.permute.xlu0 %5024 }
 0x5de   :  { %v5152_v59 = vpop.permute.xlu1 %5151 }
 0x5df   :  { %v5193_v21 = vmul.f32 %v5873_v32, %v5152_v59 }
 0x5e0   :  { %v5035_v54 = vpop.permute.xlu2 %5034 }
 0x5e1   :  { %v5209_v34 = vadd.f32 %v5193_v21, %v5104_v48  ;;  %v5100_v5 = vmul.f32 %v5035_v54, %v5012_v3 }
 0x5e3   :  { %v5221_v27 = vpack.c.bf16 %v5209_v34, %v5208_v33 }
 0x5e6   :  { %v5184_v30 = vpop.permute.xlu1 %5183 }
 0x5e7   :  { %v5201_v31 = vmul.f32 %v5873_v32, %v5184_v30 }
 0x5e8   :  { %v5020_v53 = vpop.permute.xlu2 %5019 }
 0x5e9   :  { %v5217_v61 = vadd.f32 %v5201_v31, %v5112_v22  ;;  %v5097_v30 = vmul.f32 %v5020_v53, %v5009_v6 }
 0x5eb   :  { %v5225_v38 = vpack.c.bf16 %v5217_v61, %v5216_v36 }
 0x5ed   :  { %5227 = vmatpush.bf16.msrb.mxu3 %v5225_v38 }
 0x5ef   :  { %v5045_v25 = vpop.permute.xlu1 %5044 }
 0x5f0   :  { %v5102_v39 = vmul.f32 %v5045_v25, %v9968_v24  ;;  %v5188_v24 = vmul.f32 %v5868_v56, %v5132_v29 }
 0x5f1   :  { %5228 = vmatpush.bf16.msrb.mxu3 %v5224_v18  ;;  %v5101_v18 = vmul.f32 %v5040_v7, %v9930_v2  ;;  %v5128_v58 = vpop.permute.xlu2 %5127  ;;  %v5098_v7 = vmul.f32 %v5025_v26, %v5010_v44 }
 0x5f2   :  { %v5207_v12 = vadd.f32 %v5191_v40, %v5102_v39  ;;  %v5187_v32 = vmul.f32 %v5867_v49, %v5128_v58 }
 0x5f3   :  { %v5206_v50 = vadd.f32 %v5190_v46, %v5101_v18 }
 0x5f4   :  { %v5203_v22 = vadd.f32 %v5187_v32, %v5098_v7 }
 0x5f5   :  { %5229 = vmatpush.bf16.msrb.mxu3 %v5223_v37  ;;  %v5220_v16 = vpack.c.bf16 %v5207_v12, %v5206_v50 }
 0x5f7   :  { %v5030_v11 = vpop.permute.xlu1 %5029 }
 0x5f8   :  { %v5099_v47 = vmul.f32 %v5030_v11, %v5011_v28 }
 0x5f9   :  { %5230 = vmatpush.bf16.msrb.mxu3 %v5222_v1 }
 0x5fa   :  { %v5204_v42 = vadd.f32 %v5188_v24, %v5099_v47 }
 0x5fd   :  { %5231 = vmatpush.bf16.msrb.mxu3 %v5221_v27 }
 0x600   :  { %v5136_v59 = vpop.permute.xlu1 %5135 }
 0x601   :  { %v5189_v20 = vmul.f32 %v5869_v43, %v5136_v59  ;;  %5232 = vmatpush.bf16.msrb.mxu3 %v5220_v16  ;;  %v6170_v43 = vld [vmem:[%s10107_s11] sm:$0xff] }
 0x602   :  { %v4851_v36 = vperm.slane %v6170_v43, 4  ;;  %v5226_v38 = vperm.slane %v6170_v43, 6  ;;  %v5249_v54 = vperm.slane %v6170_v43, 7 }
 0x603   :  { %v5205_v14 = vadd.f32 %v5189_v20, %v5100_v5 }
 0x605   :  { %v5219_v9 = vpack.c.bf16 %v5205_v14, %v5204_v42 }
 0x607   :  { %5233 = vmatpush.bf16.msrb.mxu3 %v5219_v9 }
 0x608   :  { %v5124_v2 = vpop.permute.xlu1 %5123 }
 0x609   :  { %v5186_v45 = vmul.f32 %v5866_v41, %v5124_v2 }
 0x60b   :  { %v5202_v31 = vadd.f32 %v5186_v45, %v5097_v30 }
 0x60d   :  { %v5218_v4 = vpack.c.bf16 %v5203_v22, %v5202_v31 }
 0x60f   :  { %5234 = vmatpush.bf16.msrb.mxu3 %v5218_v4 }
 0x612   :  { %5235 = vmatmul.bf16.vlgmr.msrb.gmra.mxu3 %v10030_v35 }
 0x655   :  { %v4861_v61 = vpop.f32.mrf.mxu1 }
 0x656   :  { %v4862_v3 = vadd.f32 %v4861_v61, %v4851_v36 }
 0x658   :  { %v4866_v28 = vsel %vm4865_vm8, %v4862_v3, -inf }
 0x659   :  { %4867 = vmax.xlane.f32.xlu1 %v4866_v28 }
 0x65d   :  { %v4863_v52 = vpop.f32.mrf.mxu1 }
 0x695   :  { %v5236_v56 = vpop.f32.mrf.mxu3 }
 0x696   :  { %v5237_v41 = vadd.f32 %v5236_v56, %v5226_v38 }
 0x698   :  { %v5240_v35 = vmax.f32 %v5237_v41, 0.0 }
 0x69a   :  { %v5245_v60 = vmul.f32 %v6148_v0, %v5240_v35 }
 0x69c   :  { %v5246_v49 = vsel %vm4865_vm8, %v5245_v60, 0.0 }
 0x69d   :  { %v5238_v6 = vpop.f32.mrf.mxu3  ;;  %5247 = vadd.xlane.f32.xlu0 %v5246_v49 }
 0x6cc   :  { %v4868_v51 = vpop.xlane.xlu1 %4867 }
 0x6cd   :  { %v4869_v23 = vsub.f32 %v4862_v3, %v4868_v51 }
 0x6cf   :  { %v4870_v19 = vmul.f32 1.442695, %v4869_v23 }
 0x6d1   :  { %6149 = vpow2.f32 %v4870_v19 }
 0x6d7   :  { %v6150_v25 = vpop.eup %6149 }
 0x6d8   :  { %v4872_v44 = vsel %vm4865_vm8, %v6150_v25, 0.0 }
 0x6d9   :  { %4873 = vadd.xlane.f32.xlu2 %v4872_v44 }
 0x710   :  { %v5248_v10 = vpop.xlane.xlu0 %5247 }
 0x711   :  { %v5250_v57 = vadd.f32 %v5249_v54, %v5248_v10 }
 0x713   :  { %6151 = vtanh.f32 %v5250_v57 }
 0x719   :  { %v6152_v13 = vpop.eup %6151 }
 0x71a   :  { %5253 = vst.msk [vmem:[%s10109_s13] sm:$0x3] %vm5252_vm9, %v6152_v13 }
 0x74c   :  { %v4874_v63 = vpop.xlane.xlu2 %4873 }
 0x74d   :  { %6153 = vlog2.f32 %v4874_v63 }
 0x753   :  { %v6154_v55 = vpop.eup %6153 }
 0x754   :  { %v4876_v62 = vmul.f32 0.6931472, %v6154_v55 }
 0x756   :  { %v4877_v21 = vsub.f32 %v4869_v23, %v4876_v62 }
 0x758   :  { %4878 = vst.msk [vmem:[#allocation2] sm:$0x3] %vm4865_vm8, %v4877_v21 }
 0x759   :  { %5264 = dma.vmem_to_hbm [thread:$0]  %s5260_s15, 32, %s5262_s17, [#allocation3]  }
 0x75a   :  { %6195 = dma.done.wait [#allocation3], 32  }
 0x75b   :  { %6196 = vsyncadd [#allocation3], 4294967264 }
 0x75c   :  { %5273 = vsyncpa [#allocation3], 1 }

</bundles_post_ra>
